<compile_context>
chip_gen: v5e
topology: v5e:2x2
jax: 0.10.0
libtpu: 0.0.40
codegen_flags: <defaults>
</compile_context>

<pallas_src>
import math

import jax
import jax.numpy as jnp
from jax.experimental import pallas as pl
from jax.experimental.pallas import tpu as pltpu

# ---------------- configuration ----------------
HIDDEN = 32             # config.hidden_size
K_DIM = 16              # mem_k_dim
HALF = K_DIM // 2
HEADS = 2               # mem_heads
KNN = 8                 # mem_knn
N_KEYS = 128            # mem_n_keys (small-test choice; default is 256)
SIZE = N_KEYS * N_KEYS  # number of memory values
V_DIM = HIDDEN          # mem_v_dim <= 0 -> output_size == hidden_size
QUERY_HID = 128         # mem_query_layer_sizes = '0,128,0'
HK = HEADS * KNN        # value rows gathered per sample
N_SLABS = 2 * HEADS     # (half, head) sub-key score slabs

IDX_BITS1 = (N_KEYS - 1).bit_length()     # 7: encode a stage-1 column
IDX_BITS2 = (KNN * KNN - 1).bit_length()  # 6: encode a stage-2 column


def _round_up(x, m):
    return ((x + m - 1) // m) * m


# ---------------- in-kernel helpers ----------------
def _topk_packed(scores, k, idx_bits, col_iota):
    """Top-k (largest, sorted) along the last axis with ONE cross-lane reduction
    per selected element.

    The f32 scores are bitcast to a signed-order-preserving int32 key whose low
    `idx_bits` bits are replaced by the inverted column index, so a single max()
    yields both the (truncated) value and its argmax, and equality with the max
    knocks out exactly one (unique) entry per iteration.  Near-ties within
    ~2**-(23-idx_bits) relative may resolve differently from an exact topk.

    scores: (R, C) f32, C <= 2**idx_bits.  col_iota: (R, C) int32 iota along the
    last axis, hoisted by the caller.  Returns (vals (R, k) f32, idxs (R, k) i32).
    """
    C = scores.shape[-1]
    low_mask = (1 << idx_bits) - 1
    u = pltpu.bitcast(scores, jnp.int32)
    key = jnp.where(u < 0, u ^ 0x7FFFFFFF, u)           # signed-monotonic in score
    packed = (key & ~low_mask) | ((C - 1) - col_iota)    # unique per column
    vals, idxs = [], []
    for _ in range(k):
        m = jnp.max(packed, axis=-1, keepdims=True)      # single XLU reduction
        idxs.append((C - 1) - (m & low_mask))
        mk = m & ~low_mask
        vals.append(pltpu.bitcast(jnp.where(mk < 0, mk ^ 0x7FFFFFFF, mk), jnp.float32))
        packed = jnp.where(packed == m, -2**31, packed)  # knocks out exactly one
    return jnp.concatenate(vals, axis=-1), jnp.concatenate(idxs, axis=-1)


def _gather_small(vals, pos, n):
    """out[b, r] = vals[b, pos[b, r]], pos in [0, n), n small (8)."""
    out = jnp.zeros_like(pos)
    for c in range(n):
        out = out + jnp.where(pos == c, vals[:, c:c + 1], 0)
    return out


# ---------------- kernel 1: query MLP + product-key top-k + softmax ----------------
def _score_kernel(x_ref, w1_ref, b1_ref, w2_ref, b2_ref, keys_ref,
                  scores_out_ref, idx_out_ref):
    tb = x_ref.shape[0]

    # Query MLP (QueryMLP, batchnorm=False): Linear -> ReLU -> Linear.
    h = jnp.dot(x_ref[...], w1_ref[...], preferred_element_type=jnp.float32) + b1_ref[...]
    h = jnp.maximum(h, 0.0)
    q = jnp.dot(h, w2_ref[...], preferred_element_type=jnp.float32) + b2_ref[...]

    # All (half, head) sub-key scores in ONE MXU matmul against the block-diagonal
    # transposed key matrix: (tb, 32) @ (32, N_SLABS*N_KEYS).
    s_all = jnp.dot(q, keys_ref[...], preferred_element_type=jnp.float32)

    # Stack the score slabs along the sublane axis; the column slices are
    # 128-lane aligned so this is vreg bookkeeping, not a relayout.
    # Slab order (fixed by keys_bd layout): s = half * HEADS + head.
    s_stack = jnp.concatenate(
        [s_all[:, s * N_KEYS:(s + 1) * N_KEYS] for s in range(N_SLABS)], axis=0)

    iota1 = jax.lax.broadcasted_iota(jnp.int32, s_stack.shape, 1)      # hoisted once
    v_top, i_top = _topk_packed(s_stack, KNN, IDX_BITS1, iota1)        # (N_SLABS*tb, knn)

    v1, i1 = v_top[:HEADS * tb], i_top[:HEADS * tb]   # half 0, both heads stacked
    v2, i2 = v_top[HEADS * tb:], i_top[HEADS * tb:]   # half 1, both heads stacked

    # Cartesian candidate sums for both heads at once -> (2*tb, knn*knn); the
    # (.., knn*knn) index tensor is never built (arithmetic decode below).
    all_s = jnp.concatenate([v1[:, r:r + 1] + v2 for r in range(KNN)], axis=-1)
    iota2 = jax.lax.broadcasted_iota(jnp.int32, all_s.shape, 1)        # hoisted once
    best_v, best_pos = _topk_packed(all_s, KNN, IDX_BITS2, iota2)      # (2*tb, knn)

    # Arithmetic decode of the product index: pos = r1 * knn + r2 (knn = 8).
    r1 = best_pos >> (KNN.bit_length() - 1)
    r2 = best_pos & (KNN - 1)
    i1_sel = _gather_small(i1, r1, KNN)
    i2_sel = _gather_small(i2, r2, KNN)
    best_i = i1_sel * N_KEYS + i2_sel                                  # (2*tb, knn)

    # Per-head softmax over the knn selected scores (exact division).
    m = jnp.max(best_v, axis=-1, keepdims=True)
    e = jnp.exp(best_v - m)
    w = e / jnp.sum(e, axis=-1, keepdims=True)

    # De-stack heads -> (tb, heads*knn), head-major like the PyTorch module.
    scores_out_ref[...] = jnp.concatenate(
        [w[hd * tb:(hd + 1) * tb] for hd in range(HEADS)], axis=-1)
    idx_out_ref[...] = jnp.concatenate(
        [best_i[hd * tb:(hd + 1) * tb] for hd in range(HEADS)], axis=-1)

    # TODO(synk): eval-mode bookkeeping (self.last_indices / self.last_scores) is a
    # host-side side effect; the tensors are materialized between the two kernels.
    # Dropout probabilities are all 0 in the default config (no-ops).


# ---------------- kernel 2: EmbeddingBag(mode='sum', per_sample_weights) ----------------
def _bag_kernel(idx_ref, w_ref, values_ref, out_ref):
    # idx_ref / w_ref: whole flattened (bs_pad*HK,) arrays in SMEM (scalar reads).
    # values_ref: (SIZE, V_DIM) f32 VMEM block with a constant block index (fetched
    # once by the pipeline).  out_ref: (tb, V_DIM).
    # TODO(synk): for very large batches (>~8K samples) the idx/weight streams should
    # be switched to per-tile SMEM blocks (or the two kernels fused) to stay within
    # SMEM; whole-array SMEM is kept here because it is the proven-safe lowering path.
    tb = out_ref.shape[0]
    tile_base = pl.program_id(0) * (tb * HK)

    def body(b, carry):
        base = tile_base + b * HK
        # 16 terms split over 4 independent partial accumulators -> the LLO scheduler
        # can co-issue the scalar-addressed row loads with the FMAs.
        partial = []
        for g in range(4):
            acc = jnp.zeros((1, V_DIM), jnp.float32)
            for t in range(HK // 4):
                j = g * (HK // 4) + t
                row = values_ref[pl.ds(idx_ref[base + j], 1), :]   # SMEM scalar address
                acc = acc + w_ref[base + j] * row                  # SMEM scalar weight
            partial.append(acc)
        out_ref[pl.ds(b, 1), :] = (partial[0] + partial[1]) + (partial[2] + partial[3])
        return carry

    jax.lax.fori_loop(0, tb, body, 0)


# ---------------- wrapper ----------------
def _tile_size(bs):
    # v6e/v7x MXUs are 256-wide -> tb=256; keep 128 on v5e/v5p and older.
    try:
        kind = jax.devices()[0].device_kind.lower()
    except Exception:
        kind = ""
    cap = 128 if any(t in kind for t in ("v2", "v3", "v4", "v5")) else 256
    return min(cap, _round_up(bs, 8))


def memory_layer_forward(x, params):
    assert x.shape[-1] == HIDDEN
    prefix_shape = x.shape[:-1]
    bs = int(math.prod(prefix_shape))
    x2 = x.reshape(bs, HIDDEN).astype(jnp.float32)

    tb = _tile_size(bs)
    bs_pad = _round_up(bs, tb)
    if bs_pad != bs:
        x2 = jnp.pad(x2, ((0, bs_pad - bs), (0, 0)))
    nb = bs_pad // tb

    # ---- kernel 1: per-sample softmax weights + memory indices ----
    k1_cost = pl.CostEstimate(
        flops=int(2 * bs_pad * (HIDDEN * QUERY_HID + QUERY_HID * HEADS * K_DIM
                                + HEADS * K_DIM * N_SLABS * N_KEYS)),
        transcendentals=int(bs_pad * HK),
        bytes_accessed=int(4 * (bs_pad * HIDDEN + HIDDEN * QUERY_HID
                                + QUERY_HID * HEADS * K_DIM
                                + HEADS * K_DIM * N_SLABS * N_KEYS
                                + 2 * bs_pad * HK)))
    scores, indices = pl.pallas_call(
        _score_kernel,
        out_shape=(jax.ShapeDtypeStruct((bs_pad, HK), jnp.float32),
                   jax.ShapeDtypeStruct((bs_pad, HK), jnp.int32)),
        grid=(nb,),
        in_specs=[
            pl.BlockSpec((tb, HIDDEN), lambda i: (i, 0)),
            pl.BlockSpec((HIDDEN, QUERY_HID), lambda i: (0, 0)),
            pl.BlockSpec((1, QUERY_HID), lambda i: (0, 0)),
            pl.BlockSpec((QUERY_HID, HEADS * K_DIM), lambda i: (0, 0)),
            pl.BlockSpec((1, HEADS * K_DIM), lambda i: (0, 0)),
            pl.BlockSpec((HEADS * K_DIM, N_SLABS * N_KEYS), lambda i: (0, 0)),
        ],
        out_specs=(pl.BlockSpec((tb, HK), lambda i: (i, 0)),
                   pl.BlockSpec((tb, HK), lambda i: (i, 0))),
        compiler_params=pltpu.CompilerParams(
            dimension_semantics=("parallel",),
            vmem_limit_bytes=32 * 1024 * 1024),
        cost_estimate=k1_cost,
    )(x2, params["w1"], params["b1"], params["w2"], params["b2"], params["keys_bd"])

    # ---- kernel 2: weighted value-row gather (EmbeddingBag sum) ----
    idx_flat = indices.reshape(bs_pad * HK)
    w_flat = scores.reshape(bs_pad * HK)

    k2_cost = pl.CostEstimate(
        flops=int(2 * bs_pad * HK * V_DIM),
        transcendentals=0,
        bytes_accessed=int(4 * (SIZE * V_DIM + 2 * bs_pad * HK + bs_pad * V_DIM)))
    out = pl.pallas_call(
        _bag_kernel,
        out_shape=jax.ShapeDtypeStruct((bs_pad, V_DIM), jnp.float32),
        grid=(nb,),
        in_specs=[
            pl.BlockSpec(memory_space=pltpu.MemorySpace.SMEM),     # indices (scalars)
            pl.BlockSpec(memory_space=pltpu.MemorySpace.SMEM),     # weights (scalars)
            pl.BlockSpec((SIZE, V_DIM), lambda i: (0, 0)),         # value table, fetched once
        ],
        out_specs=pl.BlockSpec((tb, V_DIM), lambda i: (i, 0)),
        compiler_params=pltpu.CompilerParams(
            dimension_semantics=("parallel",),                     # megacore-eligible on v7x
            vmem_limit_bytes=32 * 1024 * 1024),
        cost_estimate=k2_cost,
    )(idx_flat, w_flat, params["values"])

    out = out[:bs]
    return out.reshape(prefix_shape + (V_DIM,))


# ---------------- parameters ----------------
def init_params(key):
    k1, k2, k3, k4, k5, k6 = jax.random.split(key, 6)
    bound1 = 1.0 / math.sqrt(HIDDEN)
    bound2 = 1.0 / math.sqrt(QUERY_HID)
    w1 = jax.random.uniform(k1, (HIDDEN, QUERY_HID), jnp.float32, -bound1, bound1)
    b1 = jax.random.uniform(k2, (1, QUERY_HID), jnp.float32, -bound1, bound1)
    w2 = jax.random.uniform(k3, (QUERY_HID, HEADS * K_DIM), jnp.float32, -bound2, bound2)
    b2 = jax.random.uniform(k4, (1, HEADS * K_DIM), jnp.float32, -bound2, bound2)

    # Product keys: (heads, 2, n_keys, half), uniform in [-1/sqrt(half), 1/sqrt(half)].
    kb = 1.0 / math.sqrt(HALF)
    keys = jax.random.uniform(k5, (HEADS, 2, N_KEYS, HALF), jnp.float32, -kb, kb)

    # Block-diagonal transposed key matrix.  Column slab order is s = half*HEADS + head
    # so the score kernel can stack the slabs along the sublane axis and run a single
    # top-k knockout loop for all of them.
    keys_bd = jnp.zeros((HEADS * K_DIM, N_SLABS * N_KEYS), jnp.float32)
    for hd in range(HEADS):
        for h in range(2):
            r0 = hd * K_DIM + h * HALF
            c0 = (h * HEADS + hd) * N_KEYS
            keys_bd = keys_bd.at[r0:r0 + HALF, c0:c0 + N_KEYS].set(keys[hd, h].T)

    # Values: normal(0, v_dim ** -0.5).  Kept f32 (see header note about bf16).
    values = jax.random.normal(k6, (SIZE, V_DIM), jnp.float32) * (V_DIM ** -0.5)
    return {"w1": w1, "b1": b1, "w2": w2, "b2": b2, "keys_bd": keys_bd, "values": values}


if __name__ == "__main__":
    key = jax.random.PRNGKey(0)
    pkey, xkey = jax.random.split(key)
    params = init_params(pkey)

    B, S = 2, 8
    x = jax.random.normal(xkey, (B, S, HIDDEN), jnp.float32)

    out = memory_layer_forward(x, params)
    out = jax.block_until_ready(out)
    assert out.shape == (B, S, V_DIM)
    assert bool(jnp.all(jnp.isfinite(out)))
    print("KERNEL_OK")
</pallas_src>

<mosaic_0001>
module attributes {stable_mosaic.version = 11 : i64} {
  func.func @_score_kernel(%arg0: i32, %arg1: memref<16x32xf32, #tpu.memory_space<vmem>>, %arg2: memref<32x128xf32, #tpu.memory_space<vmem>>, %arg3: memref<1x128xf32, #tpu.memory_space<vmem>>, %arg4: memref<128x32xf32, #tpu.memory_space<vmem>>, %arg5: memref<1x32xf32, #tpu.memory_space<vmem>>, %arg6: memref<32x512xf32, #tpu.memory_space<vmem>>, %arg7: memref<16x16xf32, #tpu.memory_space<vmem>>, %arg8: memref<16x16xi32, #tpu.memory_space<vmem>>) attributes {dimension_semantics = [#tpu.dimension_semantics<parallel>], iteration_bounds = array<i64: 1>, scalar_prefetch = 0 : i64, scratch_operands = 0 : i64, tpu.core_type = #tpu.core_type<tc>, window_params = [{transform_indices = @transform_0, window_bounds = array<i64: 16, 32>}, {pipeline_mode = #tpu.pipeline_mode<synchronous>, transform_indices = @transform_1, window_bounds = array<i64: 32, 128>}, {pipeline_mode = #tpu.pipeline_mode<synchronous>, transform_indices = @transform_2, window_bounds = array<i64: 1, 128>}, {pipeline_mode = #tpu.pipeline_mode<synchronous>, transform_indices = @transform_3, window_bounds = array<i64: 128, 32>}, {pipeline_mode = #tpu.pipeline_mode<synchronous>, transform_indices = @transform_4, window_bounds = array<i64: 1, 32>}, {pipeline_mode = #tpu.pipeline_mode<synchronous>, transform_indices = @transform_5, window_bounds = array<i64: 32, 512>}, {transform_indices = @transform_6, window_bounds = array<i64: 16, 16>}, {transform_indices = @transform_7, window_bounds = array<i64: 16, 16>}]} {
    %c0 = arith.constant 0 : index
    %c0_0 = arith.constant 0 : index
    %0 = vector.load %arg1[%c0, %c0_0] : memref<16x32xf32, #tpu.memory_space<vmem>>, vector<16x32xf32>
    %c0_1 = arith.constant 0 : index
    %c0_2 = arith.constant 0 : index
    %1 = vector.load %arg2[%c0_1, %c0_2] : memref<32x128xf32, #tpu.memory_space<vmem>>, vector<32x128xf32>
    %cst = arith.constant dense<0.000000e+00> : vector<16x128xf32>
    %2 = tpu.matmul %0, %1, %cst {dimension_numbers = #tpu.dot_dimension_numbers<[1], [0], [0], [1], [0, 0, 1, 1], [], []>} : vector<16x32xf32>, vector<32x128xf32>, vector<16x128xf32> -> vector<16x128xf32>
    %c0_3 = arith.constant 0 : index
    %c0_4 = arith.constant 0 : index
    %3 = vector.load %arg3[%c0_3, %c0_4] : memref<1x128xf32, #tpu.memory_space<vmem>>, vector<1x128xf32>
    %4 = vector.broadcast %3 : vector<1x128xf32> to vector<16x128xf32>
    %5 = arith.addf %2, %4 : vector<16x128xf32>
    %cst_5 = arith.constant 0.000000e+00 : f32
    %6 = vector.broadcast %cst_5 : f32 to vector<16x128xf32>
    %7 = arith.maximumf %5, %6 : vector<16x128xf32>
    %c0_6 = arith.constant 0 : index
    %c0_7 = arith.constant 0 : index
    %8 = vector.load %arg4[%c0_6, %c0_7] : memref<128x32xf32, #tpu.memory_space<vmem>>, vector<128x32xf32>
    %cst_8 = arith.constant dense<0.000000e+00> : vector<16x32xf32>
    %9 = tpu.matmul %7, %8, %cst_8 {dimension_numbers = #tpu.dot_dimension_numbers<[1], [0], [0], [1], [0, 0, 1, 1], [], []>} : vector<16x128xf32>, vector<128x32xf32>, vector<16x32xf32> -> vector<16x32xf32>
    %c0_9 = arith.constant 0 : index
    %c0_10 = arith.constant 0 : index
    %10 = vector.load %arg5[%c0_9, %c0_10] : memref<1x32xf32, #tpu.memory_space<vmem>>, vector<1x32xf32>
    %11 = vector.broadcast %10 : vector<1x32xf32> to vector<16x32xf32>
    %12 = arith.addf %9, %11 : vector<16x32xf32>
    %c0_11 = arith.constant 0 : index
    %c0_12 = arith.constant 0 : index
    %13 = vector.load %arg6[%c0_11, %c0_12] : memref<32x512xf32, #tpu.memory_space<vmem>>, vector<32x512xf32>
    %cst_13 = arith.constant dense<0.000000e+00> : vector<16x512xf32>
    %14 = tpu.matmul %12, %13, %cst_13 {dimension_numbers = #tpu.dot_dimension_numbers<[1], [0], [0], [1], [0, 0, 1, 1], [], []>} : vector<16x32xf32>, vector<32x512xf32>, vector<16x512xf32> -> vector<16x512xf32>
    %15 = vector.extract_strided_slice %14 {offsets = [0, 0], sizes = [16, 128], strides = [1, 1]} : vector<16x512xf32> to vector<16x128xf32>
    %16 = vector.extract_strided_slice %14 {offsets = [0, 128], sizes = [16, 128], strides = [1, 1]} : vector<16x512xf32> to vector<16x128xf32>
    %17 = vector.extract_strided_slice %14 {offsets = [0, 256], sizes = [16, 128], strides = [1, 1]} : vector<16x512xf32> to vector<16x128xf32>
    %18 = vector.extract_strided_slice %14 {offsets = [0, 384], sizes = [16, 128], strides = [1, 1]} : vector<16x512xf32> to vector<16x128xf32>
    %19 = tpu.concatenate %15, %16, %17, %18 in 0 : vector<16x128xf32>, vector<16x128xf32>, vector<16x128xf32>, vector<16x128xf32> -> vector<64x128xf32>
    %20 = tpu.iota {dimensions = array<i32: 1>} : vector<64x128xi32>
    %21 = tpu.bitcast %19 : vector<64x128xf32> -> vector<64x128xi32>
    %c0_i32 = arith.constant 0 : i32
    %22 = vector.broadcast %c0_i32 : i32 to vector<64x128xi32>
    %23 = arith.cmpi slt, %21, %22 : vector<64x128xi32>
    %c2147483647_i32 = arith.constant 2147483647 : i32
    %24 = vector.broadcast %c2147483647_i32 : i32 to vector<64x128xi32>
    %25 = arith.xori %21, %24 : vector<64x128xi32>
    %26 = arith.select %23, %25, %21 : vector<64x128xi1>, vector<64x128xi32>
    %c-128_i32 = arith.constant -128 : i32
    %27 = vector.broadcast %c-128_i32 : i32 to vector<64x128xi32>
    %28 = arith.andi %26, %27 : vector<64x128xi32>
    %c127_i32 = arith.constant 127 : i32
    %29 = vector.broadcast %c127_i32 : i32 to vector<64x128xi32>
    %30 = arith.subi %29, %20 : vector<64x128xi32>
    %31 = arith.ori %28, %30 : vector<64x128xi32>
    %cst_14 = arith.constant dense<-2147483648> : vector<64xi32>
    %32 = vector.multi_reduction <maxsi>, %31, %cst_14 [1] : vector<64x128xi32> to vector<64xi32>
    %33 = vector.shape_cast %32 : vector<64xi32> to vector<64x1xi32>
    %c127_i32_15 = arith.constant 127 : i32
    %34 = vector.broadcast %c127_i32_15 : i32 to vector<64x1xi32>
    %35 = arith.andi %33, %34 : vector<64x1xi32>
    %c127_i32_16 = arith.constant 127 : i32
    %36 = vector.broadcast %c127_i32_16 : i32 to vector<64x1xi32>
    %37 = arith.subi %36, %35 : vector<64x1xi32>
    %c-128_i32_17 = arith.constant -128 : i32
    %38 = vector.broadcast %c-128_i32_17 : i32 to vector<64x1xi32>
    %39 = arith.andi %33, %38 : vector<64x1xi32>
    %c0_i32_18 = arith.constant 0 : i32
    %40 = vector.broadcast %c0_i32_18 : i32 to vector<64x1xi32>
    %41 = arith.cmpi slt, %39, %40 : vector<64x1xi32>
    %c2147483647_i32_19 = arith.constant 2147483647 : i32
    %42 = vector.broadcast %c2147483647_i32_19 : i32 to vector<64x1xi32>
    %43 = arith.xori %39, %42 : vector<64x1xi32>
    %44 = arith.select %41, %43, %39 : vector<64x1xi1>, vector<64x1xi32>
    %45 = tpu.bitcast %44 : vector<64x1xi32> -> vector<64x1xf32>
    %46 = vector.broadcast %33 : vector<64x1xi32> to vector<64x128xi32>
    %47 = arith.cmpi eq, %31, %46 : vector<64x128xi32>
    %c-2147483648_i32 = arith.constant -2147483648 : i32
    %48 = vector.broadcast %c-2147483648_i32 : i32 to vector<64x128xi32>
    %49 = arith.select %47, %48, %31 : vector<64x128xi1>, vector<64x128xi32>
    %cst_20 = arith.constant dense<-2147483648> : vector<64xi32>
    %50 = vector.multi_reduction <maxsi>, %49, %cst_20 [1] : vector<64x128xi32> to vector<64xi32>
    %51 = vector.shape_cast %50 : vector<64xi32> to vector<64x1xi32>
    %c127_i32_21 = arith.constant 127 : i32
    %52 = vector.broadcast %c127_i32_21 : i32 to vector<64x1xi32>
    %53 = arith.andi %51, %52 : vector<64x1xi32>
    %c127_i32_22 = arith.constant 127 : i32
    %54 = vector.broadcast %c127_i32_22 : i32 to vector<64x1xi32>
    %55 = arith.subi %54, %53 : vector<64x1xi32>
    %c-128_i32_23 = arith.constant -128 : i32
    %56 = vector.broadcast %c-128_i32_23 : i32 to vector<64x1xi32>
    %57 = arith.andi %51, %56 : vector<64x1xi32>
    %c0_i32_24 = arith.constant 0 : i32
    %58 = vector.broadcast %c0_i32_24 : i32 to vector<64x1xi32>
    %59 = arith.cmpi slt, %57, %58 : vector<64x1xi32>
    %c2147483647_i32_25 = arith.constant 2147483647 : i32
    %60 = vector.broadcast %c2147483647_i32_25 : i32 to vector<64x1xi32>
    %61 = arith.xori %57, %60 : vector<64x1xi32>
    %62 = arith.select %59, %61, %57 : vector<64x1xi1>, vector<64x1xi32>
    %63 = tpu.bitcast %62 : vector<64x1xi32> -> vector<64x1xf32>
    %64 = vector.broadcast %51 : vector<64x1xi32> to vector<64x128xi32>
    %65 = arith.cmpi eq, %49, %64 : vector<64x128xi32>
    %c-2147483648_i32_26 = arith.constant -2147483648 : i32
    %66 = vector.broadcast %c-2147483648_i32_26 : i32 to vector<64x128xi32>
    %67 = arith.select %65, %66, %49 : vector<64x128xi1>, vector<64x128xi32>
    %cst_27 = arith.constant dense<-2147483648> : vector<64xi32>
    %68 = vector.multi_reduction <maxsi>, %67, %cst_27 [1] : vector<64x128xi32> to vector<64xi32>
    %69 = vector.shape_cast %68 : vector<64xi32> to vector<64x1xi32>
    %c127_i32_28 = arith.constant 127 : i32
    %70 = vector.broadcast %c127_i32_28 : i32 to vector<64x1xi32>
    %71 = arith.andi %69, %70 : vector<64x1xi32>
    %c127_i32_29 = arith.constant 127 : i32
    %72 = vector.broadcast %c127_i32_29 : i32 to vector<64x1xi32>
    %73 = arith.subi %72, %71 : vector<64x1xi32>
    %c-128_i32_30 = arith.constant -128 : i32
    %74 = vector.broadcast %c-128_i32_30 : i32 to vector<64x1xi32>
    %75 = arith.andi %69, %74 : vector<64x1xi32>
    %c0_i32_31 = arith.constant 0 : i32
    %76 = vector.broadcast %c0_i32_31 : i32 to vector<64x1xi32>
    %77 = arith.cmpi slt, %75, %76 : vector<64x1xi32>
    %c2147483647_i32_32 = arith.constant 2147483647 : i32
    %78 = vector.broadcast %c2147483647_i32_32 : i32 to vector<64x1xi32>
    %79 = arith.xori %75, %78 : vector<64x1xi32>
    %80 = arith.select %77, %79, %75 : vector<64x1xi1>, vector<64x1xi32>
    %81 = tpu.bitcast %80 : vector<64x1xi32> -> vector<64x1xf32>
    %82 = vector.broadcast %69 : vector<64x1xi32> to vector<64x128xi32>
    %83 = arith.cmpi eq, %67, %82 : vector<64x128xi32>
    %c-2147483648_i32_33 = arith.constant -2147483648 : i32
    %84 = vector.broadcast %c-2147483648_i32_33 : i32 to vector<64x128xi32>
    %85 = arith.select %83, %84, %67 : vector<64x128xi1>, vector<64x128xi32>
    %cst_34 = arith.constant dense<-2147483648> : vector<64xi32>
    %86 = vector.multi_reduction <maxsi>, %85, %cst_34 [1] : vector<64x128xi32> to vector<64xi32>
    %87 = vector.shape_cast %86 : vector<64xi32> to vector<64x1xi32>
    %c127_i32_35 = arith.constant 127 : i32
    %88 = vector.broadcast %c127_i32_35 : i32 to vector<64x1xi32>
    %89 = arith.andi %87, %88 : vector<64x1xi32>
    %c127_i32_36 = arith.constant 127 : i32
    %90 = vector.broadcast %c127_i32_36 : i32 to vector<64x1xi32>
    %91 = arith.subi %90, %89 : vector<64x1xi32>
    %c-128_i32_37 = arith.constant -128 : i32
    %92 = vector.broadcast %c-128_i32_37 : i32 to vector<64x1xi32>
    %93 = arith.andi %87, %92 : vector<64x1xi32>
    %c0_i32_38 = arith.constant 0 : i32
    %94 = vector.broadcast %c0_i32_38 : i32 to vector<64x1xi32>
    %95 = arith.cmpi slt, %93, %94 : vector<64x1xi32>
    %c2147483647_i32_39 = arith.constant 2147483647 : i32
    %96 = vector.broadcast %c2147483647_i32_39 : i32 to vector<64x1xi32>
    %97 = arith.xori %93, %96 : vector<64x1xi32>
    %98 = arith.select %95, %97, %93 : vector<64x1xi1>, vector<64x1xi32>
    %99 = tpu.bitcast %98 : vector<64x1xi32> -> vector<64x1xf32>
    %100 = vector.broadcast %87 : vector<64x1xi32> to vector<64x128xi32>
    %101 = arith.cmpi eq, %85, %100 : vector<64x128xi32>
    %c-2147483648_i32_40 = arith.constant -2147483648 : i32
    %102 = vector.broadcast %c-2147483648_i32_40 : i32 to vector<64x128xi32>
    %103 = arith.select %101, %102, %85 : vector<64x128xi1>, vector<64x128xi32>
    %cst_41 = arith.constant dense<-2147483648> : vector<64xi32>
    %104 = vector.multi_reduction <maxsi>, %103, %cst_41 [1] : vector<64x128xi32> to vector<64xi32>
    %105 = vector.shape_cast %104 : vector<64xi32> to vector<64x1xi32>
    %c127_i32_42 = arith.constant 127 : i32
    %106 = vector.broadcast %c127_i32_42 : i32 to vector<64x1xi32>
    %107 = arith.andi %105, %106 : vector<64x1xi32>
    %c127_i32_43 = arith.constant 127 : i32
    %108 = vector.broadcast %c127_i32_43 : i32 to vector<64x1xi32>
    %109 = arith.subi %108, %107 : vector<64x1xi32>
    %c-128_i32_44 = arith.constant -128 : i32
    %110 = vector.broadcast %c-128_i32_44 : i32 to vector<64x1xi32>
    %111 = arith.andi %105, %110 : vector<64x1xi32>
    %c0_i32_45 = arith.constant 0 : i32
    %112 = vector.broadcast %c0_i32_45 : i32 to vector<64x1xi32>
    %113 = arith.cmpi slt, %111, %112 : vector<64x1xi32>
    %c2147483647_i32_46 = arith.constant 2147483647 : i32
    %114 = vector.broadcast %c2147483647_i32_46 : i32 to vector<64x1xi32>
    %115 = arith.xori %111, %114 : vector<64x1xi32>
    %116 = arith.select %113, %115, %111 : vector<64x1xi1>, vector<64x1xi32>
    %117 = tpu.bitcast %116 : vector<64x1xi32> -> vector<64x1xf32>
    %118 = vector.broadcast %105 : vector<64x1xi32> to vector<64x128xi32>
    %119 = arith.cmpi eq, %103, %118 : vector<64x128xi32>
    %c-2147483648_i32_47 = arith.constant -2147483648 : i32
    %120 = vector.broadcast %c-2147483648_i32_47 : i32 to vector<64x128xi32>
    %121 = arith.select %119, %120, %103 : vector<64x128xi1>, vector<64x128xi32>
    %cst_48 = arith.constant dense<-2147483648> : vector<64xi32>
    %122 = vector.multi_reduction <maxsi>, %121, %cst_48 [1] : vector<64x128xi32> to vector<64xi32>
    %123 = vector.shape_cast %122 : vector<64xi32> to vector<64x1xi32>
    %c127_i32_49 = arith.constant 127 : i32
    %124 = vector.broadcast %c127_i32_49 : i32 to vector<64x1xi32>
    %125 = arith.andi %123, %124 : vector<64x1xi32>
    %c127_i32_50 = arith.constant 127 : i32
    %126 = vector.broadcast %c127_i32_50 : i32 to vector<64x1xi32>
    %127 = arith.subi %126, %125 : vector<64x1xi32>
    %c-128_i32_51 = arith.constant -128 : i32
    %128 = vector.broadcast %c-128_i32_51 : i32 to vector<64x1xi32>
    %129 = arith.andi %123, %128 : vector<64x1xi32>
    %c0_i32_52 = arith.constant 0 : i32
    %130 = vector.broadcast %c0_i32_52 : i32 to vector<64x1xi32>
    %131 = arith.cmpi slt, %129, %130 : vector<64x1xi32>
    %c2147483647_i32_53 = arith.constant 2147483647 : i32
    %132 = vector.broadcast %c2147483647_i32_53 : i32 to vector<64x1xi32>
    %133 = arith.xori %129, %132 : vector<64x1xi32>
    %134 = arith.select %131, %133, %129 : vector<64x1xi1>, vector<64x1xi32>
    %135 = tpu.bitcast %134 : vector<64x1xi32> -> vector<64x1xf32>
    %136 = vector.broadcast %123 : vector<64x1xi32> to vector<64x128xi32>
    %137 = arith.cmpi eq, %121, %136 : vector<64x128xi32>
    %c-2147483648_i32_54 = arith.constant -2147483648 : i32
    %138 = vector.broadcast %c-2147483648_i32_54 : i32 to vector<64x128xi32>
    %139 = arith.select %137, %138, %121 : vector<64x128xi1>, vector<64x128xi32>
    %cst_55 = arith.constant dense<-2147483648> : vector<64xi32>
    %140 = vector.multi_reduction <maxsi>, %139, %cst_55 [1] : vector<64x128xi32> to vector<64xi32>
    %141 = vector.shape_cast %140 : vector<64xi32> to vector<64x1xi32>
    %c127_i32_56 = arith.constant 127 : i32
    %142 = vector.broadcast %c127_i32_56 : i32 to vector<64x1xi32>
    %143 = arith.andi %141, %142 : vector<64x1xi32>
    %c127_i32_57 = arith.constant 127 : i32
    %144 = vector.broadcast %c127_i32_57 : i32 to vector<64x1xi32>
    %145 = arith.subi %144, %143 : vector<64x1xi32>
    %c-128_i32_58 = arith.constant -128 : i32
    %146 = vector.broadcast %c-128_i32_58 : i32 to vector<64x1xi32>
    %147 = arith.andi %141, %146 : vector<64x1xi32>
    %c0_i32_59 = arith.constant 0 : i32
    %148 = vector.broadcast %c0_i32_59 : i32 to vector<64x1xi32>
    %149 = arith.cmpi slt, %147, %148 : vector<64x1xi32>
    %c2147483647_i32_60 = arith.constant 2147483647 : i32
    %150 = vector.broadcast %c2147483647_i32_60 : i32 to vector<64x1xi32>
    %151 = arith.xori %147, %150 : vector<64x1xi32>
    %152 = arith.select %149, %151, %147 : vector<64x1xi1>, vector<64x1xi32>
    %153 = tpu.bitcast %152 : vector<64x1xi32> -> vector<64x1xf32>
    %154 = vector.broadcast %141 : vector<64x1xi32> to vector<64x128xi32>
    %155 = arith.cmpi eq, %139, %154 : vector<64x128xi32>
    %c-2147483648_i32_61 = arith.constant -2147483648 : i32
    %156 = vector.broadcast %c-2147483648_i32_61 : i32 to vector<64x128xi32>
    %157 = arith.select %155, %156, %139 : vector<64x128xi1>, vector<64x128xi32>
    %cst_62 = arith.constant dense<-2147483648> : vector<64xi32>
    %158 = vector.multi_reduction <maxsi>, %157, %cst_62 [1] : vector<64x128xi32> to vector<64xi32>
    %159 = vector.shape_cast %158 : vector<64xi32> to vector<64x1xi32>
    %c127_i32_63 = arith.constant 127 : i32
    %160 = vector.broadcast %c127_i32_63 : i32 to vector<64x1xi32>
    %161 = arith.andi %159, %160 : vector<64x1xi32>
    %c127_i32_64 = arith.constant 127 : i32
    %162 = vector.broadcast %c127_i32_64 : i32 to vector<64x1xi32>
    %163 = arith.subi %162, %161 : vector<64x1xi32>
    %c-128_i32_65 = arith.constant -128 : i32
    %164 = vector.broadcast %c-128_i32_65 : i32 to vector<64x1xi32>
    %165 = arith.andi %159, %164 : vector<64x1xi32>
    %c0_i32_66 = arith.constant 0 : i32
    %166 = vector.broadcast %c0_i32_66 : i32 to vector<64x1xi32>
    %167 = arith.cmpi slt, %165, %166 : vector<64x1xi32>
    %c2147483647_i32_67 = arith.constant 2147483647 : i32
    %168 = vector.broadcast %c2147483647_i32_67 : i32 to vector<64x1xi32>
    %169 = arith.xori %165, %168 : vector<64x1xi32>
    %170 = arith.select %167, %169, %165 : vector<64x1xi1>, vector<64x1xi32>
    %171 = tpu.bitcast %170 : vector<64x1xi32> -> vector<64x1xf32>
    %172 = tpu.concatenate %45, %63, %81, %99, %117, %135, %153, %171 in 1 : vector<64x1xf32>, vector<64x1xf32>, vector<64x1xf32>, vector<64x1xf32>, vector<64x1xf32>, vector<64x1xf32>, vector<64x1xf32>, vector<64x1xf32> -> vector<64x8xf32>
    %173 = tpu.concatenate %37, %55, %73, %91, %109, %127, %145, %163 in 1 : vector<64x1xi32>, vector<64x1xi32>, vector<64x1xi32>, vector<64x1xi32>, vector<64x1xi32>, vector<64x1xi32>, vector<64x1xi32>, vector<64x1xi32> -> vector<64x8xi32>
    %174 = vector.extract_strided_slice %172 {offsets = [0, 0], sizes = [32, 8], strides = [1, 1]} : vector<64x8xf32> to vector<32x8xf32>
    %175 = vector.extract_strided_slice %173 {offsets = [0, 0], sizes = [32, 8], strides = [1, 1]} : vector<64x8xi32> to vector<32x8xi32>
    %176 = vector.extract_strided_slice %172 {offsets = [32, 0], sizes = [32, 8], strides = [1, 1]} : vector<64x8xf32> to vector<32x8xf32>
    %177 = vector.extract_strided_slice %173 {offsets = [32, 0], sizes = [32, 8], strides = [1, 1]} : vector<64x8xi32> to vector<32x8xi32>
    %178 = vector.extract_strided_slice %174 {offsets = [0, 0], sizes = [32, 1], strides = [1, 1]} : vector<32x8xf32> to vector<32x1xf32>
    %179 = vector.broadcast %178 : vector<32x1xf32> to vector<32x8xf32>
    %180 = arith.addf %179, %176 : vector<32x8xf32>
    %181 = vector.extract_strided_slice %174 {offsets = [0, 1], sizes = [32, 1], strides = [1, 1]} : vector<32x8xf32> to vector<32x1xf32>
    %182 = vector.broadcast %181 : vector<32x1xf32> to vector<32x8xf32>
    %183 = arith.addf %182, %176 : vector<32x8xf32>
    %184 = vector.extract_strided_slice %174 {offsets = [0, 2], sizes = [32, 1], strides = [1, 1]} : vector<32x8xf32> to vector<32x1xf32>
    %185 = vector.broadcast %184 : vector<32x1xf32> to vector<32x8xf32>
    %186 = arith.addf %185, %176 : vector<32x8xf32>
    %187 = vector.extract_strided_slice %174 {offsets = [0, 3], sizes = [32, 1], strides = [1, 1]} : vector<32x8xf32> to vector<32x1xf32>
    %188 = vector.broadcast %187 : vector<32x1xf32> to vector<32x8xf32>
    %189 = arith.addf %188, %176 : vector<32x8xf32>
    %190 = vector.extract_strided_slice %174 {offsets = [0, 4], sizes = [32, 1], strides = [1, 1]} : vector<32x8xf32> to vector<32x1xf32>
    %191 = vector.broadcast %190 : vector<32x1xf32> to vector<32x8xf32>
    %192 = arith.addf %191, %176 : vector<32x8xf32>
    %193 = vector.extract_strided_slice %174 {offsets = [0, 5], sizes = [32, 1], strides = [1, 1]} : vector<32x8xf32> to vector<32x1xf32>
    %194 = vector.broadcast %193 : vector<32x1xf32> to vector<32x8xf32>
    %195 = arith.addf %194, %176 : vector<32x8xf32>
    %196 = vector.extract_strided_slice %174 {offsets = [0, 6], sizes = [32, 1], strides = [1, 1]} : vector<32x8xf32> to vector<32x1xf32>
    %197 = vector.broadcast %196 : vector<32x1xf32> to vector<32x8xf32>
    %198 = arith.addf %197, %176 : vector<32x8xf32>
    %199 = vector.extract_strided_slice %174 {offsets = [0, 7], sizes = [32, 1], strides = [1, 1]} : vector<32x8xf32> to vector<32x1xf32>
    %200 = vector.broadcast %199 : vector<32x1xf32> to vector<32x8xf32>
    %201 = arith.addf %200, %176 : vector<32x8xf32>
    %202 = tpu.concatenate %180, %183, %186, %189, %192, %195, %198, %201 in 1 : vector<32x8xf32>, vector<32x8xf32>, vector<32x8xf32>, vector<32x8xf32>, vector<32x8xf32>, vector<32x8xf32>, vector<32x8xf32>, vector<32x8xf32> -> vector<32x64xf32>
    %203 = tpu.iota {dimensions = array<i32: 1>} : vector<32x64xi32>
    %204 = tpu.bitcast %202 : vector<32x64xf32> -> vector<32x64xi32>
    %c0_i32_68 = arith.constant 0 : i32
    %205 = vector.broadcast %c0_i32_68 : i32 to vector<32x64xi32>
    %206 = arith.cmpi slt, %204, %205 : vector<32x64xi32>
    %c2147483647_i32_69 = arith.constant 2147483647 : i32
    %207 = vector.broadcast %c2147483647_i32_69 : i32 to vector<32x64xi32>
    %208 = arith.xori %204, %207 : vector<32x64xi32>
    %209 = arith.select %206, %208, %204 : vector<32x64xi1>, vector<32x64xi32>
    %c-64_i32 = arith.constant -64 : i32
    %210 = vector.broadcast %c-64_i32 : i32 to vector<32x64xi32>
    %211 = arith.andi %209, %210 : vector<32x64xi32>
    %c63_i32 = arith.constant 63 : i32
    %212 = vector.broadcast %c63_i32 : i32 to vector<32x64xi32>
    %213 = arith.subi %212, %203 : vector<32x64xi32>
    %214 = arith.ori %211, %213 : vector<32x64xi32>
    %cst_70 = arith.constant dense<-2147483648> : vector<32xi32>
    %215 = vector.multi_reduction <maxsi>, %214, %cst_70 [1] : vector<32x64xi32> to vector<32xi32>
    %216 = vector.shape_cast %215 : vector<32xi32> to vector<32x1xi32>
    %c63_i32_71 = arith.constant 63 : i32
    %217 = vector.broadcast %c63_i32_71 : i32 to vector<32x1xi32>
    %218 = arith.andi %216, %217 : vector<32x1xi32>
    %c63_i32_72 = arith.constant 63 : i32
    %219 = vector.broadcast %c63_i32_72 : i32 to vector<32x1xi32>
    %220 = arith.subi %219, %218 : vector<32x1xi32>
    %c-64_i32_73 = arith.constant -64 : i32
    %221 = vector.broadcast %c-64_i32_73 : i32 to vector<32x1xi32>
    %222 = arith.andi %216, %221 : vector<32x1xi32>
    %c0_i32_74 = arith.constant 0 : i32
    %223 = vector.broadcast %c0_i32_74 : i32 to vector<32x1xi32>
    %224 = arith.cmpi slt, %222, %223 : vector<32x1xi32>
    %c2147483647_i32_75 = arith.constant 2147483647 : i32
    %225 = vector.broadcast %c2147483647_i32_75 : i32 to vector<32x1xi32>
    %226 = arith.xori %222, %225 : vector<32x1xi32>
    %227 = arith.select %224, %226, %222 : vector<32x1xi1>, vector<32x1xi32>
    %228 = tpu.bitcast %227 : vector<32x1xi32> -> vector<32x1xf32>
    %229 = vector.broadcast %216 : vector<32x1xi32> to vector<32x64xi32>
    %230 = arith.cmpi eq, %214, %229 : vector<32x64xi32>
    %c-2147483648_i32_76 = arith.constant -2147483648 : i32
    %231 = vector.broadcast %c-2147483648_i32_76 : i32 to vector<32x64xi32>
    %232 = arith.select %230, %231, %214 : vector<32x64xi1>, vector<32x64xi32>
    %cst_77 = arith.constant dense<-2147483648> : vector<32xi32>
    %233 = vector.multi_reduction <maxsi>, %232, %cst_77 [1] : vector<32x64xi32> to vector<32xi32>
    %234 = vector.shape_cast %233 : vector<32xi32> to vector<32x1xi32>
    %c63_i32_78 = arith.constant 63 : i32
    %235 = vector.broadcast %c63_i32_78 : i32 to vector<32x1xi32>
    %236 = arith.andi %234, %235 : vector<32x1xi32>
    %c63_i32_79 = arith.constant 63 : i32
    %237 = vector.broadcast %c63_i32_79 : i32 to vector<32x1xi32>
    %238 = arith.subi %237, %236 : vector<32x1xi32>
    %c-64_i32_80 = arith.constant -64 : i32
    %239 = vector.broadcast %c-64_i32_80 : i32 to vector<32x1xi32>
    %240 = arith.andi %234, %239 : vector<32x1xi32>
    %c0_i32_81 = arith.constant 0 : i32
    %241 = vector.broadcast %c0_i32_81 : i32 to vector<32x1xi32>
    %242 = arith.cmpi slt, %240, %241 : vector<32x1xi32>
    %c2147483647_i32_82 = arith.constant 2147483647 : i32
    %243 = vector.broadcast %c2147483647_i32_82 : i32 to vector<32x1xi32>
    %244 = arith.xori %240, %243 : vector<32x1xi32>
    %245 = arith.select %242, %244, %240 : vector<32x1xi1>, vector<32x1xi32>
    %246 = tpu.bitcast %245 : vector<32x1xi32> -> vector<32x1xf32>
    %247 = vector.broadcast %234 : vector<32x1xi32> to vector<32x64xi32>
    %248 = arith.cmpi eq, %232, %247 : vector<32x64xi32>
    %c-2147483648_i32_83 = arith.constant -2147483648 : i32
    %249 = vector.broadcast %c-2147483648_i32_83 : i32 to vector<32x64xi32>
    %250 = arith.select %248, %249, %232 : vector<32x64xi1>, vector<32x64xi32>
    %cst_84 = arith.constant dense<-2147483648> : vector<32xi32>
    %251 = vector.multi_reduction <maxsi>, %250, %cst_84 [1] : vector<32x64xi32> to vector<32xi32>
    %252 = vector.shape_cast %251 : vector<32xi32> to vector<32x1xi32>
    %c63_i32_85 = arith.constant 63 : i32
    %253 = vector.broadcast %c63_i32_85 : i32 to vector<32x1xi32>
    %254 = arith.andi %252, %253 : vector<32x1xi32>
    %c63_i32_86 = arith.constant 63 : i32
    %255 = vector.broadcast %c63_i32_86 : i32 to vector<32x1xi32>
    %256 = arith.subi %255, %254 : vector<32x1xi32>
    %c-64_i32_87 = arith.constant -64 : i32
    %257 = vector.broadcast %c-64_i32_87 : i32 to vector<32x1xi32>
    %258 = arith.andi %252, %257 : vector<32x1xi32>
    %c0_i32_88 = arith.constant 0 : i32
    %259 = vector.broadcast %c0_i32_88 : i32 to vector<32x1xi32>
    %260 = arith.cmpi slt, %258, %259 : vector<32x1xi32>
    %c2147483647_i32_89 = arith.constant 2147483647 : i32
    %261 = vector.broadcast %c2147483647_i32_89 : i32 to vector<32x1xi32>
    %262 = arith.xori %258, %261 : vector<32x1xi32>
    %263 = arith.select %260, %262, %258 : vector<32x1xi1>, vector<32x1xi32>
    %264 = tpu.bitcast %263 : vector<32x1xi32> -> vector<32x1xf32>
    %265 = vector.broadcast %252 : vector<32x1xi32> to vector<32x64xi32>
    %266 = arith.cmpi eq, %250, %265 : vector<32x64xi32>
    %c-2147483648_i32_90 = arith.constant -2147483648 : i32
    %267 = vector.broadcast %c-2147483648_i32_90 : i32 to vector<32x64xi32>
    %268 = arith.select %266, %267, %250 : vector<32x64xi1>, vector<32x64xi32>
    %cst_91 = arith.constant dense<-2147483648> : vector<32xi32>
    %269 = vector.multi_reduction <maxsi>, %268, %cst_91 [1] : vector<32x64xi32> to vector<32xi32>
    %270 = vector.shape_cast %269 : vector<32xi32> to vector<32x1xi32>
    %c63_i32_92 = arith.constant 63 : i32
    %271 = vector.broadcast %c63_i32_92 : i32 to vector<32x1xi32>
    %272 = arith.andi %270, %271 : vector<32x1xi32>
    %c63_i32_93 = arith.constant 63 : i32
    %273 = vector.broadcast %c63_i32_93 : i32 to vector<32x1xi32>
    %274 = arith.subi %273, %272 : vector<32x1xi32>
    %c-64_i32_94 = arith.constant -64 : i32
    %275 = vector.broadcast %c-64_i32_94 : i32 to vector<32x1xi32>
    %276 = arith.andi %270, %275 : vector<32x1xi32>
    %c0_i32_95 = arith.constant 0 : i32
    %277 = vector.broadcast %c0_i32_95 : i32 to vector<32x1xi32>
    %278 = arith.cmpi slt, %276, %277 : vector<32x1xi32>
    %c2147483647_i32_96 = arith.constant 2147483647 : i32
    %279 = vector.broadcast %c2147483647_i32_96 : i32 to vector<32x1xi32>
    %280 = arith.xori %276, %279 : vector<32x1xi32>
    %281 = arith.select %278, %280, %276 : vector<32x1xi1>, vector<32x1xi32>
    %282 = tpu.bitcast %281 : vector<32x1xi32> -> vector<32x1xf32>
    %283 = vector.broadcast %270 : vector<32x1xi32> to vector<32x64xi32>
    %284 = arith.cmpi eq, %268, %283 : vector<32x64xi32>
    %c-2147483648_i32_97 = arith.constant -2147483648 : i32
    %285 = vector.broadcast %c-2147483648_i32_97 : i32 to vector<32x64xi32>
    %286 = arith.select %284, %285, %268 : vector<32x64xi1>, vector<32x64xi32>
    %cst_98 = arith.constant dense<-2147483648> : vector<32xi32>
    %287 = vector.multi_reduction <maxsi>, %286, %cst_98 [1] : vector<32x64xi32> to vector<32xi32>
    %288 = vector.shape_cast %287 : vector<32xi32> to vector<32x1xi32>
    %c63_i32_99 = arith.constant 63 : i32
    %289 = vector.broadcast %c63_i32_99 : i32 to vector<32x1xi32>
    %290 = arith.andi %288, %289 : vector<32x1xi32>
    %c63_i32_100 = arith.constant 63 : i32
    %291 = vector.broadcast %c63_i32_100 : i32 to vector<32x1xi32>
    %292 = arith.subi %291, %290 : vector<32x1xi32>
    %c-64_i32_101 = arith.constant -64 : i32
    %293 = vector.broadcast %c-64_i32_101 : i32 to vector<32x1xi32>
    %294 = arith.andi %288, %293 : vector<32x1xi32>
    %c0_i32_102 = arith.constant 0 : i32
    %295 = vector.broadcast %c0_i32_102 : i32 to vector<32x1xi32>
    %296 = arith.cmpi slt, %294, %295 : vector<32x1xi32>
    %c2147483647_i32_103 = arith.constant 2147483647 : i32
    %297 = vector.broadcast %c2147483647_i32_103 : i32 to vector<32x1xi32>
    %298 = arith.xori %294, %297 : vector<32x1xi32>
    %299 = arith.select %296, %298, %294 : vector<32x1xi1>, vector<32x1xi32>
    %300 = tpu.bitcast %299 : vector<32x1xi32> -> vector<32x1xf32>
    %301 = vector.broadcast %288 : vector<32x1xi32> to vector<32x64xi32>
    %302 = arith.cmpi eq, %286, %301 : vector<32x64xi32>
    %c-2147483648_i32_104 = arith.constant -2147483648 : i32
    %303 = vector.broadcast %c-2147483648_i32_104 : i32 to vector<32x64xi32>
    %304 = arith.select %302, %303, %286 : vector<32x64xi1>, vector<32x64xi32>
    %cst_105 = arith.constant dense<-2147483648> : vector<32xi32>
    %305 = vector.multi_reduction <maxsi>, %304, %cst_105 [1] : vector<32x64xi32> to vector<32xi32>
    %306 = vector.shape_cast %305 : vector<32xi32> to vector<32x1xi32>
    %c63_i32_106 = arith.constant 63 : i32
    %307 = vector.broadcast %c63_i32_106 : i32 to vector<32x1xi32>
    %308 = arith.andi %306, %307 : vector<32x1xi32>
    %c63_i32_107 = arith.constant 63 : i32
    %309 = vector.broadcast %c63_i32_107 : i32 to vector<32x1xi32>
    %310 = arith.subi %309, %308 : vector<32x1xi32>
    %c-64_i32_108 = arith.constant -64 : i32
    %311 = vector.broadcast %c-64_i32_108 : i32 to vector<32x1xi32>
    %312 = arith.andi %306, %311 : vector<32x1xi32>
    %c0_i32_109 = arith.constant 0 : i32
    %313 = vector.broadcast %c0_i32_109 : i32 to vector<32x1xi32>
    %314 = arith.cmpi slt, %312, %313 : vector<32x1xi32>
    %c2147483647_i32_110 = arith.constant 2147483647 : i32
    %315 = vector.broadcast %c2147483647_i32_110 : i32 to vector<32x1xi32>
    %316 = arith.xori %312, %315 : vector<32x1xi32>
    %317 = arith.select %314, %316, %312 : vector<32x1xi1>, vector<32x1xi32>
    %318 = tpu.bitcast %317 : vector<32x1xi32> -> vector<32x1xf32>
    %319 = vector.broadcast %306 : vector<32x1xi32> to vector<32x64xi32>
    %320 = arith.cmpi eq, %304, %319 : vector<32x64xi32>
    %c-2147483648_i32_111 = arith.constant -2147483648 : i32
    %321 = vector.broadcast %c-2147483648_i32_111 : i32 to vector<32x64xi32>
    %322 = arith.select %320, %321, %304 : vector<32x64xi1>, vector<32x64xi32>
    %cst_112 = arith.constant dense<-2147483648> : vector<32xi32>
    %323 = vector.multi_reduction <maxsi>, %322, %cst_112 [1] : vector<32x64xi32> to vector<32xi32>
    %324 = vector.shape_cast %323 : vector<32xi32> to vector<32x1xi32>
    %c63_i32_113 = arith.constant 63 : i32
    %325 = vector.broadcast %c63_i32_113 : i32 to vector<32x1xi32>
    %326 = arith.andi %324, %325 : vector<32x1xi32>
    %c63_i32_114 = arith.constant 63 : i32
    %327 = vector.broadcast %c63_i32_114 : i32 to vector<32x1xi32>
    %328 = arith.subi %327, %326 : vector<32x1xi32>
    %c-64_i32_115 = arith.constant -64 : i32
    %329 = vector.broadcast %c-64_i32_115 : i32 to vector<32x1xi32>
    %330 = arith.andi %324, %329 : vector<32x1xi32>
    %c0_i32_116 = arith.constant 0 : i32
    %331 = vector.broadcast %c0_i32_116 : i32 to vector<32x1xi32>
    %332 = arith.cmpi slt, %330, %331 : vector<32x1xi32>
    %c2147483647_i32_117 = arith.constant 2147483647 : i32
    %333 = vector.broadcast %c2147483647_i32_117 : i32 to vector<32x1xi32>
    %334 = arith.xori %330, %333 : vector<32x1xi32>
    %335 = arith.select %332, %334, %330 : vector<32x1xi1>, vector<32x1xi32>
    %336 = tpu.bitcast %335 : vector<32x1xi32> -> vector<32x1xf32>
    %337 = vector.broadcast %324 : vector<32x1xi32> to vector<32x64xi32>
    %338 = arith.cmpi eq, %322, %337 : vector<32x64xi32>
    %c-2147483648_i32_118 = arith.constant -2147483648 : i32
    %339 = vector.broadcast %c-2147483648_i32_118 : i32 to vector<32x64xi32>
    %340 = arith.select %338, %339, %322 : vector<32x64xi1>, vector<32x64xi32>
    %cst_119 = arith.constant dense<-2147483648> : vector<32xi32>
    %341 = vector.multi_reduction <maxsi>, %340, %cst_119 [1] : vector<32x64xi32> to vector<32xi32>
    %342 = vector.shape_cast %341 : vector<32xi32> to vector<32x1xi32>
    %c63_i32_120 = arith.constant 63 : i32
    %343 = vector.broadcast %c63_i32_120 : i32 to vector<32x1xi32>
    %344 = arith.andi %342, %343 : vector<32x1xi32>
    %c63_i32_121 = arith.constant 63 : i32
    %345 = vector.broadcast %c63_i32_121 : i32 to vector<32x1xi32>
    %346 = arith.subi %345, %344 : vector<32x1xi32>
    %c-64_i32_122 = arith.constant -64 : i32
    %347 = vector.broadcast %c-64_i32_122 : i32 to vector<32x1xi32>
    %348 = arith.andi %342, %347 : vector<32x1xi32>
    %c0_i32_123 = arith.constant 0 : i32
    %349 = vector.broadcast %c0_i32_123 : i32 to vector<32x1xi32>
    %350 = arith.cmpi slt, %348, %349 : vector<32x1xi32>
    %c2147483647_i32_124 = arith.constant 2147483647 : i32
    %351 = vector.broadcast %c2147483647_i32_124 : i32 to vector<32x1xi32>
    %352 = arith.xori %348, %351 : vector<32x1xi32>
    %353 = arith.select %350, %352, %348 : vector<32x1xi1>, vector<32x1xi32>
    %354 = tpu.bitcast %353 : vector<32x1xi32> -> vector<32x1xf32>
    %355 = tpu.concatenate %228, %246, %264, %282, %300, %318, %336, %354 in 1 : vector<32x1xf32>, vector<32x1xf32>, vector<32x1xf32>, vector<32x1xf32>, vector<32x1xf32>, vector<32x1xf32>, vector<32x1xf32>, vector<32x1xf32> -> vector<32x8xf32>
    %356 = tpu.concatenate %220, %238, %256, %274, %292, %310, %328, %346 in 1 : vector<32x1xi32>, vector<32x1xi32>, vector<32x1xi32>, vector<32x1xi32>, vector<32x1xi32>, vector<32x1xi32>, vector<32x1xi32>, vector<32x1xi32> -> vector<32x8xi32>
    %c3_i32 = arith.constant 3 : i32
    %357 = vector.broadcast %c3_i32 : i32 to vector<32x8xi32>
    %358 = arith.shrsi %356, %357 : vector<32x8xi32>
    %c7_i32 = arith.constant 7 : i32
    %359 = vector.broadcast %c7_i32 : i32 to vector<32x8xi32>
    %360 = arith.andi %356, %359 : vector<32x8xi32>
    %c0_i32_125 = arith.constant 0 : i32
    %361 = vector.broadcast %c0_i32_125 : i32 to vector<32x8xi32>
    %c0_i32_126 = arith.constant 0 : i32
    %362 = vector.broadcast %c0_i32_126 : i32 to vector<32x8xi32>
    %363 = arith.cmpi eq, %358, %362 : vector<32x8xi32>
    %364 = vector.extract_strided_slice %175 {offsets = [0, 0], sizes = [32, 1], strides = [1, 1]} : vector<32x8xi32> to vector<32x1xi32>
    %c0_i32_127 = arith.constant 0 : i32
    %365 = vector.shape_cast %364 : vector<32x1xi32> to vector<32x1xi32>
    %366 = vector.broadcast %365 : vector<32x1xi32> to vector<32x8xi32>
    %367 = vector.broadcast %c0_i32_127 : i32 to vector<32x8xi32>
    %368 = arith.select %363, %366, %367 : vector<32x8xi1>, vector<32x8xi32>
    %369 = arith.addi %361, %368 : vector<32x8xi32>
    %c1_i32 = arith.constant 1 : i32
    %370 = vector.broadcast %c1_i32 : i32 to vector<32x8xi32>
    %371 = arith.cmpi eq, %358, %370 : vector<32x8xi32>
    %372 = vector.extract_strided_slice %175 {offsets = [0, 1], sizes = [32, 1], strides = [1, 1]} : vector<32x8xi32> to vector<32x1xi32>
    %c0_i32_128 = arith.constant 0 : i32
    %373 = vector.shape_cast %372 : vector<32x1xi32> to vector<32x1xi32>
    %374 = vector.broadcast %373 : vector<32x1xi32> to vector<32x8xi32>
    %375 = vector.broadcast %c0_i32_128 : i32 to vector<32x8xi32>
    %376 = arith.select %371, %374, %375 : vector<32x8xi1>, vector<32x8xi32>
    %377 = arith.addi %369, %376 : vector<32x8xi32>
    %c2_i32 = arith.constant 2 : i32
    %378 = vector.broadcast %c2_i32 : i32 to vector<32x8xi32>
    %379 = arith.cmpi eq, %358, %378 : vector<32x8xi32>
    %380 = vector.extract_strided_slice %175 {offsets = [0, 2], sizes = [32, 1], strides = [1, 1]} : vector<32x8xi32> to vector<32x1xi32>
    %c0_i32_129 = arith.constant 0 : i32
    %381 = vector.shape_cast %380 : vector<32x1xi32> to vector<32x1xi32>
    %382 = vector.broadcast %381 : vector<32x1xi32> to vector<32x8xi32>
    %383 = vector.broadcast %c0_i32_129 : i32 to vector<32x8xi32>
    %384 = arith.select %379, %382, %383 : vector<32x8xi1>, vector<32x8xi32>
    %385 = arith.addi %377, %384 : vector<32x8xi32>
    %c3_i32_130 = arith.constant 3 : i32
    %386 = vector.broadcast %c3_i32_130 : i32 to vector<32x8xi32>
    %387 = arith.cmpi eq, %358, %386 : vector<32x8xi32>
    %388 = vector.extract_strided_slice %175 {offsets = [0, 3], sizes = [32, 1], strides = [1, 1]} : vector<32x8xi32> to vector<32x1xi32>
    %c0_i32_131 = arith.constant 0 : i32
    %389 = vector.shape_cast %388 : vector<32x1xi32> to vector<32x1xi32>
    %390 = vector.broadcast %389 : vector<32x1xi32> to vector<32x8xi32>
    %391 = vector.broadcast %c0_i32_131 : i32 to vector<32x8xi32>
    %392 = arith.select %387, %390, %391 : vector<32x8xi1>, vector<32x8xi32>
    %393 = arith.addi %385, %392 : vector<32x8xi32>
    %c4_i32 = arith.constant 4 : i32
    %394 = vector.broadcast %c4_i32 : i32 to vector<32x8xi32>
    %395 = arith.cmpi eq, %358, %394 : vector<32x8xi32>
    %396 = vector.extract_strided_slice %175 {offsets = [0, 4], sizes = [32, 1], strides = [1, 1]} : vector<32x8xi32> to vector<32x1xi32>
    %c0_i32_132 = arith.constant 0 : i32
    %397 = vector.shape_cast %396 : vector<32x1xi32> to vector<32x1xi32>
    %398 = vector.broadcast %397 : vector<32x1xi32> to vector<32x8xi32>
    %399 = vector.broadcast %c0_i32_132 : i32 to vector<32x8xi32>
    %400 = arith.select %395, %398, %399 : vector<32x8xi1>, vector<32x8xi32>
    %401 = arith.addi %393, %400 : vector<32x8xi32>
    %c5_i32 = arith.constant 5 : i32
    %402 = vector.broadcast %c5_i32 : i32 to vector<32x8xi32>
    %403 = arith.cmpi eq, %358, %402 : vector<32x8xi32>
    %404 = vector.extract_strided_slice %175 {offsets = [0, 5], sizes = [32, 1], strides = [1, 1]} : vector<32x8xi32> to vector<32x1xi32>
    %c0_i32_133 = arith.constant 0 : i32
    %405 = vector.shape_cast %404 : vector<32x1xi32> to vector<32x1xi32>
    %406 = vector.broadcast %405 : vector<32x1xi32> to vector<32x8xi32>
    %407 = vector.broadcast %c0_i32_133 : i32 to vector<32x8xi32>
    %408 = arith.select %403, %406, %407 : vector<32x8xi1>, vector<32x8xi32>
    %409 = arith.addi %401, %408 : vector<32x8xi32>
    %c6_i32 = arith.constant 6 : i32
    %410 = vector.broadcast %c6_i32 : i32 to vector<32x8xi32>
    %411 = arith.cmpi eq, %358, %410 : vector<32x8xi32>
    %412 = vector.extract_strided_slice %175 {offsets = [0, 6], sizes = [32, 1], strides = [1, 1]} : vector<32x8xi32> to vector<32x1xi32>
    %c0_i32_134 = arith.constant 0 : i32
    %413 = vector.shape_cast %412 : vector<32x1xi32> to vector<32x1xi32>
    %414 = vector.broadcast %413 : vector<32x1xi32> to vector<32x8xi32>
    %415 = vector.broadcast %c0_i32_134 : i32 to vector<32x8xi32>
    %416 = arith.select %411, %414, %415 : vector<32x8xi1>, vector<32x8xi32>
    %417 = arith.addi %409, %416 : vector<32x8xi32>
    %c7_i32_135 = arith.constant 7 : i32
    %418 = vector.broadcast %c7_i32_135 : i32 to vector<32x8xi32>
    %419 = arith.cmpi eq, %358, %418 : vector<32x8xi32>
    %420 = vector.extract_strided_slice %175 {offsets = [0, 7], sizes = [32, 1], strides = [1, 1]} : vector<32x8xi32> to vector<32x1xi32>
    %c0_i32_136 = arith.constant 0 : i32
    %421 = vector.shape_cast %420 : vector<32x1xi32> to vector<32x1xi32>
    %422 = vector.broadcast %421 : vector<32x1xi32> to vector<32x8xi32>
    %423 = vector.broadcast %c0_i32_136 : i32 to vector<32x8xi32>
    %424 = arith.select %419, %422, %423 : vector<32x8xi1>, vector<32x8xi32>
    %425 = arith.addi %417, %424 : vector<32x8xi32>
    %c0_i32_137 = arith.constant 0 : i32
    %426 = vector.broadcast %c0_i32_137 : i32 to vector<32x8xi32>
    %c0_i32_138 = arith.constant 0 : i32
    %427 = vector.broadcast %c0_i32_138 : i32 to vector<32x8xi32>
    %428 = arith.cmpi eq, %360, %427 : vector<32x8xi32>
    %429 = vector.extract_strided_slice %177 {offsets = [0, 0], sizes = [32, 1], strides = [1, 1]} : vector<32x8xi32> to vector<32x1xi32>
    %c0_i32_139 = arith.constant 0 : i32
    %430 = vector.shape_cast %429 : vector<32x1xi32> to vector<32x1xi32>
    %431 = vector.broadcast %430 : vector<32x1xi32> to vector<32x8xi32>
    %432 = vector.broadcast %c0_i32_139 : i32 to vector<32x8xi32>
    %433 = arith.select %428, %431, %432 : vector<32x8xi1>, vector<32x8xi32>
    %434 = arith.addi %426, %433 : vector<32x8xi32>
    %c1_i32_140 = arith.constant 1 : i32
    %435 = vector.broadcast %c1_i32_140 : i32 to vector<32x8xi32>
    %436 = arith.cmpi eq, %360, %435 : vector<32x8xi32>
    %437 = vector.extract_strided_slice %177 {offsets = [0, 1], sizes = [32, 1], strides = [1, 1]} : vector<32x8xi32> to vector<32x1xi32>
    %c0_i32_141 = arith.constant 0 : i32
    %438 = vector.shape_cast %437 : vector<32x1xi32> to vector<32x1xi32>
    %439 = vector.broadcast %438 : vector<32x1xi32> to vector<32x8xi32>
    %440 = vector.broadcast %c0_i32_141 : i32 to vector<32x8xi32>
    %441 = arith.select %436, %439, %440 : vector<32x8xi1>, vector<32x8xi32>
    %442 = arith.addi %434, %441 : vector<32x8xi32>
    %c2_i32_142 = arith.constant 2 : i32
    %443 = vector.broadcast %c2_i32_142 : i32 to vector<32x8xi32>
    %444 = arith.cmpi eq, %360, %443 : vector<32x8xi32>
    %445 = vector.extract_strided_slice %177 {offsets = [0, 2], sizes = [32, 1], strides = [1, 1]} : vector<32x8xi32> to vector<32x1xi32>
    %c0_i32_143 = arith.constant 0 : i32
    %446 = vector.shape_cast %445 : vector<32x1xi32> to vector<32x1xi32>
    %447 = vector.broadcast %446 : vector<32x1xi32> to vector<32x8xi32>
    %448 = vector.broadcast %c0_i32_143 : i32 to vector<32x8xi32>
    %449 = arith.select %444, %447, %448 : vector<32x8xi1>, vector<32x8xi32>
    %450 = arith.addi %442, %449 : vector<32x8xi32>
    %c3_i32_144 = arith.constant 3 : i32
    %451 = vector.broadcast %c3_i32_144 : i32 to vector<32x8xi32>
    %452 = arith.cmpi eq, %360, %451 : vector<32x8xi32>
    %453 = vector.extract_strided_slice %177 {offsets = [0, 3], sizes = [32, 1], strides = [1, 1]} : vector<32x8xi32> to vector<32x1xi32>
    %c0_i32_145 = arith.constant 0 : i32
    %454 = vector.shape_cast %453 : vector<32x1xi32> to vector<32x1xi32>
    %455 = vector.broadcast %454 : vector<32x1xi32> to vector<32x8xi32>
    %456 = vector.broadcast %c0_i32_145 : i32 to vector<32x8xi32>
    %457 = arith.select %452, %455, %456 : vector<32x8xi1>, vector<32x8xi32>
    %458 = arith.addi %450, %457 : vector<32x8xi32>
    %c4_i32_146 = arith.constant 4 : i32
    %459 = vector.broadcast %c4_i32_146 : i32 to vector<32x8xi32>
    %460 = arith.cmpi eq, %360, %459 : vector<32x8xi32>
    %461 = vector.extract_strided_slice %177 {offsets = [0, 4], sizes = [32, 1], strides = [1, 1]} : vector<32x8xi32> to vector<32x1xi32>
    %c0_i32_147 = arith.constant 0 : i32
    %462 = vector.shape_cast %461 : vector<32x1xi32> to vector<32x1xi32>
    %463 = vector.broadcast %462 : vector<32x1xi32> to vector<32x8xi32>
    %464 = vector.broadcast %c0_i32_147 : i32 to vector<32x8xi32>
    %465 = arith.select %460, %463, %464 : vector<32x8xi1>, vector<32x8xi32>
    %466 = arith.addi %458, %465 : vector<32x8xi32>
    %c5_i32_148 = arith.constant 5 : i32
    %467 = vector.broadcast %c5_i32_148 : i32 to vector<32x8xi32>
    %468 = arith.cmpi eq, %360, %467 : vector<32x8xi32>
    %469 = vector.extract_strided_slice %177 {offsets = [0, 5], sizes = [32, 1], strides = [1, 1]} : vector<32x8xi32> to vector<32x1xi32>
    %c0_i32_149 = arith.constant 0 : i32
    %470 = vector.shape_cast %469 : vector<32x1xi32> to vector<32x1xi32>
    %471 = vector.broadcast %470 : vector<32x1xi32> to vector<32x8xi32>
    %472 = vector.broadcast %c0_i32_149 : i32 to vector<32x8xi32>
    %473 = arith.select %468, %471, %472 : vector<32x8xi1>, vector<32x8xi32>
    %474 = arith.addi %466, %473 : vector<32x8xi32>
    %c6_i32_150 = arith.constant 6 : i32
    %475 = vector.broadcast %c6_i32_150 : i32 to vector<32x8xi32>
    %476 = arith.cmpi eq, %360, %475 : vector<32x8xi32>
    %477 = vector.extract_strided_slice %177 {offsets = [0, 6], sizes = [32, 1], strides = [1, 1]} : vector<32x8xi32> to vector<32x1xi32>
    %c0_i32_151 = arith.constant 0 : i32
    %478 = vector.shape_cast %477 : vector<32x1xi32> to vector<32x1xi32>
    %479 = vector.broadcast %478 : vector<32x1xi32> to vector<32x8xi32>
    %480 = vector.broadcast %c0_i32_151 : i32 to vector<32x8xi32>
    %481 = arith.select %476, %479, %480 : vector<32x8xi1>, vector<32x8xi32>
    %482 = arith.addi %474, %481 : vector<32x8xi32>
    %c7_i32_152 = arith.constant 7 : i32
    %483 = vector.broadcast %c7_i32_152 : i32 to vector<32x8xi32>
    %484 = arith.cmpi eq, %360, %483 : vector<32x8xi32>
    %485 = vector.extract_strided_slice %177 {offsets = [0, 7], sizes = [32, 1], strides = [1, 1]} : vector<32x8xi32> to vector<32x1xi32>
    %c0_i32_153 = arith.constant 0 : i32
    %486 = vector.shape_cast %485 : vector<32x1xi32> to vector<32x1xi32>
    %487 = vector.broadcast %486 : vector<32x1xi32> to vector<32x8xi32>
    %488 = vector.broadcast %c0_i32_153 : i32 to vector<32x8xi32>
    %489 = arith.select %484, %487, %488 : vector<32x8xi1>, vector<32x8xi32>
    %490 = arith.addi %482, %489 : vector<32x8xi32>
    %c128_i32 = arith.constant 128 : i32
    %491 = vector.broadcast %c128_i32 : i32 to vector<32x8xi32>
    %492 = arith.muli %425, %491 : vector<32x8xi32>
    %493 = arith.addi %492, %490 : vector<32x8xi32>
    %cst_154 = arith.constant dense<0xFF800000> : vector<32xf32>
    %494 = vector.multi_reduction <maximumf>, %355, %cst_154 [1] : vector<32x8xf32> to vector<32xf32>
    %495 = vector.shape_cast %494 : vector<32xf32> to vector<32x1xf32>
    %496 = vector.broadcast %495 : vector<32x1xf32> to vector<32x8xf32>
    %497 = arith.subf %355, %496 : vector<32x8xf32>
    %498 = math.exp %497 : vector<32x8xf32>
    %cst_155 = arith.constant dense<0.000000e+00> : vector<32xf32>
    %499 = vector.multi_reduction <add>, %498, %cst_155 [1] : vector<32x8xf32> to vector<32xf32>
    %500 = vector.shape_cast %499 : vector<32xf32> to vector<32x1xf32>
    %501 = vector.broadcast %500 : vector<32x1xf32> to vector<32x8xf32>
    %502 = arith.divf %498, %501 : vector<32x8xf32>
    %503 = vector.extract_strided_slice %502 {offsets = [0, 0], sizes = [16, 8], strides = [1, 1]} : vector<32x8xf32> to vector<16x8xf32>
    %504 = vector.extract_strided_slice %502 {offsets = [16, 0], sizes = [16, 8], strides = [1, 1]} : vector<32x8xf32> to vector<16x8xf32>
    %505 = tpu.concatenate %503, %504 in 1 : vector<16x8xf32>, vector<16x8xf32> -> vector<16x16xf32>
    %c0_156 = arith.constant 0 : index
    %c0_157 = arith.constant 0 : index
    %506 = vector.load %arg7[%c0_156, %c0_157] : memref<16x16xf32, #tpu.memory_space<vmem>>, vector<16x16xf32>
    tpu.vector_store %arg7[%c0_156, %c0_157], %505 {strides = array<i32>} : memref<16x16xf32, #tpu.memory_space<vmem>>, vector<16x16xf32>,
    %507 = vector.extract_strided_slice %493 {offsets = [0, 0], sizes = [16, 8], strides = [1, 1]} : vector<32x8xi32> to vector<16x8xi32>
    %508 = vector.extract_strided_slice %493 {offsets = [16, 0], sizes = [16, 8], strides = [1, 1]} : vector<32x8xi32> to vector<16x8xi32>
    %509 = tpu.concatenate %507, %508 in 1 : vector<16x8xi32>, vector<16x8xi32> -> vector<16x16xi32>
    %c0_158 = arith.constant 0 : index
    %c0_159 = arith.constant 0 : index
    %510 = vector.load %arg8[%c0_158, %c0_159] : memref<16x16xi32, #tpu.memory_space<vmem>>, vector<16x16xi32>
    tpu.vector_store %arg8[%c0_158, %c0_159], %509 {strides = array<i32>} : memref<16x16xi32, #tpu.memory_space<vmem>>, vector<16x16xi32>,
    return
  }
  func.func @transform_0(%arg0: i32) -> (i32, i32) {
    %c0_i32 = arith.constant 0 : i32
    %c0_i32_0 = arith.constant 0 : i32
    return %arg0, %c0_i32 : i32, i32
  }
  func.func @transform_1(%arg0: i32) -> (i32, i32) {
    %c0_i32 = arith.constant 0 : i32
    %c0_i32_0 = arith.constant 0 : i32
    %c0_i32_1 = arith.constant 0 : i32
    return %c0_i32, %c0_i32_0 : i32, i32
  }
  func.func @transform_2(%arg0: i32) -> (i32, i32) {
    %c0_i32 = arith.constant 0 : i32
    %c0_i32_0 = arith.constant 0 : i32
    %c0_i32_1 = arith.constant 0 : i32
    return %c0_i32, %c0_i32_0 : i32, i32
  }
  func.func @transform_3(%arg0: i32) -> (i32, i32) {
    %c0_i32 = arith.constant 0 : i32
    %c0_i32_0 = arith.constant 0 : i32
    %c0_i32_1 = arith.constant 0 : i32
    return %c0_i32, %c0_i32_0 : i32, i32
  }
  func.func @transform_4(%arg0: i32) -> (i32, i32) {
    %c0_i32 = arith.constant 0 : i32
    %c0_i32_0 = arith.constant 0 : i32
    %c0_i32_1 = arith.constant 0 : i32
    return %c0_i32, %c0_i32_0 : i32, i32
  }
  func.func @transform_5(%arg0: i32) -> (i32, i32) {
    %c0_i32 = arith.constant 0 : i32
    %c0_i32_0 = arith.constant 0 : i32
    %c0_i32_1 = arith.constant 0 : i32
    return %c0_i32, %c0_i32_0 : i32, i32
  }
  func.func @transform_6(%arg0: i32) -> (i32, i32) {
    %c0_i32 = arith.constant 0 : i32
    %c0_i32_0 = arith.constant 0 : i32
    return %arg0, %c0_i32 : i32, i32
  }
  func.func @transform_7(%arg0: i32) -> (i32, i32) {
    %c0_i32 = arith.constant 0 : i32
    %c0_i32_0 = arith.constant 0 : i32
    return %arg0, %c0_i32 : i32, i32
  }
}

</mosaic_0001>

<bundles_post_ra>
// kernel: tpu_custom_call.1
= control target key start
LH: loop header
LB: loop body
LE: loop exit
PB: predicated region body
PF: predicated region fallthrough
CT: control target
= control target key end

     0   :  { %13 = vsyncpa [#allocation3], 0  ;;  %s6214_s0 = inlined_call_operand.hbm [shape: f32[16,32], index: 0, kind: input, shape index: {}]   ;;  %s6215_s1 = inlined_call_operand.vmem [shape: f32[32,128], index: 1, kind: input, shape index: {}]   ;;  %s6216_s2 = inlined_call_operand.vmem [shape: f32[1,128], index: 2, kind: input, shape index: {}]   ;;  %s6217_s3 = inlined_call_operand.vmem [shape: f32[128,32], index: 3, kind: input, shape index: {}]   ;;  %s6218_s4 = inlined_call_operand.vmem [shape: f32[1,32], index: 4, kind: input, shape index: {}]   ;;  %s6219_s5 = inlined_call_operand.vmem [shape: f32[32,512], index: 5, kind: input, shape index: {}]   ;;  %s6220_s6 = inlined_call_operand.hbm [shape: f32[16,16], index: 6, kind: output, shape index: {0}]   ;;  %s6221_s7 = inlined_call_operand.hbm [shape: s32[16,16], index: 7, kind: output, shape index: {1}]  }
   0x1   :  { %14 = vsyncpa [#allocation4], 0 }
   0x2   :  { %15 = vsyncpa [#allocation7], 0  ;;  %s20_s26 = sshll.u32 %s6214_s0, 4  ;;  %s3766_s27 = smov [#allocation2]   ;;  %s21_s26 = int_to_ptr.hbm [resolvable:$true] %s20_s26 }
   0x3   :  { %s22_s28 = sshll.u32 %s3766_s27, 4  ;;  %s3767_s29 = smov 128   ;;  %s23_s28 = int_to_ptr.vmem [resolvable:$true] %s22_s28 }
   0x4   :  { %s3768_s30 = smov 8  }
   0x5   :  { %28 = dma.hbm_to_vmem [thread:$0]  %s21_s26, 256, %s23_s28, [#allocation3], %s3767_s29, %s3767_s29, %s3768_s30  }
   0x6   :  { %3760 = dma.done.wait [#allocation3], 256  }
   0x7   :  { %3761 = vsyncadd [#allocation3], 4294967040  ;;  %v48_v0 = vld [vmem:[%s6215_s1 + $0x18] sm:$0xff]  ;;  %v47_v1 = vld [vmem:[%s6215_s1 + $0x10] sm:$0xff]  ;;  %vm53_vm0 = vcmask 261120   ;;  %v242_v50 = vlaneseq  ;;  %s3779_s0 = smov 16  }
   0x8   :  { %72 = vmatpush.msra.mxu0 %v48_v0  ;;  %v46_v2 = vld [vmem:[%s6215_s1 + $0x8] sm:$0xff]  ;;  %v100_v3 = vld [vmem:[%s6217_s3 + $0x78] sm:$0xff]  ;;  %v99_v4 = vld [vmem:[%s6217_s3 + $0x70] sm:$0xff]  ;;  %s3780_s12 = smov 48   ;;  %s3781_s13 = smov 32  }
   0x9   :  { %105 = vmatpush.msra.mxu1 %v100_v3  ;;  %v45_v5 = vld [vmem:[%s6215_s1] sm:$0xff]  ;;  %v98_v6 = vld [vmem:[%s6217_s3 + $0x68] sm:$0xff]  ;;  %v96_v9 = vld [vmem:[%s6217_s3 + $0x58] sm:$0xff]  ;;  %v3955_v51 = vand.u32 127, %v242_v50  ;;  %s3782_s14 = smov 56   ;;  %s3783_s15 = smov [#allocation6]  }
   0xa   :  { %73 = vmatpush.msra.mxu0 %v47_v1  ;;  %v43_v7 = vld [vmem:[#allocation2] sm:$0xff]  ;;  %v95_v10 = vld [vmem:[%s6217_s3 + $0x50] sm:$0xff]  ;;  %v94_v11 = vld [vmem:[%s6217_s3 + $0x48] sm:$0xff]  ;;  %s3545_s16 = sshll.u32 %s3783_s15, 4  ;;  %s3547_s19 = sshll.u32 %s6221_s7, 4  ;;  %s3546_s16 = int_to_ptr.vmem [resolvable:$true] %s3545_s16  ;;  %s3548_s19 = int_to_ptr.hbm [resolvable:$true] %s3547_s19 }
   0xb   :  { %106 = vmatpush.msra.mxu1 %v99_v4  ;;  %v97_v8 = vld [vmem:[%s6217_s3 + $0x60] sm:$0xff]  ;;  %v44_v12 = vld [vmem:[#allocation2 + $0x8] sm:$0xff]  ;;  %v92_v14 = vld [vmem:[%s6217_s3 + $0x38] sm:$0xff]  ;;  %v3958_v57 = vsub.s32 127, %v3955_v51  ;;  %s3534_s23 = sshll.u32 %s6220_s6, 4  ;;  %s3535_s23 = int_to_ptr.hbm [resolvable:$true] %s3534_s23 }
   0xc   :  { %74 = vmatpush.msra.mxu0 %v46_v2  ;;  %v93_v13 = vld [vmem:[%s6217_s3 + $0x40] sm:$0xff]  ;;  %v91_v15 = vld [vmem:[%s6217_s3 + $0x30] sm:$0xff]  ;;  %v90_v16 = vld [vmem:[%s6217_s3 + $0x28] sm:$0xff] }
   0xd   :  { %107 = vmatpush.msra.mxu1 %v98_v6  ;;  %v89_v17 = vld [vmem:[%s6217_s3 + $0x20] sm:$0xff]  ;;  %v88_v18 = vld [vmem:[%s6217_s3 + $0x18] sm:$0xff]  ;;  %v87_v19 = vld [vmem:[%s6217_s3 + $0x10] sm:$0xff] }
   0xe   :  { %75 = vmatpush.msra.mxu0 %v45_v5  ;;  %v86_v20 = vld [vmem:[%s6217_s3 + $0x8] sm:$0xff]  ;;  %v85_v21 = vld [vmem:[%s6217_s3] sm:$0xff]  ;;  %v142_v24 = vld [vmem:[%s6219_s5 + $0x70] sm:$0xff] }
   0xf   :  { %3565 = vmatmul.msk.f32.vlgmr.msra.gmra.mxu0 %vm53_vm0, %v43_v7  ;;  %108 = vmatpush.msra.mxu1 %v97_v8  ;;  %v140_v22 = vld [vmem:[%s6219_s5 + $0x60] sm:$0xff]  ;;  %v141_v23 = vld [vmem:[%s6219_s5 + $0x68] sm:$0xff]  ;;  %v138_v27 = vld [vmem:[%s6219_s5 + $0x50] sm:$0xff] }
  0x10   :  { %162 = vmatpush.msra.mxu2 %v140_v22  ;;  %185 = vmatpush.msra.mxu3 %v141_v23  ;;  %v136_v25 = vld [vmem:[%s6219_s5 + $0x40] sm:$0xff]  ;;  %v137_v26 = vld [vmem:[%s6219_s5 + $0x48] sm:$0xff]  ;;  %v134_v37 = vld [vmem:[%s6219_s5 + $0x30] sm:$0xff] }
  0x11   :  { %109 = vmatpush.msra.mxu1 %v96_v9  ;;  %208 = vmatpush.msrb.mxu0 %v142_v24  ;;  %v3670_v28 = vld [vmem:[%s6216_s2] ss:$0 sm:$0xff]  ;;  %v133_v36 = vld [vmem:[%s6219_s5 + $0x28] sm:$0xff]  ;;  %v130_v40 = vld [vmem:[%s6219_s5 + $0x10] sm:$0xff]  ;;  %s3784_s2 = smov [#allocation5]  }
  0x12   :  { %163 = vmatpush.msra.mxu2 %v136_v25  ;;  %186 = vmatpush.msra.mxu3 %v137_v26  ;;  %v132_v35 = vld [vmem:[%s6219_s5 + $0x20] sm:$0xff]  ;;  %v129_v39 = vld [vmem:[%s6219_s5 + $0x8] sm:$0xff]  ;;  %v143_v41 = vld [vmem:[%s6219_s5 + $0x78] sm:$0xff]  ;;  %s3532_s20 = sshll.u32 %s3784_s2, 4  ;;  %s3533_s20 = int_to_ptr.vmem [resolvable:$true] %s3532_s20 }
  0x13   :  { %110 = vmatpush.msra.mxu1 %v95_v10  ;;  %209 = vmatpush.msrb.mxu0 %v138_v27  ;;  %v128_v38 = vld [vmem:[%s6219_s5] sm:$0xff]  ;;  %v139_v42 = vld [vmem:[%s6219_s5 + $0x58] sm:$0xff] }
  0x14   :  { %164 = vmatpush.msra.mxu2 %v132_v35  ;;  %187 = vmatpush.msra.mxu3 %v133_v36  ;;  %v135_v43 = vld [vmem:[%s6219_s5 + $0x38] sm:$0xff]  ;;  %v3671_v45 = vld [vmem:[%s6218_s4] ss:$0 sm:$0xff]  ;;  %s3777_s4 = smov 24  }
  0x15   :  { %111 = vmatpush.msra.mxu1 %v94_v11  ;;  %210 = vmatpush.msrb.mxu0 %v134_v37  ;;  %v131_v44 = vld [vmem:[%s6219_s5 + $0x18] sm:$0xff]  ;;  %s3778_s5 = smov 40  }
  0x16   :  { %165 = vmatpush.msra.mxu2 %v128_v38  ;;  %188 = vmatpush.msra.mxu3 %v129_v39 }
  0x17   :  { %3566 = vmatmul.msk.f32.gmra.mxu0 %vm53_vm0, %v44_v12  ;;  %112 = vmatpush.msra.mxu1 %v93_v13 }
  0x18   :  { %211 = vmatpush.msrb.mxu0 %v130_v40  ;;  %231 = vmatpush.msrb.mxu2 %v143_v41 }
  0x19   :  { %113 = vmatpush.msra.mxu1 %v92_v14 }
  0x1a   :  { %232 = vmatpush.msrb.mxu2 %v139_v42 }
  0x1b   :  { %114 = vmatpush.msra.mxu1 %v91_v15 }
  0x1c   :  { %233 = vmatpush.msrb.mxu2 %v135_v43 }
  0x1d   :  { %115 = vmatpush.msra.mxu1 %v90_v16 }
  0x1e   :  { %234 = vmatpush.msrb.mxu2 %v131_v44 }
  0x1f   :  { %116 = vmatpush.msra.mxu1 %v89_v17 }
  0x21   :  { %117 = vmatpush.msra.mxu1 %v88_v18 }
  0x23   :  { %118 = vmatpush.msra.mxu1 %v87_v19 }
  0x25   :  { %119 = vmatpush.msra.mxu1 %v86_v20 }
  0x27   :  { %120 = vmatpush.msra.mxu1 %v85_v21 }
  0x8c   :  { %v77_v29 = vpop.f32.mrf.mxu0 }
  0x8d   :  { %v78_v30 = vadd.f32 %v3670_v28, %v77_v29 }
  0x8f   :  { %v83_v31 = vmax.f32 %v78_v30, 0.0 }
  0x91   :  { %121 = vmatmul.f32.vlgmr.msra.gmra.mxu1 %v83_v31 }
  0x94   :  { %v80_v32 = vpop.f32.mrf.mxu0 }
  0x95   :  { %v81_v33 = vadd.f32 %v3670_v28, %v80_v32 }
  0x97   :  { %v84_v34 = vmax.f32 %v81_v33, 0.0 }
  0x99   :  { %124 = vmatmul.f32.gmra.mxu1 %v84_v34 }
 0x10e   :  { %v122_v46 = vpop.f32.mrf.mxu1 }
 0x10f   :  { %v123_v47 = vadd.f32 %v3671_v45, %v122_v46 }
 0x111   :  { %3567 = vmatmul.msk.f32.vlgmr.msra.gmra.mxu2 %vm53_vm0, %v123_v47  ;;  %3569 = vmatmul.msk.f32.vlgmr.msra.gmra.mxu3 %vm53_vm0, %v123_v47 }
 0x112   :  { %3571 = vmatmul.msk.f32.vlgmr.msrb.gmra.mxu0 %vm53_vm0, %v123_v47 }
 0x116   :  { %v125_v48 = vpop.f32.mrf.mxu1 }
 0x117   :  { %v126_v49 = vadd.f32 %v3671_v45, %v125_v48 }
 0x119   :  { %3568 = vmatmul.msk.f32.gmra.mxu2 %vm53_vm0, %v126_v49  ;;  %3570 = vmatmul.msk.f32.gmra.mxu3 %vm53_vm0, %v126_v49 }
 0x11a   :  { %3572 = vmatmul.msk.f32.gmra.mxu0 %vm53_vm0, %v126_v49 }
 0x121   :  { %3573 = vmatmul.msk.f32.vlgmr.msrb.gmra.mxu2 %vm53_vm0, %v123_v47 }
 0x129   :  { %3574 = vmatmul.msk.f32.gmra.mxu2 %vm53_vm0, %v126_v49 }
 0x18f   :  { %v213_v20 = vpop.f32.mrf.mxu0 }
 0x190   :  { %v264_v23 = vxor.u32 2147483647, %v213_v20  ;;  %vm256_vm6 = vcmp.lt.s32.totalorder %v213_v20, 0 }
 0x192   :  { %v272_v28 = vsel %vm256_vm6, %v264_v23, %v213_v20 }
 0x193   :  { %v280_v31 = vand.u32 4294967168, %v272_v28 }
 0x194   :  { %v167_v52 = vpop.f32.mrf.mxu2  ;;  %v190_v53 = vpop.f32.mrf.mxu3 }
 0x195   :  { %vm252_vm1 = vcmp.lt.s32.totalorder %v167_v52, 0  ;;  %v260_v54 = vxor.u32 2147483647, %v167_v52  ;;  %vm254_vm2 = vcmp.lt.s32.totalorder %v190_v53, 0  ;;  %v262_v55 = vxor.u32 2147483647, %v190_v53 }
 0x196   :  { %v3988_v34 = vor.u32 %v3958_v57, %v280_v31 }
 0x197   :  { %v268_v56 = vsel %vm252_vm1, %v260_v54, %v167_v52  ;;  %v270_v59 = vsel %vm254_vm2, %v262_v55, %v190_v53  ;;  %v216_v38 = vpop.f32.mrf.mxu0 }
 0x198   :  { %v276_v58 = vand.u32 4294967168, %v268_v56  ;;  %v278_v60 = vand.u32 4294967168, %v270_v59  ;;  %v350_v36 = vshra.s32 %v3988_v34, 16  ;;  %v265_v39 = vxor.u32 2147483647, %v216_v38 }
 0x199   :  { %vm257_vm8 = vcmp.lt.s32.totalorder %v216_v38, 0 }
 0x19a   :  { %v3961_v61 = vor.u32 %v3958_v57, %v276_v58  ;;  %v3964_v62 = vor.u32 %v3958_v57, %v278_v60  ;;  %v352_v37 = vcvt.s32.f32 %v350_v36  ;;  %v273_v40 = vsel %vm257_vm8, %v265_v39, %v216_v38 }
 0x19b   :  { %v281_v42 = vand.u32 4294967168, %v273_v40 }
 0x19c   :  { %v170_v63 = vpop.f32.mrf.mxu2  ;;  %v193_v0 = vpop.f32.mrf.mxu3  ;;  %v294_v1 = vshra.s32 %v3961_v61, 16  ;;  %v322_v4 = vshra.s32 %v3964_v62, 16  ;;  %v321_v41 = vand.u32 65535, %v3964_v62  ;;  %v293_v60 = vand.u32 65535, %v3961_v61 }
 0x19d   :  { %vm253_vm3 = vcmp.lt.s32.totalorder %v170_v63, 0  ;;  %v261_v2 = vxor.u32 2147483647, %v170_v63  ;;  %vm255_vm4 = vcmp.lt.s32.totalorder %v193_v0, 0  ;;  %v263_v3 = vxor.u32 2147483647, %v193_v0 }
 0x19e   :  { %v3968_v5 = vcvt.s32.f32 %v294_v1  ;;  %v324_v10 = vcvt.s32.f32 %v322_v4  ;;  %v323_v45 = vcvt.s32.f32 %v321_v41  ;;  %v3995_v46 = vor.u32 %v3958_v57, %v281_v42 }
 0x19f   :  { %v269_v6 = vsel %vm253_vm3, %v261_v2, %v170_v63  ;;  %v271_v7 = vsel %vm255_vm4, %v263_v3, %v193_v0  ;;  %v295_v1 = vcvt.s32.f32 %v293_v60 }
 0x1a0   :  { %v277_v8 = vand.u32 4294967168, %v269_v6  ;;  %v279_v9 = vand.u32 4294967168, %v271_v7  ;;  %297 = vmax.xlane.f32.xlu1 %v3968_v5  ;;  %325 = vmax.xlane.f32.xlu0 %v324_v10  ;;  %v364_v50 = vshra.s32 %v3995_v46, 16 }
 0x1a2   :  { %v3972_v11 = vor.u32 %v3958_v57, %v277_v8  ;;  %v3975_v12 = vor.u32 %v3958_v57, %v279_v9  ;;  %v4000_v58 = vcvt.s32.f32 %v364_v50  ;;  %v349_v9 = vand.u32 65535, %v3988_v34 }
 0x1a4   :  { %v236_v13 = vpop.f32.mrf.mxu2  ;;  %v336_v14 = vshra.s32 %v3975_v12, 16  ;;  %v308_v15 = vshra.s32 %v3972_v11, 16  ;;  %v307_v48 = vand.u32 65535, %v3972_v11  ;;  %v335_v49 = vand.u32 65535, %v3975_v12 }
 0x1a5   :  { %vm258_vm5 = vcmp.lt.s32.totalorder %v236_v13, 0  ;;  %v266_v16 = vxor.u32 2147483647, %v236_v13 }
 0x1a6   :  { %v338_v17 = vcvt.s32.f32 %v336_v14  ;;  %v310_v18 = vcvt.s32.f32 %v308_v15  ;;  %v309_v53 = vcvt.s32.f32 %v307_v48  ;;  %v337_v55 = vcvt.s32.f32 %v335_v49 }
 0x1a7   :  { %v274_v19 = vsel %vm258_vm5, %v266_v16, %v236_v13 }
 0x1a8   :  { %v282_v21 = vand.u32 4294967168, %v274_v19  ;;  %311 = vmax.xlane.f32.xlu1 %v310_v18  ;;  %339 = vmax.xlane.f32.xlu0 %v338_v17 }
 0x1aa   :  { %v3980_v22 = vor.u32 %v3958_v57, %v282_v21 }
 0x1ac   :  { %v239_v24 = vpop.f32.mrf.mxu2  ;;  %v378_v25 = vshra.s32 %v3980_v22, 16  ;;  %v377_v59 = vand.u32 65535, %v3980_v22 }
 0x1ad   :  { %vm259_vm7 = vcmp.lt.s32.totalorder %v239_v24, 0  ;;  %v267_v26 = vxor.u32 2147483647, %v239_v24 }
 0x1ae   :  { %v380_v27 = vcvt.s32.f32 %v378_v25  ;;  %v379_v0 = vcvt.s32.f32 %v377_v59 }
 0x1af   :  { %v275_v29 = vsel %vm259_vm7, %v267_v26, %v239_v24 }
 0x1b0   :  { %v283_v30 = vand.u32 4294967168, %v275_v29  ;;  %381 = vmax.xlane.f32.xlu2 %v380_v27 }
 0x1b2   :  { %v3984_v32 = vor.u32 %v3958_v57, %v283_v30 }
 0x1b4   :  { %v392_v33 = vshra.s32 %v3984_v32, 16  ;;  %v391_v4 = vand.u32 65535, %v3984_v32 }
 0x1b6   :  { %v394_v35 = vcvt.s32.f32 %v392_v33  ;;  %v393_v7 = vcvt.s32.f32 %v391_v4 }
 0x1b8   :  { %395 = vmax.xlane.f32.xlu2 %v394_v35 }
 0x1c0   :  { %353 = vmax.xlane.f32.xlu2 %v352_v37 }
 0x213   :  { %v3992_v43 = vpop.xlane.xlu1 %297  ;;  %v326_v44 = vpop.xlane.xlu0 %325 }
 0x214   :  { %vm327_vm9 = vcmp.eq.f32.partialorder %v324_v10, %v326_v44  ;;  %vm299_vm12 = vcmp.eq.f32.partialorder %v3968_v5, %v3992_v43  ;;  %v351_v5 = vcvt.s32.f32 %v349_v9  ;;  %v332_v14 = vcvt.f32.s32 %v326_v44 }
 0x215   :  { %v328_v47 = vsel %vm327_vm9, %v323_v45, -inf  ;;  %v300_v3 = vsel %vm299_vm12, %v295_v1, -inf  ;;  %v304_v36 = vcvt.f32.s32 %v3992_v43 }
 0x216   :  { %329 = vmax.xlane.f32.xlu0 %v328_v47  ;;  %v333_v16 = vshll.u32 %v332_v14, 16 }
 0x217   :  { %v305_v45 = vshll.u32 %v304_v36, 16 }
 0x21b   :  { %v312_v52 = vpop.xlane.xlu1 %311  ;;  %v340_v54 = vpop.xlane.xlu0 %339 }
 0x21c   :  { %vm313_vm10 = vcmp.eq.f32.partialorder %v310_v18, %v312_v52  ;;  %vm341_vm11 = vcmp.eq.f32.partialorder %v338_v17, %v340_v54  ;;  %v318_v18 = vcvt.f32.s32 %v312_v52  ;;  %v346_v20 = vcvt.f32.s32 %v340_v54 }
 0x21d   :  { %v314_v56 = vsel %vm313_vm10, %v309_v53, -inf  ;;  %v342_v57 = vsel %vm341_vm11, %v337_v55, -inf }
 0x21e   :  { %315 = vmax.xlane.f32.xlu2 %v314_v56  ;;  %367 = vmax.xlane.f32.xlu0 %v4000_v58  ;;  %v319_v24 = vshll.u32 %v318_v18, 16  ;;  %v347_v29 = vshll.u32 %v346_v20, 16 }
 0x21f   :  { %343 = vmax.xlane.f32.xlu1 %v342_v57 }
 0x223   :  { %v382_v63 = vpop.xlane.xlu2 %381 }
 0x224   :  { %vm383_vm13 = vcmp.eq.f32.partialorder %v380_v27, %v382_v63 }
 0x225   :  { %v384_v2 = vsel %vm383_vm13, %v379_v0, -inf }
 0x226   :  { %385 = vmax.xlane.f32.xlu0 %v384_v2 }
 0x227   :  { %301 = vmax.xlane.f32.xlu1 %v300_v3 }
 0x22b   :  { %v4008_v6 = vpop.xlane.xlu2 %395 }
 0x22c   :  { %vm397_vm14 = vcmp.eq.f32.partialorder %v394_v35, %v4008_v6  ;;  %v402_v54 = vcvt.f32.s32 %v4008_v6 }
 0x22d   :  { %v398_v8 = vsel %vm397_vm14, %v393_v7, -inf }
 0x22e   :  { %v403_v57 = vshll.u32 %v402_v54, 16 }
 0x22f   :  { %399 = vmax.xlane.f32.xlu1 %v398_v8 }
 0x233   :  { %v4012_v10 = vpop.xlane.xlu2 %353 }
 0x234   :  { %vm355_vm15 = vcmp.eq.f32.partialorder %v352_v37, %v4012_v10  ;;  %v388_v37 = vcvt.f32.s32 %v382_v63  ;;  %v360_v3 = vcvt.f32.s32 %v4012_v10 }
 0x235   :  { %v356_v13 = vsel %vm355_vm15, %v351_v5, -inf }
 0x236   :  { %v389_v47 = vshll.u32 %v388_v37, 16  ;;  %v361_v6 = vshll.u32 %v360_v3, 16 }
 0x237   :  { %357 = vmax.xlane.f32.xlu1 %v356_v13 }
 0x289   :  { %v330_v15 = vpop.xlane.xlu0 %329 }
 0x28a   :  { %v331_v17 = vcvt.f32.s32 %v330_v15 }
 0x28c   :  { %v4015_v19 = vadd.s32 %v333_v16, %v331_v17 }
 0x28e   :  { %vm463_vm1 = vcmp.eq.s32.totalorder %v3964_v62, %v4015_v19 }
 0x28f   :  { %v4020_v23 = vsel %vm463_vm1, 2147483648, %v3964_v62  ;;  %v363_v62 = vand.u32 65535, %v3995_v46 }
 0x290   :  { %v506_v28 = vshra.s32 %v4020_v23, 16 }
 0x291   :  { %v316_v21 = vpop.xlane.xlu2 %315  ;;  %v4022_v26 = vpop.xlane.xlu0 %367  ;;  %v365_v44 = vcvt.s32.f32 %v363_v62 }
 0x292   :  { %v317_v25 = vcvt.f32.s32 %v316_v21  ;;  %v344_v27 = vpop.xlane.xlu1 %343  ;;  %v4027_v33 = vcvt.s32.f32 %v506_v28  ;;  %vm369_vm4 = vcmp.eq.f32.partialorder %v4000_v58, %v4022_v26  ;;  %v374_v18 = vcvt.f32.s32 %v4022_v26 }
 0x293   :  { %v345_v30 = vcvt.f32.s32 %v344_v27  ;;  %v370_v53 = vsel %vm369_vm4, %v365_v44, -inf }
 0x294   :  { %v4025_v31 = vadd.s32 %v319_v24, %v317_v25  ;;  %509 = vmax.xlane.f32.xlu2 %v4027_v33  ;;  %v375_v25 = vshll.u32 %v374_v18, 16 }
 0x295   :  { %v4029_v35 = vadd.s32 %v347_v29, %v345_v30 }
 0x296   :  { %vm462_vm2 = vcmp.eq.s32.totalorder %v3972_v11, %v4025_v31  ;;  %v422_v3 = vand.u32 4294967168, %v4025_v31 }
 0x297   :  { %vm464_vm3 = vcmp.eq.s32.totalorder %v3975_v12, %v4029_v35  ;;  %v4039_v38 = vsel %vm462_vm2, 2147483648, %v3972_v11 }
 0x298   :  { %v4042_v39 = vsel %vm464_vm3, 2147483648, %v3975_v12  ;;  %v492_v43 = vshra.s32 %v4039_v38, 16  ;;  %v491_v20 = vand.u32 65535, %v4039_v38  ;;  %vm430_vm3 = vcmp.lt.s32.totalorder %v422_v3, 0 }
 0x299   :  { %v386_v41 = vpop.xlane.xlu0 %385  ;;  %v520_v42 = vshra.s32 %v4042_v39, 16  ;;  %v519_v17 = vand.u32 65535, %v4042_v39 }
 0x29a   :  { %v302_v40 = vpop.xlane.xlu1 %301  ;;  %v387_v49 = vcvt.f32.s32 %v386_v41  ;;  %v494_v11 = vcvt.s32.f32 %v492_v43  ;;  %v493_v29 = vcvt.s32.f32 %v491_v20 }
 0x29b   :  { %v303_v48 = vcvt.f32.s32 %v302_v40  ;;  %v522_v50 = vcvt.s32.f32 %v520_v42  ;;  %v521_v24 = vcvt.s32.f32 %v519_v17 }
 0x29c   :  { %v4050_v12 = vadd.s32 %v389_v47, %v387_v49  ;;  %371 = vmax.xlane.f32.xlu2 %v370_v53  ;;  %495 = vmax.xlane.f32.xlu1 %v494_v11 }
 0x29d   :  { %v4048_v52 = vadd.s32 %v305_v45, %v303_v48  ;;  %523 = vmax.xlane.f32.xlu0 %v522_v50 }
 0x29e   :  { %vm467_vm6 = vcmp.eq.s32.totalorder %v3980_v22, %v4050_v12 }
 0x29f   :  { %vm461_vm5 = vcmp.eq.s32.totalorder %v3961_v61, %v4048_v52  ;;  %v4061_v58 = vsel %vm467_vm6, 2147483648, %v3980_v22 }
 0x2a0   :  { %v4058_v56 = vsel %vm461_vm5, 2147483648, %v3961_v61  ;;  %v562_v63 = vshra.s32 %v4061_v58, 16  ;;  %v561_v45 = vand.u32 65535, %v4061_v58  ;;  %vm1749_vm5 = vcmask 7168  }
 0x2a1   :  { %v478_v60 = vshra.s32 %v4058_v56, 16  ;;  %v477_v62 = vand.u32 65535, %v4058_v56 }
 0x2a2   :  { %v400_v55 = vpop.xlane.xlu1 %399  ;;  %v564_v2 = vcvt.s32.f32 %v562_v63  ;;  %v563_v47 = vcvt.s32.f32 %v561_v45  ;;  %v407_v63 = vand.u32 127, %v4015_v19 }
 0x2a3   :  { %v401_v59 = vcvt.f32.s32 %v400_v55  ;;  %v480_v1 = vcvt.s32.f32 %v478_v60  ;;  %v479_v41 = vcvt.s32.f32 %v477_v62 }
 0x2a4   :  { %565 = vmax.xlane.f32.xlu2 %v564_v2 }
 0x2a5   :  { %v4065_v0 = vadd.s32 %v403_v57, %v401_v59  ;;  %481 = vmax.xlane.f32.xlu0 %v480_v1  ;;  %v423_v59 = vand.u32 4294967168, %v4015_v19  ;;  %v438_v19 = vxor.u32 2147483647, %v422_v3 }
 0x2a7   :  { %vm468_vm7 = vcmp.eq.s32.totalorder %v3984_v32, %v4065_v0  ;;  %vm431_vm2 = vcmp.lt.s32.totalorder %v423_v59, 0 }
 0x2a8   :  { %v4071_v61 = vsel %vm468_vm7, 2147483648, %v3984_v32  ;;  %v505_v32 = vand.u32 65535, %v4020_v23 }
 0x2a9   :  { %v576_v22 = vshra.s32 %v4071_v61, 16 }
 0x2aa   :  { %v358_v4 = vpop.xlane.xlu1 %357  ;;  %v507_v15 = vcvt.s32.f32 %v505_v32 }
 0x2ab   :  { %v359_v7 = vcvt.f32.s32 %v358_v4  ;;  %v578_v8 = vcvt.s32.f32 %v576_v22  ;;  %v408_v4 = vand.u32 127, %v4029_v35 }
 0x2ad   :  { %v4074_v9 = vadd.s32 %v361_v6, %v359_v7  ;;  %579 = vmax.xlane.f32.xlu0 %v578_v8 }
 0x2af   :  { %vm465_vm8 = vcmp.eq.s32.totalorder %v3988_v34, %v4074_v9 }
 0x2b0   :  { %v4079_v10 = vsel %vm465_vm8, 2147483648, %v3988_v34 }
 0x2b1   :  { %v534_v5 = vshra.s32 %v4079_v10, 16  ;;  %v533_v53 = vand.u32 65535, %v4079_v10 }
 0x2b3   :  { %v536_v13 = vcvt.s32.f32 %v534_v5  ;;  %v535_v55 = vcvt.s32.f32 %v533_v53  ;;  %v415_v5 = vsub.s32 127, %v407_v63 }
 0x2b5   :  { %537 = vmax.xlane.f32.xlu0 %v536_v13 }
 0x307   :  { %v510_v14 = vpop.xlane.xlu2 %509 }
 0x308   :  { %vm511_vm9 = vcmp.eq.f32.partialorder %v4027_v33, %v510_v14  ;;  %v516_v60 = vcvt.f32.s32 %v510_v14 }
 0x309   :  { %v512_v16 = vsel %vm511_vm9, %v507_v15, -inf }
 0x30a   :  { %513 = vmax.xlane.f32.xlu1 %v512_v16  ;;  %v517_v6 = vshll.u32 %v516_v60, 16  ;;  %v416_v16 = vsub.s32 127, %v408_v4 }
 0x30f   :  { %v372_v21 = vpop.xlane.xlu2 %371  ;;  %v4089_v28 = vpop.xlane.xlu1 %495 }
 0x310   :  { %v4087_v34 = vpop.xlane.xlu0 %523  ;;  %v373_v27 = vcvt.f32.s32 %v372_v21  ;;  %vm497_vm11 = vcmp.eq.f32.partialorder %v494_v11, %v4089_v28  ;;  %v502_v20 = vcvt.f32.s32 %v4089_v28 }
 0x311   :  { %vm525_vm10 = vcmp.eq.f32.partialorder %v522_v50, %v4087_v34  ;;  %v498_v26 = vsel %vm497_vm11, %v493_v29, -inf  ;;  %v530_v14 = vcvt.f32.s32 %v4087_v34  ;;  %v4136_v34 = vand.u32 4294967168, %v4048_v52 }
 0x312   :  { %v526_v30 = vsel %vm525_vm10, %v521_v24, -inf  ;;  %v4093_v33 = vadd.s32 %v375_v25, %v373_v27  ;;  %499 = vmax.xlane.f32.xlu0 %v498_v26 }
 0x313   :  { %527 = vmax.xlane.f32.xlu2 %v526_v30  ;;  %v531_v27 = vshll.u32 %v530_v14, 16  ;;  %v437_v53 = vxor.u32 2147483647, %v4136_v34 }
 0x314   :  { %vm466_vm12 = vcmp.eq.s32.totalorder %v3995_v46, %v4093_v33 }
 0x315   :  { %v4099_v36 = vsel %vm466_vm12, 2147483648, %v3995_v46  ;;  %v575_v46 = vand.u32 65535, %v4071_v61 }
 0x316   :  { %v548_v37 = vshra.s32 %v4099_v36, 16  ;;  %v547_v30 = vand.u32 65535, %v4099_v36 }
 0x317   :  { %v4108_v43 = vpop.xlane.xlu2 %565  ;;  %v577_v49 = vcvt.s32.f32 %v575_v46 }
 0x318   :  { %v4102_v40 = vpop.xlane.xlu0 %481  ;;  %v4104_v42 = vcvt.s32.f32 %v548_v37  ;;  %vm567_vm14 = vcmp.eq.f32.partialorder %v564_v2, %v4108_v43  ;;  %v406_v2 = vand.u32 127, %v4025_v31 }
 0x319   :  { %vm483_vm13 = vcmp.eq.f32.partialorder %v480_v1, %v4102_v40  ;;  %v568_v50 = vsel %vm567_vm14, %v563_v47, -inf  ;;  %v439_v1 = vxor.u32 2147483647, %v423_v59 }
 0x31a   :  { %v484_v44 = vsel %vm483_vm13, %v479_v41, -inf  ;;  %551 = vmax.xlane.f32.xlu1 %v4104_v42  ;;  %v4126_v15 = vsub.s32 127, %v406_v2  ;;  %v446_v41 = vsel %vm430_vm3, %v438_v19, %v422_v3  ;;  %vm429_vm13 = vcmp.lt.s32.totalorder %v4136_v34, 0 }
 0x31b   :  { %485 = vmax.xlane.f32.xlu2 %v484_v44  ;;  %v503_v44 = vshll.u32 %v502_v20, 16 }
 0x320   :  { %v4113_v48 = vpop.xlane.xlu0 %579 }
 0x321   :  { %vm581_vm15 = vcmp.eq.f32.partialorder %v578_v8, %v4113_v48  ;;  %v424_v8 = vand.u32 4294967168, %v4029_v35 }
 0x322   :  { %569 = vmax.xlane.f32.xlu1 %v568_v50  ;;  %v582_v11 = vsel %vm581_vm15, %v577_v49, -inf  ;;  %v405_v49 = vand.u32 127, %v4048_v52  ;;  %v411_v50 = vand.u32 127, %v4050_v12 }
 0x323   :  { %583 = vmax.xlane.f32.xlu2 %v582_v11  ;;  %v440_v31 = vxor.u32 2147483647, %v424_v8  ;;  %vm432_vm7 = vcmp.lt.s32.totalorder %v424_v8, 0 }
 0x325   :  { %v448_v47 = vsel %vm432_vm7, %v440_v31, %v424_v8 }
 0x328   :  { %v4117_v54 = vpop.xlane.xlu0 %537 }
 0x329   :  { %vm539_vm1 = vcmp.eq.f32.partialorder %v536_v13, %v4117_v54  ;;  %v447_v13 = vsel %vm431_vm2, %v439_v1, %v423_v59  ;;  %v549_v1 = vcvt.s32.f32 %v547_v30 }
 0x32a   :  { %v540_v57 = vsel %vm539_vm1, %v535_v55, -inf  ;;  %v4153_v55 = vand.u32 4294967168, %v4050_v12 }
 0x32b   :  { %541 = vmax.xlane.f32.xlu2 %v540_v57  ;;  %v488_v57 = vcvt.f32.s32 %v4102_v40 }
 0x32c   :  { %vm435_vm14 = vcmp.lt.s32.totalorder %v4153_v55, 0 }
 0x37d   :  { %v514_v22 = vpop.xlane.xlu1 %513 }
 0x37e   :  { %v515_v7 = vcvt.f32.s32 %v514_v22 }
 0x380   :  { %v518_v32 = vadd.s32 %v517_v6, %v515_v7 }
 0x382   :  { %v591_v17 = vand.u32 127, %v518_v32  ;;  %v607_v18 = vand.u32 4294967168, %v518_v32  ;;  %vm647_vm4 = vcmp.eq.s32.totalorder %v4020_v23, %v518_v32 }
 0x383   :  { %v4132_v35 = vsel %vm647_vm4, 2147483648, %v4020_v23 }
 0x384   :  { %v599_v21 = vsub.s32 127, %v591_v17  ;;  %vm615_vm6 = vcmp.lt.s32.totalorder %v607_v18, 0  ;;  %v623_v24 = vxor.u32 2147483647, %v607_v18  ;;  %v690_v25 = vshra.s32 %v4132_v35, 16 }
 0x385   :  { %v500_v23 = vpop.xlane.xlu0 %499 }
 0x386   :  { %v528_v29 = vpop.xlane.xlu2 %527  ;;  %v631_v26 = vsel %vm615_vm6, %v623_v24, %v607_v18  ;;  %v4140_v28 = vsel %vm1749_vm5, %v415_v5, %v599_v21  ;;  %v4142_v37 = vcvt.s32.f32 %v690_v25  ;;  %v501_v46 = vcvt.f32.s32 %v500_v23 }
 0x387   :  { %v529_v62 = vcvt.f32.s32 %v528_v29  ;;  %v4146_v45 = vsel %vm1749_vm5, %v447_v13, %v631_v26  ;;  %v489_v13 = vshll.u32 %v488_v57, 16  ;;  %v413_v24 = vsub.s32 127, %v405_v49 }
 0x388   :  { %693 = vmax.xlane.f32.xlu0 %v4142_v37  ;;  %v504_v59 = vadd.s32 %v503_v44, %v501_v46  ;;  %v586_v29 = vcvt.f32.s32 %v4113_v48  ;;  %v443_v26 = vxor.u32 2147483647, %v4153_v55 }
 0x389   :  { %v532_v11 = vadd.s32 %v531_v27, %v529_v62 }
 0x38a   :  { %v590_v2 = vand.u32 127, %v504_v59  ;;  %v606_v52 = vand.u32 4294967168, %v504_v59  ;;  %vm646_vm9 = vcmp.eq.s32.totalorder %v4039_v38, %v504_v59  ;;  %v587_v57 = vshll.u32 %v586_v29, 16 }
 0x38b   :  { %v592_v60 = vand.u32 127, %v532_v11  ;;  %v608_v63 = vand.u32 4294967168, %v532_v11  ;;  %vm648_vm8 = vcmp.eq.s32.totalorder %v4042_v39, %v532_v11  ;;  %v4165_v5 = vsel %vm646_vm9, 2147483648, %v4039_v38 }
 0x38c   :  { %v4158_v3 = vsel %vm648_vm8, 2147483648, %v4042_v39  ;;  %v598_v7 = vsub.s32 127, %v590_v2  ;;  %vm614_vm11 = vcmp.lt.s32.totalorder %v606_v52, 0  ;;  %v622_v40 = vxor.u32 2147483647, %v606_v52 }
 0x38d   :  { %v600_v22 = vsub.s32 127, %v592_v60  ;;  %vm616_vm10 = vcmp.lt.s32.totalorder %v608_v63, 0  ;;  %v624_v4 = vxor.u32 2147483647, %v608_v63  ;;  %v704_v6 = vshra.s32 %v4158_v3, 16  ;;  %v4162_v8 = vpop.xlane.xlu1 %551 }
 0x38e   :  { %v486_v19 = vpop.xlane.xlu2 %485  ;;  %v630_v18 = vsel %vm614_vm11, %v622_v40, %v606_v52  ;;  %v4177_v31 = vsel %vm1749_vm5, %v4126_v15, %v598_v7  ;;  %v428_v38 = vand.u32 4294967168, %v4065_v0  ;;  %vm553_vm12 = vcmp.eq.f32.partialorder %v4104_v42, %v4162_v8 }
 0x38f   :  { %v632_v32 = vsel %vm616_vm10, %v624_v4, %v608_v63  ;;  %v4168_v39 = vsel %vm1749_vm5, %v416_v16, %v600_v22  ;;  %v4170_v14 = vcvt.s32.f32 %v704_v6  ;;  %v487_v20 = vcvt.f32.s32 %v486_v19 }
 0x390   :  { %v4173_v17 = vsel %vm1749_vm5, %v448_v47, %v632_v32  ;;  %v4181_v21 = vsel %vm1749_vm5, %v446_v41, %v630_v18  ;;  %v676_v16 = vshra.s32 %v4165_v5, 16  ;;  %v554_v27 = vsel %vm553_vm12, %v549_v1, -inf }
 0x391   :  { %707 = vmax.xlane.f32.xlu1 %v4170_v14  ;;  %v490_v25 = vadd.s32 %v489_v13, %v487_v20  ;;  %v572_v15 = vcvt.f32.s32 %v4108_v43  ;;  %555 = vmax.xlane.f32.xlu0 %v554_v27  ;;  %v445_v42 = vsel %vm429_vm13, %v437_v53, %v4136_v34  ;;  %v412_v41 = vand.u32 127, %v4065_v0 }
 0x392   :  { %v4191_v30 = vcvt.s32.f32 %v676_v16  ;;  %v444_v44 = vxor.u32 2147483647, %v428_v38  ;;  %vm436_vm2 = vcmp.lt.s32.totalorder %v428_v38, 0  ;;  %v451_v1 = vsel %vm435_vm14, %v443_v26, %v4153_v55 }
 0x393   :  { %v589_v62 = vand.u32 127, %v490_v25  ;;  %v605_v23 = vand.u32 4294967168, %v490_v25  ;;  %vm645_vm15 = vcmp.eq.s32.totalorder %v4058_v56, %v490_v25  ;;  %v573_v11 = vshll.u32 %v572_v15, 16 }
 0x394   :  { %679 = vmax.xlane.f32.xlu2 %v4191_v30  ;;  %v4199_v43 = vsel %vm645_vm15, 2147483648, %v4058_v56  ;;  %v419_v56 = vsub.s32 127, %v411_v50  ;;  %v420_v22 = vsub.s32 127, %v412_v41  ;;  %v452_v4 = vsel %vm436_vm2, %v444_v44, %v428_v38 }
 0x395   :  { %v597_v48 = vsub.s32 127, %v589_v62  ;;  %vm613_vm1 = vcmp.lt.s32.totalorder %v605_v23, 0  ;;  %v621_v46 = vxor.u32 2147483647, %v605_v23  ;;  %v570_v47 = vpop.xlane.xlu1 %569  ;;  %v662_v49 = vshra.s32 %v4199_v43, 16 }
 0x396   :  { %v584_v59 = vpop.xlane.xlu2 %583  ;;  %v571_v60 = vcvt.f32.s32 %v570_v47  ;;  %v425_v6 = vand.u32 4294967168, %v4074_v9  ;;  %v544_v40 = vcvt.f32.s32 %v4117_v54 }
 0x397   :  { %v629_v34 = vsel %vm613_vm1, %v621_v46, %v605_v23  ;;  %v4203_v0 = vsel %vm1749_vm5, %v413_v24, %v597_v48  ;;  %v585_v53 = vcvt.f32.s32 %v584_v59  ;;  %v4205_v63 = vcvt.s32.f32 %v662_v49 }
 0x398   :  { %v4213_v2 = vsel %vm1749_vm5, %v445_v42, %v629_v34  ;;  %v574_v52 = vadd.s32 %v573_v11, %v571_v60  ;;  %v545_v24 = vshll.u32 %v544_v40, 16  ;;  %v409_v23 = vand.u32 127, %v4074_v9 }
 0x399   :  { %v588_v7 = vadd.s32 %v587_v57, %v585_v53  ;;  %665 = vmax.xlane.f32.xlu1 %v4205_v63  ;;  %v441_v46 = vxor.u32 2147483647, %v425_v6  ;;  %vm433_vm9 = vcmp.lt.s32.totalorder %v425_v6, 0  ;;  %v558_v40 = vcvt.f32.s32 %v4162_v8 }
 0x39a   :  { %v595_v13 = vand.u32 127, %v574_v52  ;;  %v611_v12 = vand.u32 4294967168, %v574_v52  ;;  %vm651_vm3 = vcmp.eq.s32.totalorder %v4061_v58, %v574_v52  ;;  %v417_v11 = vsub.s32 127, %v409_v23 }
 0x39b   :  { %v596_v50 = vand.u32 127, %v588_v7  ;;  %v612_v32 = vand.u32 4294967168, %v588_v7  ;;  %vm652_vm4 = vcmp.eq.s32.totalorder %v4071_v61, %v588_v7  ;;  %v4221_v55 = vsel %vm651_vm3, 2147483648, %v4061_v58 }
 0x39c   :  { %v603_v19 = vsub.s32 127, %v595_v13  ;;  %vm619_vm6 = vcmp.lt.s32.totalorder %v611_v12, 0  ;;  %v627_v18 = vxor.u32 2147483647, %v611_v12  ;;  %v4224_v20 = vsel %vm652_vm4, 2147483648, %v4071_v61 }
 0x39d   :  { %v604_v38 = vsub.s32 127, %v596_v50  ;;  %vm620_vm7 = vcmp.lt.s32.totalorder %v612_v32, 0  ;;  %v628_v54 = vxor.u32 2147483647, %v612_v32  ;;  %v760_v16 = vshra.s32 %v4224_v20, 16 }
 0x39e   :  { %v635_v25 = vsel %vm619_vm6, %v627_v18, %v611_v12  ;;  %v4228_v27 = vsel %vm1749_vm5, %v419_v56, %v603_v19  ;;  %v542_v15 = vpop.xlane.xlu2 %541  ;;  %v746_v58 = vshra.s32 %v4221_v55, 16  ;;  %v449_v34 = vsel %vm433_vm9, %v441_v46, %v425_v6 }
 0x39f   :  { %v636_v29 = vsel %vm620_vm7, %v628_v54, %v612_v32  ;;  %v4232_v26 = vsel %vm1749_vm5, %v420_v22, %v604_v38  ;;  %v4235_v61 = vsel %vm1749_vm5, %v451_v1, %v635_v25  ;;  %v543_v62 = vcvt.f32.s32 %v542_v15 }
 0x3a0   :  { %v4239_v42 = vsel %vm1749_vm5, %v452_v4, %v636_v29  ;;  %v4241_v41 = vcvt.s32.f32 %v760_v16  ;;  %v4243_v44 = vcvt.s32.f32 %v746_v58  ;;  %v703_v7 = vand.u32 65535, %v4158_v3 }
 0x3a1   :  { %v546_v48 = vadd.s32 %v545_v24, %v543_v62  ;;  %v675_v12 = vand.u32 65535, %v4165_v5  ;;  %v426_v32 = vand.u32 4294967168, %v4093_v33  ;;  %v559_v38 = vshll.u32 %v558_v40, 16 }
 0x3a2   :  { %763 = vmax.xlane.f32.xlu1 %v4241_v41  ;;  %749 = vmax.xlane.f32.xlu0 %v4243_v44  ;;  %v705_v50 = vcvt.s32.f32 %v703_v7  ;;  %v410_v54 = vand.u32 127, %v4093_v33  ;;  %v661_v24 = vand.u32 65535, %v4199_v43 }
 0x3a3   :  { %v593_v47 = vand.u32 127, %v546_v48  ;;  %v609_v49 = vand.u32 4294967168, %v546_v48  ;;  %vm649_vm8 = vcmp.eq.s32.totalorder %v4079_v10, %v546_v48  ;;  %v677_v8 = vcvt.s32.f32 %v675_v12 }
 0x3a4   :  { %v4249_v9 = vsel %vm649_vm8, 2147483648, %v4079_v10  ;;  %v689_v10 = vand.u32 65535, %v4132_v35  ;;  %v442_v15 = vxor.u32 2147483647, %v426_v32  ;;  %vm434_vm14 = vcmp.lt.s32.totalorder %v426_v32, 0 }
 0x3a5   :  { %v601_v57 = vsub.s32 127, %v593_v47  ;;  %vm617_vm10 = vcmp.lt.s32.totalorder %v609_v49, 0  ;;  %v625_v59 = vxor.u32 2147483647, %v609_v49  ;;  %v718_v60 = vshra.s32 %v4249_v9, 16 }
 0x3a6   :  { %v691_v4 = vcvt.s32.f32 %v689_v10  ;;  %v418_v62 = vsub.s32 127, %v410_v54  ;;  %v663_v23 = vcvt.s32.f32 %v661_v24  ;;  %v717_v12 = vand.u32 65535, %v4249_v9 }
 0x3a7   :  { %v633_v53 = vsel %vm617_vm10, %v625_v59, %v609_v49  ;;  %v4253_v56 = vsel %vm1749_vm5, %v417_v11, %v601_v57  ;;  %v4255_v1 = vcvt.s32.f32 %v718_v60  ;;  %v450_v49 = vsel %vm434_vm14, %v442_v15, %v426_v32 }
 0x3a8   :  { %v4258_v52 = vsel %vm1749_vm5, %v449_v34, %v633_v53  ;;  %v745_v34 = vand.u32 65535, %v4221_v55  ;;  %v759_v53 = vand.u32 65535, %v4224_v20  ;;  %v719_v32 = vcvt.s32.f32 %v717_v12 }
 0x3a9   :  { %vm1758_vm8 = vcmask 15360  }
 0x3aa   :  { %721 = vmax.xlane.f32.xlu1 %v4255_v1 }
 0x3fb   :  { %v4262_v22 = vpop.xlane.xlu0 %693 }
 0x3fc   :  { %vm695_vm11 = vcmp.eq.f32.partialorder %v4142_v37, %v4262_v22 }
 0x3fd   :  { %v696_v6 = vsel %vm695_vm11, %v691_v4, -inf  ;;  %v747_v4 = vcvt.s32.f32 %v745_v34 }
 0x3fe   :  { %697 = vmax.xlane.f32.xlu2 %v696_v6  ;;  %v761_v6 = vcvt.s32.f32 %v759_v53 }
 0x404   :  { %v4268_v13 = vpop.xlane.xlu1 %707  ;;  %v556_v19 = vpop.xlane.xlu0 %555 }
 0x405   :  { %vm709_vm12 = vcmp.eq.f32.partialorder %v4170_v14, %v4268_v13  ;;  %v557_v37 = vcvt.f32.s32 %v556_v19  ;;  %v714_v54 = vcvt.f32.s32 %v4268_v13 }
 0x406   :  { %v710_v18 = vsel %vm709_vm12, %v705_v50, -inf }
 0x407   :  { %711 = vmax.xlane.f32.xlu0 %v710_v18  ;;  %v4275_v16 = vpop.xlane.xlu2 %679  ;;  %v560_v25 = vadd.s32 %v559_v38, %v557_v37  ;;  %v700_v18 = vcvt.f32.s32 %v4262_v22 }
 0x408   :  { %vm681_vm13 = vcmp.eq.f32.partialorder %v4191_v30, %v4275_v16  ;;  %v686_v22 = vcvt.f32.s32 %v4275_v16 }
 0x409   :  { %v682_v14 = vsel %vm681_vm13, %v677_v8, -inf  ;;  %v594_v58 = vand.u32 127, %v560_v25  ;;  %v610_v29 = vand.u32 4294967168, %v560_v25  ;;  %vm650_vm15 = vcmp.eq.s32.totalorder %v4099_v36, %v560_v25 }
 0x40a   :  { %683 = vmax.xlane.f32.xlu1 %v682_v14  ;;  %v4282_v33 = vsel %vm650_vm15, 2147483648, %v4099_v36  ;;  %v701_v38 = vshll.u32 %v700_v18, 16 }
 0x40b   :  { %v602_v48 = vsub.s32 127, %v594_v58  ;;  %vm618_vm1 = vcmp.lt.s32.totalorder %v610_v29, 0  ;;  %v626_v46 = vxor.u32 2147483647, %v610_v29  ;;  %v732_v30 = vshra.s32 %v4282_v33, 16 }
 0x40c   :  { %v4284_v47 = vpop.xlane.xlu1 %665  ;;  %v715_v58 = vshll.u32 %v714_v54, 16 }
 0x40d   :  { %vm667_vm2 = vcmp.eq.f32.partialorder %v4205_v63, %v4284_v47  ;;  %v634_v11 = vsel %vm618_vm1, %v626_v46, %v610_v29  ;;  %v4290_v57 = vsel %vm1749_vm5, %v418_v62, %v602_v48  ;;  %v4292_v59 = vcvt.s32.f32 %v732_v30 }
 0x40e   :  { %v668_v36 = vsel %vm667_vm2, %v663_v23, -inf  ;;  %v4295_v60 = vsel %vm1749_vm5, %v450_v49, %v634_v11  ;;  %v687_v30 = vshll.u32 %v686_v22, 16  ;;  %v672_v16 = vcvt.f32.s32 %v4284_v47 }
 0x40f   :  { %669 = vmax.xlane.f32.xlu0 %v668_v36  ;;  %735 = vmax.xlane.f32.xlu2 %v4292_v59 }
 0x415   :  { %v4300_v10 = vpop.xlane.xlu0 %749  ;;  %v4302_v63 = vpop.xlane.xlu1 %763 }
 0x416   :  { %vm751_vm3 = vcmp.eq.f32.partialorder %v4243_v44, %v4300_v10  ;;  %vm765_vm4 = vcmp.eq.f32.partialorder %v4241_v41, %v4302_v63 }
 0x417   :  { %v752_v7 = vsel %vm751_vm3, %v747_v4, -inf  ;;  %v766_v40 = vsel %vm765_vm4, %v761_v6, -inf }
 0x418   :  { %753 = vmax.xlane.f32.xlu2 %v752_v7  ;;  %767 = vmax.xlane.f32.xlu0 %v766_v40  ;;  %v673_v7 = vshll.u32 %v672_v16, 16 }
 0x41d   :  { %v4309_v50 = vpop.xlane.xlu1 %721 }
 0x41e   :  { %vm723_vm6 = vcmp.eq.f32.partialorder %v4255_v1, %v4309_v50 }
 0x41f   :  { %v724_v19 = vsel %vm723_vm6, %v719_v32, -inf }
 0x420   :  { %725 = vmax.xlane.f32.xlu0 %v724_v19 }
 0x471   :  { %v698_v44 = vpop.xlane.xlu2 %697 }
 0x472   :  { %v699_v37 = vcvt.f32.s32 %v698_v44 }
 0x474   :  { %v702_v41 = vadd.s32 %v701_v38, %v699_v37 }
 0x476   :  { %v775_v8 = vand.u32 127, %v702_v41  ;;  %v791_v24 = vand.u32 4294967168, %v702_v41  ;;  %vm831_vm7 = vcmp.eq.s32.totalorder %v4132_v35, %v702_v41 }
 0x477   :  { %v4317_v25 = vsel %vm831_vm7, 2147483648, %v4132_v35 }
 0x478   :  { %v783_v15 = vsub.s32 127, %v775_v8  ;;  %vm799_vm9 = vcmp.lt.s32.totalorder %v791_v24, 0  ;;  %v807_v1 = vxor.u32 2147483647, %v791_v24  ;;  %v874_v14 = vshra.s32 %v4317_v25, 16 }
 0x47a   :  { %v712_v29 = vpop.xlane.xlu0 %711  ;;  %v815_v62 = vsel %vm799_vm9, %v807_v1, %v791_v24  ;;  %v4323_v13 = vsel %vm1758_vm8, %v4140_v28, %v783_v15  ;;  %v4325_v48 = vcvt.s32.f32 %v874_v14  ;;  %v731_v28 = vand.u32 65535, %v4282_v33 }
 0x47b   :  { %v713_v23 = vcvt.f32.s32 %v712_v29  ;;  %v4329_v35 = vsel %vm1758_vm8, %v4146_v45, %v815_v62  ;;  %v756_v24 = vcvt.f32.s32 %v4300_v10 }
 0x47c   :  { %877 = vmax.xlane.f32.xlu1 %v4325_v48  ;;  %v733_v8 = vcvt.s32.f32 %v731_v28  ;;  %v728_v28 = vcvt.f32.s32 %v4309_v50 }
 0x47d   :  { %v716_v46 = vadd.s32 %v715_v58, %v713_v23  ;;  %v684_v49 = vpop.xlane.xlu1 %683 }
 0x47e   :  { %v685_v34 = vcvt.f32.s32 %v684_v49 }
 0x47f   :  { %v776_v11 = vand.u32 127, %v716_v46  ;;  %v792_v36 = vand.u32 4294967168, %v716_v46  ;;  %vm832_vm10 = vcmp.eq.s32.totalorder %v4158_v3, %v716_v46  ;;  %v757_v46 = vshll.u32 %v756_v24, 16 }
 0x480   :  { %v4336_v53 = vsel %vm832_vm10, 2147483648, %v4158_v3  ;;  %v688_v6 = vadd.s32 %v687_v30, %v685_v34 }
 0x481   :  { %v784_v4 = vsub.s32 127, %v776_v11  ;;  %vm800_vm11 = vcmp.lt.s32.totalorder %v792_v36, 0  ;;  %v808_v45 = vxor.u32 2147483647, %v792_v36  ;;  %v888_v40 = vshra.s32 %v4336_v53, 16 }
 0x482   :  { %v774_v32 = vand.u32 127, %v688_v6  ;;  %v790_v19 = vand.u32 4294967168, %v688_v6  ;;  %v670_v18 = vpop.xlane.xlu0 %669  ;;  %v4347_v3 = vpop.xlane.xlu2 %735  ;;  %vm830_vm12 = vcmp.eq.s32.totalorder %v4165_v5, %v688_v6 }
 0x483   :  { %v816_v12 = vsel %vm800_vm11, %v808_v45, %v792_v36  ;;  %v4341_v47 = vsel %vm1758_vm8, %v4168_v39, %v784_v4  ;;  %v671_v38 = vcvt.f32.s32 %v670_v18  ;;  %v4349_v37 = vcvt.s32.f32 %v888_v40 }
 0x484   :  { %v4345_v44 = vsel %vm1758_vm8, %v4173_v17, %v816_v12  ;;  %v782_v41 = vsub.s32 127, %v774_v32  ;;  %vm798_vm13 = vcmp.lt.s32.totalorder %v790_v19, 0  ;;  %v806_v54 = vxor.u32 2147483647, %v790_v19 }
 0x485   :  { %v674_v39 = vadd.s32 %v673_v7, %v671_v38  ;;  %vm737_vm14 = vcmp.eq.f32.partialorder %v4292_v59, %v4347_v3  ;;  %891 = vmax.xlane.f32.xlu2 %v4349_v37  ;;  %v4356_v17 = vsel %vm830_vm12, 2147483648, %v4165_v5  ;;  %v770_v5 = vcvt.f32.s32 %v4302_v63 }
 0x486   :  { %v814_v15 = vsel %vm798_vm13, %v806_v54, %v790_v19  ;;  %v4361_v1 = vsel %vm1758_vm8, %v4177_v31, %v782_v41  ;;  %v738_v14 = vsel %vm737_vm14, %v733_v8, -inf  ;;  %v860_v59 = vshra.s32 %v4356_v17, 16 }
 0x487   :  { %v4365_v22 = vsel %vm1758_vm8, %v4181_v21, %v814_v15  ;;  %v773_v58 = vand.u32 127, %v674_v39  ;;  %v789_v29 = vand.u32 4294967168, %v674_v39  ;;  %739 = vmax.xlane.f32.xlu1 %v738_v14  ;;  %vm829_vm15 = vcmp.eq.s32.totalorder %v4199_v43, %v674_v39 }
 0x488   :  { %v4370_v23 = vcvt.s32.f32 %v860_v59  ;;  %v4373_v31 = vsel %vm829_vm15, 2147483648, %v4199_v43  ;;  %v771_v11 = vshll.u32 %v770_v5, 16  ;;  %v729_v32 = vshll.u32 %v728_v28, 16 }
 0x489   :  { %v781_v10 = vsub.s32 127, %v773_v58  ;;  %vm797_vm1 = vcmp.lt.s32.totalorder %v789_v29, 0  ;;  %v805_v62 = vxor.u32 2147483647, %v789_v29  ;;  %v846_v49 = vshra.s32 %v4373_v31, 16 }
 0x48a   :  { %863 = vmax.xlane.f32.xlu0 %v4370_v23  ;;  %v887_v28 = vand.u32 65535, %v4336_v53 }
 0x48b   :  { %v813_v21 = vsel %vm797_vm1, %v805_v62, %v789_v29  ;;  %v4377_v30 = vsel %vm1758_vm8, %v4203_v0, %v781_v10  ;;  %v754_v16 = vpop.xlane.xlu2 %753  ;;  %v768_v63 = vpop.xlane.xlu0 %767  ;;  %v4386_v4 = vcvt.s32.f32 %v846_v49 }
 0x48c   :  { %v4383_v36 = vsel %vm1758_vm8, %v4213_v2, %v813_v21  ;;  %v755_v34 = vcvt.f32.s32 %v754_v16  ;;  %v769_v43 = vcvt.f32.s32 %v768_v63 }
 0x48d   :  { %849 = vmax.xlane.f32.xlu2 %v4386_v4 }
 0x48e   :  { %v758_v45 = vadd.s32 %v757_v46, %v755_v34  ;;  %v772_v0 = vadd.s32 %v771_v11, %v769_v43  ;;  %v873_v11 = vand.u32 65535, %v4317_v25 }
 0x490   :  { %v779_v6 = vand.u32 127, %v758_v45  ;;  %v795_v7 = vand.u32 4294967168, %v758_v45  ;;  %v780_v40 = vand.u32 127, %v772_v0  ;;  %v796_v12 = vand.u32 4294967168, %v772_v0 }
 0x491   :  { %vm835_vm2 = vcmp.eq.s32.totalorder %v4221_v55, %v758_v45  ;;  %vm836_vm3 = vcmp.eq.s32.totalorder %v4224_v20, %v772_v0  ;;  %v875_v34 = vcvt.s32.f32 %v873_v11  ;;  %v742_v45 = vcvt.f32.s32 %v4347_v3 }
 0x492   :  { %v787_v2 = vsub.s32 127, %v779_v6  ;;  %vm803_vm4 = vcmp.lt.s32.totalorder %v795_v7, 0  ;;  %v811_v19 = vxor.u32 2147483647, %v795_v7  ;;  %v788_v18 = vsub.s32 127, %v780_v40 }
 0x493   :  { %vm804_vm6 = vcmp.lt.s32.totalorder %v796_v12, 0  ;;  %v812_v50 = vxor.u32 2147483647, %v796_v12  ;;  %v726_v38 = vpop.xlane.xlu0 %725  ;;  %v4392_v41 = vsel %vm835_vm2, 2147483648, %v4221_v55  ;;  %v4395_v54 = vsel %vm836_vm3, 2147483648, %v4224_v20 }
 0x494   :  { %v819_v8 = vsel %vm803_vm4, %v811_v19, %v795_v7  ;;  %v4399_v39 = vsel %vm1758_vm8, %v4228_v27, %v787_v2  ;;  %v4403_v24 = vsel %vm1758_vm8, %v4232_v26, %v788_v18  ;;  %v727_v15 = vcvt.f32.s32 %v726_v38 }
 0x495   :  { %v4407_v14 = vsel %vm1758_vm8, %v4235_v61, %v819_v8  ;;  %v820_v58 = vsel %vm804_vm6, %v812_v50, %v796_v12  ;;  %v930_v55 = vshra.s32 %v4392_v41, 16  ;;  %v944_v20 = vshra.s32 %v4395_v54, 16 }
 0x496   :  { %v4413_v29 = vsel %vm1758_vm8, %v4239_v42, %v820_v58  ;;  %v730_v27 = vadd.s32 %v729_v32, %v727_v15  ;;  %v889_v0 = vcvt.s32.f32 %v887_v28  ;;  %v859_v7 = vand.u32 65535, %v4356_v17 }
 0x497   :  { %v4415_v59 = vcvt.s32.f32 %v930_v55  ;;  %v4417_v5 = vcvt.s32.f32 %v944_v20  ;;  %v743_v40 = vshll.u32 %v742_v45, 16  ;;  %v845_v19 = vand.u32 65535, %v4373_v31 }
 0x498   :  { %v777_v26 = vand.u32 127, %v730_v27  ;;  %v793_v10 = vand.u32 4294967168, %v730_v27  ;;  %vm833_vm7 = vcmp.eq.s32.totalorder %v4249_v9, %v730_v27  ;;  %v861_v2 = vcvt.s32.f32 %v859_v7 }
 0x499   :  { %933 = vmax.xlane.f32.xlu1 %v4415_v59  ;;  %947 = vmax.xlane.f32.xlu2 %v4417_v5  ;;  %v4423_v61 = vsel %vm833_vm7, 2147483648, %v4249_v9  ;;  %v847_v15 = vcvt.s32.f32 %v845_v19  ;;  %vm1767_vm4 = vcmask 23552  }
 0x49a   :  { %v785_v62 = vsub.s32 127, %v777_v26  ;;  %vm801_vm9 = vcmp.lt.s32.totalorder %v793_v10, 0  ;;  %v809_v42 = vxor.u32 2147483647, %v793_v10  ;;  %v902_v46 = vshra.s32 %v4423_v61, 16 }
 0x49b   :  { %v901_v11 = vand.u32 65535, %v4423_v61 }
 0x49c   :  { %v817_v21 = vsel %vm801_vm9, %v809_v42, %v793_v10  ;;  %v4428_v16 = vsel %vm1758_vm8, %v4253_v56, %v785_v62  ;;  %v904_v49 = vcvt.s32.f32 %v902_v46 }
 0x49d   :  { %v4432_v63 = vsel %vm1758_vm8, %v4258_v52, %v817_v21 }
 0x4a1   :  { %905 = vmax.xlane.f32.xlu2 %v904_v49 }
 0x4ef   :  { %v878_v9 = vpop.xlane.xlu1 %877 }
 0x4f0   :  { %vm879_vm10 = vcmp.eq.f32.partialorder %v4325_v48, %v878_v9  ;;  %v884_v45 = vcvt.f32.s32 %v878_v9 }
 0x4f1   :  { %v880_v43 = vsel %vm879_vm10, %v875_v34, -inf }
 0x4f2   :  { %881 = vmax.xlane.f32.xlu0 %v880_v43  ;;  %v903_v43 = vcvt.s32.f32 %v901_v11 }
 0x4f8   :  { %v4438_v56 = vpop.xlane.xlu2 %891 }
 0x4f9   :  { %vm893_vm11 = vcmp.eq.f32.partialorder %v4349_v37, %v4438_v56 }
 0x4fa   :  { %v740_v52 = vpop.xlane.xlu1 %739  ;;  %v894_v6 = vsel %vm893_vm11, %v889_v0, -inf }
 0x4fb   :  { %v741_v12 = vcvt.f32.s32 %v740_v52  ;;  %895 = vmax.xlane.f32.xlu1 %v894_v6  ;;  %v885_v52 = vshll.u32 %v884_v45, 16 }
 0x4fd   :  { %v744_v48 = vadd.s32 %v743_v40, %v741_v12  ;;  %v4443_v32 = vpop.xlane.xlu0 %863  ;;  %v898_v40 = vcvt.f32.s32 %v4438_v56 }
 0x4fe   :  { %vm865_vm12 = vcmp.eq.f32.partialorder %v4370_v23, %v4443_v32 }
 0x4ff   :  { %v778_v3 = vand.u32 127, %v744_v48  ;;  %v794_v18 = vand.u32 4294967168, %v744_v48  ;;  %v866_v50 = vsel %vm865_vm12, %v861_v2, -inf  ;;  %vm834_vm13 = vcmp.eq.s32.totalorder %v4282_v33, %v744_v48 }
 0x500   :  { %867 = vmax.xlane.f32.xlu2 %v866_v50  ;;  %v4449_v8 = vpop.xlane.xlu2 %849  ;;  %v4452_v58 = vsel %vm834_vm13, 2147483648, %v4282_v33  ;;  %v943_v33 = vand.u32 65535, %v4395_v54  ;;  %v870_v50 = vcvt.f32.s32 %v4443_v32 }
 0x501   :  { %v786_v37 = vsub.s32 127, %v778_v3  ;;  %vm802_vm14 = vcmp.lt.s32.totalorder %v794_v18, 0  ;;  %v810_v38 = vxor.u32 2147483647, %v794_v18  ;;  %vm851_vm15 = vcmp.eq.f32.partialorder %v4386_v4, %v4449_v8 }
 0x502   :  { %v852_v27 = vsel %vm851_vm15, %v847_v15, -inf  ;;  %v916_v26 = vshra.s32 %v4452_v58, 16  ;;  %v945_v4 = vcvt.s32.f32 %v943_v33  ;;  %v899_v3 = vshll.u32 %v898_v40, 16 }
 0x503   :  { %v818_v55 = vsel %vm802_vm14, %v810_v38, %v794_v18  ;;  %v4456_v20 = vsel %vm1758_vm8, %v4290_v57, %v786_v37  ;;  %853 = vmax.xlane.f32.xlu1 %v852_v27  ;;  %v929_v57 = vand.u32 65535, %v4392_v41  ;;  %v871_v15 = vshll.u32 %v870_v50, 16 }
 0x504   :  { %v4462_v23 = vsel %vm1758_vm8, %v4295_v60, %v818_v55  ;;  %v4465_v10 = vcvt.s32.f32 %v916_v26  ;;  %v856_v55 = vcvt.f32.s32 %v4449_v8 }
 0x505   :  { %v931_v46 = vcvt.s32.f32 %v929_v57 }
 0x506   :  { %919 = vmax.xlane.f32.xlu0 %v4465_v10  ;;  %v857_v8 = vshll.u32 %v856_v55, 16 }
 0x50c   :  { %v4470_v62 = vpop.xlane.xlu2 %947  ;;  %v4472_v42 = vpop.xlane.xlu1 %933 }
 0x50d   :  { %vm949_vm1 = vcmp.eq.f32.partialorder %v4417_v5, %v4470_v62  ;;  %vm935_vm2 = vcmp.eq.f32.partialorder %v4415_v59, %v4472_v42 }
 0x50e   :  { %v950_v60 = vsel %vm949_vm1, %v945_v4, -inf  ;;  %v936_v21 = vsel %vm935_vm2, %v931_v46, -inf }
 0x50f   :  { %951 = vmax.xlane.f32.xlu1 %v950_v60  ;;  %937 = vmax.xlane.f32.xlu0 %v936_v21  ;;  %v915_v60 = vand.u32 65535, %v4452_v58 }
 0x514   :  { %v4479_v34 = vpop.xlane.xlu2 %905 }
 0x515   :  { %vm907_vm3 = vcmp.eq.f32.partialorder %v904_v49, %v4479_v34 }
 0x516   :  { %v908_v28 = vsel %vm907_vm3, %v903_v43, -inf }
 0x517   :  { %909 = vmax.xlane.f32.xlu1 %v908_v28 }
 0x565   :  { %v882_v0 = vpop.xlane.xlu0 %881 }
 0x566   :  { %v883_v5 = vcvt.f32.s32 %v882_v0 }
 0x568   :  { %v886_v6 = vadd.s32 %v885_v52, %v883_v5 }
 0x56a   :  { %v959_v7 = vand.u32 127, %v886_v6  ;;  %v975_v59 = vand.u32 4294967168, %v886_v6  ;;  %vm1015_vm9 = vcmp.eq.s32.totalorder %v4317_v25, %v886_v6 }
 0x56c   :  { %v967_v12 = vsub.s32 127, %v959_v7  ;;  %vm983_vm6 = vcmp.lt.s32.totalorder %v975_v59, 0  ;;  %v991_v48 = vxor.u32 2147483647, %v975_v59 }
 0x56e   :  { %v999_v2 = vsel %vm983_vm6, %v991_v48, %v975_v59  ;;  %v4485_v19 = vsel %vm1767_vm4, %v4323_v13, %v967_v12  ;;  %v896_v49 = vpop.xlane.xlu1 %895  ;;  %v4528_v12 = vsel %vm1015_vm9, 2147483648, %v4317_v25  ;;  %v954_v48 = vcvt.f32.s32 %v4470_v62 }
 0x56f   :  { %v4489_v9 = vsel %vm1767_vm4, %v4329_v35, %v999_v2  ;;  %v897_v18 = vcvt.f32.s32 %v896_v49 }
 0x570   :  { %v955_v50 = vshll.u32 %v954_v48, 16 }
 0x571   :  { %v4492_v37 = vadd.s32 %v899_v3, %v897_v18 }
 0x573   :  { %v960_v56 = vand.u32 127, %v4492_v37  ;;  %v976_v38 = vand.u32 4294967168, %v4492_v37  ;;  %v868_v13 = vpop.xlane.xlu2 %867  ;;  %vm1016_vm6 = vcmp.eq.s32.totalorder %v4336_v53, %v4492_v37 }
 0x574   :  { %v869_v27 = vcvt.f32.s32 %v868_v13 }
 0x575   :  { %v968_v26 = vsub.s32 127, %v960_v56  ;;  %vm984_vm7 = vcmp.lt.s32.totalorder %v976_v38, 0  ;;  %v992_v33 = vxor.u32 2147483647, %v976_v38 }
 0x576   :  { %v4497_v57 = vadd.s32 %v871_v15, %v869_v27  ;;  %v854_v46 = vpop.xlane.xlu1 %853  ;;  %v912_v27 = vcvt.f32.s32 %v4479_v34 }
 0x577   :  { %v1000_v35 = vsel %vm984_vm7, %v992_v33, %v976_v38  ;;  %v4501_v32 = vsel %vm1767_vm4, %v4341_v47, %v968_v26  ;;  %v855_v43 = vcvt.f32.s32 %v854_v46 }
 0x578   :  { %v4505_v4 = vsel %vm1767_vm4, %v4345_v44, %v1000_v35  ;;  %v958_v21 = vand.u32 127, %v4497_v57  ;;  %v974_v11 = vand.u32 4294967168, %v4497_v57  ;;  %v917_v44 = vcvt.s32.f32 %v915_v60 }
 0x579   :  { %v4511_v47 = vpop.xlane.xlu0 %919  ;;  %v4513_v0 = vadd.s32 %v857_v8, %v855_v43  ;;  %v913_v43 = vshll.u32 %v912_v27, 16 }
 0x57a   :  { %v966_v28 = vsub.s32 127, %v958_v21  ;;  %vm982_vm10 = vcmp.lt.s32.totalorder %v974_v11, 0  ;;  %v990_v45 = vxor.u32 2147483647, %v974_v11  ;;  %vm921_vm11 = vcmp.eq.f32.partialorder %v4465_v10, %v4511_v47 }
 0x57b   :  { %v957_v7 = vand.u32 127, %v4513_v0  ;;  %v973_v6 = vand.u32 4294967168, %v4513_v0  ;;  %v922_v40 = vsel %vm921_vm11, %v917_v44, -inf  ;;  %vm1013_vm2 = vcmp.eq.s32.totalorder %v4373_v31, %v4513_v0 }
 0x57c   :  { %v998_v52 = vsel %vm982_vm10, %v990_v45, %v974_v11  ;;  %v4519_v5 = vsel %vm1767_vm4, %v4361_v1, %v966_v28  ;;  %923 = vmax.xlane.f32.xlu2 %v922_v40  ;;  %v940_v1 = vcvt.f32.s32 %v4472_v42  ;;  %v926_v37 = vcvt.f32.s32 %v4511_v47 }
 0x57d   :  { %v4525_v59 = vsel %vm1767_vm4, %v4365_v22, %v998_v52  ;;  %v965_v10 = vsub.s32 127, %v957_v7  ;;  %vm981_vm12 = vcmp.lt.s32.totalorder %v973_v6, 0  ;;  %v989_v2 = vxor.u32 2147483647, %v973_v6 }
 0x57e   :  { %v1058_v22 = vshra.s32 %v4528_v12, 16  ;;  %v941_v38 = vshll.u32 %v940_v1, 16  ;;  %vm1014_vm10 = vcmp.eq.s32.totalorder %v4356_v17, %v4497_v57 }
 0x57f   :  { %v997_v49 = vsel %vm981_vm12, %v989_v2, %v973_v6  ;;  %v4534_v3 = vsel %vm1767_vm4, %v4377_v30, %v965_v10 }
 0x580   :  { %v4539_v18 = vsel %vm1767_vm4, %v4383_v36, %v997_v49  ;;  %v4541_v13 = vcvt.s32.f32 %v1058_v22 }
 0x582   :  { %v952_v25 = vpop.xlane.xlu1 %951  ;;  %v938_v62 = vpop.xlane.xlu0 %937 }
 0x583   :  { %v953_v56 = vcvt.f32.s32 %v952_v25  ;;  %v939_v15 = vcvt.f32.s32 %v938_v62  ;;  %v4591_v62 = vsel %vm1016_vm6, 2147483648, %v4336_v53 }
 0x584   :  { %1061 = vmax.xlane.f32.xlu2 %v4541_v13 }
 0x585   :  { %v956_v55 = vadd.s32 %v955_v50, %v953_v56  ;;  %v942_v42 = vadd.s32 %v941_v38, %v939_v15 }
 0x587   :  { %v964_v30 = vand.u32 127, %v956_v55  ;;  %v980_v26 = vand.u32 4294967168, %v956_v55  ;;  %v963_v33 = vand.u32 127, %v942_v42  ;;  %v979_v35 = vand.u32 4294967168, %v942_v42 }
 0x588   :  { %vm1019_vm13 = vcmp.eq.s32.totalorder %v4392_v41, %v942_v42  ;;  %vm1020_vm7 = vcmp.eq.s32.totalorder %v4395_v54, %v956_v55  ;;  %v927_v42 = vshll.u32 %v926_v37, 16 }
 0x589   :  { %v972_v36 = vsub.s32 127, %v964_v30  ;;  %vm988_vm14 = vcmp.lt.s32.totalorder %v980_v26, 0  ;;  %v996_v46 = vxor.u32 2147483647, %v980_v26  ;;  %v4547_v60 = vsel %vm1019_vm13, 2147483648, %v4392_v41 }
 0x58a   :  { %v971_v8 = vsub.s32 127, %v963_v33  ;;  %vm987_vm15 = vcmp.lt.s32.totalorder %v979_v35, 0  ;;  %v995_v21 = vxor.u32 2147483647, %v979_v35  ;;  %v910_v11 = vpop.xlane.xlu1 %909  ;;  %v1114_v34 = vshra.s32 %v4547_v60, 16 }
 0x58b   :  { %v1004_v28 = vsel %vm988_vm14, %v996_v46, %v980_v26  ;;  %v4552_v45 = vsel %vm1767_vm4, %v4403_v24, %v972_v36  ;;  %v911_v44 = vcvt.f32.s32 %v910_v11  ;;  %v4596_v56 = vsel %vm1020_vm7, 2147483648, %v4395_v54 }
 0x58c   :  { %v1003_v52 = vsel %vm987_vm15, %v995_v21, %v979_v35  ;;  %v4556_v7 = vsel %vm1767_vm4, %v4399_v39, %v971_v8  ;;  %v4560_v41 = vsel %vm1767_vm4, %v4413_v29, %v1004_v28  ;;  %v4562_v6 = vcvt.s32.f32 %v1114_v34 }
 0x58d   :  { %v4566_v40 = vsel %vm1767_vm4, %v4407_v14, %v1003_v52  ;;  %v914_v48 = vadd.s32 %v913_v43, %v911_v44  ;;  %v1057_v43 = vand.u32 65535, %v4528_v12 }
 0x58e   :  { %1117 = vmax.xlane.f32.xlu2 %v4562_v6 }
 0x58f   :  { %v961_v10 = vand.u32 127, %v914_v48  ;;  %v977_v24 = vand.u32 4294967168, %v914_v48  ;;  %vm1017_vm1 = vcmp.eq.s32.totalorder %v4423_v61, %v914_v48 }
 0x590   :  { %v4571_v39 = vsel %vm1017_vm1, 2147483648, %v4423_v61  ;;  %v4585_v61 = vsel %vm1013_vm2, 2147483648, %v4373_v31  ;;  %v1128_v31 = vshra.s32 %v4596_v56, 16 }
 0x591   :  { %v969_v29 = vsub.s32 127, %v961_v10  ;;  %vm985_vm3 = vcmp.lt.s32.totalorder %v977_v24, 0  ;;  %v993_v2 = vxor.u32 2147483647, %v977_v24  ;;  %v1086_v1 = vshra.s32 %v4571_v39, 16 }
 0x592   :  { %v1030_v0 = vshra.s32 %v4585_v61, 16  ;;  %v1130_v38 = vcvt.s32.f32 %v1128_v31  ;;  %v1085_v34 = vand.u32 65535, %v4571_v39  ;;  %v1029_v52 = vand.u32 65535, %v4585_v61 }
 0x593   :  { %v1001_v14 = vsel %vm985_vm3, %v993_v2, %v977_v24  ;;  %v4578_v49 = vsel %vm1767_vm4, %v4428_v16, %v969_v29  ;;  %v1088_v22 = vcvt.s32.f32 %v1086_v1  ;;  %v1072_v16 = vshra.s32 %v4591_v62, 16 }
 0x594   :  { %v4582_v25 = vsel %vm1767_vm4, %v4432_v63, %v1001_v14  ;;  %v1032_v50 = vcvt.s32.f32 %v1030_v0  ;;  %v1087_v28 = vcvt.s32.f32 %v1085_v34  ;;  %v1113_v10 = vand.u32 65535, %v4547_v60 }
 0x595   :  { %1089 = vmax.xlane.f32.xlu0 %v1088_v22  ;;  %v1074_v63 = vcvt.s32.f32 %v1072_v16  ;;  %v1031_v29 = vcvt.s32.f32 %v1029_v52  ;;  %v1071_v14 = vand.u32 65535, %v4591_v62  ;;  %v1127_v31 = vand.u32 65535, %v4596_v56 }
 0x596   :  { %v1115_v2 = vcvt.s32.f32 %v1113_v10 }
 0x597   :  { %v1073_v0 = vcvt.s32.f32 %v1071_v14 }
 0x59d   :  { %1033 = vmax.xlane.f32.xlu0 %v1032_v50 }
 0x5a5   :  { %1075 = vmax.xlane.f32.xlu0 %v1074_v63 }
 0x5ad   :  { %1131 = vmax.xlane.f32.xlu0 %v1130_v38 }
 0x5ef   :  { %v924_v15 = vpop.xlane.xlu2 %923 }
 0x5f0   :  { %v925_v53 = vcvt.f32.s32 %v924_v15 }
 0x5f2   :  { %v928_v27 = vadd.s32 %v927_v42, %v925_v53 }
 0x5f4   :  { %v962_v30 = vand.u32 127, %v928_v27  ;;  %v978_v26 = vand.u32 4294967168, %v928_v27  ;;  %vm1018_vm9 = vcmp.eq.s32.totalorder %v4452_v58, %v928_v27 }
 0x5f5   :  { %v4602_v55 = vsel %vm1018_vm9, 2147483648, %v4452_v58  ;;  %v4616_v58 = vsel %vm1014_vm10, 2147483648, %v4356_v17  ;;  %vm1776_vm9 = vcmask 31744  }
 0x5f6   :  { %v970_v54 = vsub.s32 127, %v962_v30  ;;  %vm986_vm11 = vcmp.lt.s32.totalorder %v978_v26, 0  ;;  %v994_v33 = vxor.u32 2147483647, %v978_v26  ;;  %v1100_v35 = vshra.s32 %v4602_v55, 16 }
 0x5f7   :  { %v1044_v57 = vshra.s32 %v4616_v58, 16  ;;  %v1062_v11 = vpop.xlane.xlu2 %1061  ;;  %v1099_v15 = vand.u32 65535, %v4602_v55 }
 0x5f8   :  { %v1002_v47 = vsel %vm986_vm11, %v994_v33, %v978_v26  ;;  %v4609_v36 = vsel %vm1767_vm4, %v4456_v20, %v970_v54  ;;  %v1102_v46 = vcvt.s32.f32 %v1100_v35  ;;  %vm1063_vm12 = vcmp.eq.f32.partialorder %v4541_v13, %v1062_v11 }
 0x5f9   :  { %v4613_v8 = vsel %vm1767_vm4, %v4462_v23, %v1002_v47  ;;  %v1046_v21 = vcvt.s32.f32 %v1044_v57  ;;  %v1059_v23 = vcvt.s32.f32 %v1057_v43  ;;  %v1101_v53 = vcvt.s32.f32 %v1099_v15 }
 0x5fa   :  { %1103 = vmax.xlane.f32.xlu1 %v1102_v46  ;;  %v1068_v33 = vcvt.f32.s32 %v1062_v11 }
 0x5fb   :  { %v1064_v17 = vsel %vm1063_vm12, %v1059_v23, -inf }
 0x601   :  { %v1118_v48 = vpop.xlane.xlu2 %1117 }
 0x602   :  { %1047 = vmax.xlane.f32.xlu1 %v1046_v21  ;;  %vm1119_vm14 = vcmp.eq.f32.partialorder %v4562_v6, %v1118_v48  ;;  %v1129_v6 = vcvt.s32.f32 %v1127_v31  ;;  %v1124_v34 = vcvt.f32.s32 %v1118_v48 }
 0x603   :  { %v1120_v13 = vsel %vm1119_vm14, %v1115_v2, -inf }
 0x608   :  { %v1090_v20 = vpop.xlane.xlu0 %1089 }
 0x609   :  { %vm1091_vm13 = vcmp.eq.f32.partialorder %v1088_v22, %v1090_v20 }
 0x60a   :  { %v1092_v44 = vsel %vm1091_vm13, %v1087_v28, -inf  ;;  %1065 = vmax.xlane.f32.xlu1 %v1064_v17  ;;  %v1069_v28 = vshll.u32 %v1068_v33, 16 }
 0x60b   :  { %1093 = vmax.xlane.f32.xlu2 %v1092_v44 }
 0x610   :  { %v1034_v24 = vpop.xlane.xlu0 %1033 }
 0x611   :  { %vm1035_vm15 = vcmp.eq.f32.partialorder %v1032_v50, %v1034_v24  ;;  %v1040_v44 = vcvt.f32.s32 %v1034_v24 }
 0x612   :  { %v1036_v1 = vsel %vm1035_vm15, %v1031_v29, -inf  ;;  %1121 = vmax.xlane.f32.xlu1 %v1120_v13  ;;  %v1125_v29 = vshll.u32 %v1124_v34, 16 }
 0x613   :  { %1037 = vmax.xlane.f32.xlu2 %v1036_v1  ;;  %v1041_v48 = vshll.u32 %v1040_v44, 16 }
 0x618   :  { %v4626_v22 = vpop.xlane.xlu0 %1075 }
 0x619   :  { %vm1077_vm1 = vcmp.eq.f32.partialorder %v1074_v63, %v4626_v22  ;;  %v1043_v63 = vand.u32 65535, %v4616_v58 }
 0x61a   :  { %v1078_v16 = vsel %vm1077_vm1, %v1073_v0, -inf }
 0x61b   :  { %1079 = vmax.xlane.f32.xlu2 %v1078_v16  ;;  %v1045_v26 = vcvt.s32.f32 %v1043_v63 }
 0x620   :  { %v4630_v37 = vpop.xlane.xlu0 %1131 }
 0x621   :  { %vm1133_vm2 = vcmp.eq.f32.partialorder %v1130_v38, %v4630_v37  ;;  %v1096_v38 = vcvt.f32.s32 %v1090_v20 }
 0x622   :  { %v1134_v50 = vsel %vm1133_vm2, %v1129_v6, -inf }
 0x623   :  { %1135 = vmax.xlane.f32.xlu2 %v1134_v50  ;;  %v1097_v47 = vshll.u32 %v1096_v38, 16 }
 0x66d   :  { %v4634_v42 = vpop.xlane.xlu1 %1103 }
 0x66e   :  { %vm1105_vm3 = vcmp.eq.f32.partialorder %v1102_v46, %v4634_v42 }
 0x66f   :  { %v1106_v27 = vsel %vm1105_vm3, %v1101_v53, -inf }
 0x670   :  { %1107 = vmax.xlane.f32.xlu0 %v1106_v27 }
 0x675   :  { %v4638_v30 = vpop.xlane.xlu1 %1047 }
 0x676   :  { %vm1049_vm6 = vcmp.eq.f32.partialorder %v1046_v21, %v4638_v30 }
 0x677   :  { %v1050_v54 = vsel %vm1049_vm6, %v1045_v26, -inf  ;;  %v1082_v26 = vcvt.f32.s32 %v4626_v22 }
 0x678   :  { %1051 = vmax.xlane.f32.xlu0 %v1050_v54 }
 0x679   :  { %v1083_v34 = vshll.u32 %v1082_v26, 16 }
 0x67d   :  { %v1066_v43 = vpop.xlane.xlu1 %1065 }
 0x67e   :  { %v1094_v35 = vpop.xlane.xlu2 %1093  ;;  %v1067_v23 = vcvt.f32.s32 %v1066_v43 }
 0x67f   :  { %v1095_v57 = vcvt.f32.s32 %v1094_v35 }
 0x680   :  { %v1070_v10 = vadd.s32 %v1069_v28, %v1067_v23 }
 0x681   :  { %v1098_v46 = vadd.s32 %v1097_v47, %v1095_v57 }
 0x682   :  { %v1143_v2 = vand.u32 127, %v1070_v10  ;;  %v1159_v1 = vand.u32 4294967168, %v1070_v10  ;;  %vm1199_vm11 = vcmp.eq.s32.totalorder %v4528_v12, %v1070_v10 }
 0x683   :  { %v1145_v17 = vand.u32 127, %v1098_v46  ;;  %v1161_v52 = vand.u32 4294967168, %v1098_v46  ;;  %vm1201_vm7 = vcmp.eq.s32.totalorder %v4571_v39, %v1098_v46 }
 0x684   :  { %v4643_v21 = vsel %vm1201_vm7, 2147483648, %v4571_v39  ;;  %v1151_v16 = vsub.s32 127, %v1143_v2  ;;  %vm1167_vm12 = vcmp.lt.s32.totalorder %v1159_v1, 0  ;;  %v1175_v6 = vxor.u32 2147483647, %v1159_v1 }
 0x685   :  { %v1153_v11 = vsub.s32 127, %v1145_v17  ;;  %vm1169_vm10 = vcmp.lt.s32.totalorder %v1161_v52, 0  ;;  %v1177_v20 = vxor.u32 2147483647, %v1161_v52  ;;  %v1270_v14 = vshra.s32 %v4643_v21, 16  ;;  %v1122_v50 = vpop.xlane.xlu1 %1121 }
 0x686   :  { %v1038_v13 = vpop.xlane.xlu2 %1037  ;;  %v4659_v53 = vsel %vm1776_vm9, %v4485_v19, %v1151_v16  ;;  %v1123_v63 = vcvt.f32.s32 %v1122_v50  ;;  %v1183_v54 = vsel %vm1167_vm12, %v1175_v6, %v1159_v1 }
 0x687   :  { %v1185_v24 = vsel %vm1169_vm10, %v1177_v20, %v1161_v52  ;;  %v4649_v0 = vsel %vm1776_vm9, %v4578_v49, %v1153_v11  ;;  %v1039_v31 = vcvt.f32.s32 %v1038_v13  ;;  %v4655_v15 = vcvt.s32.f32 %v1270_v14 }
 0x688   :  { %v4653_v39 = vsel %vm1776_vm9, %v4582_v25, %v1185_v24  ;;  %v4662_v49 = vsel %vm1199_vm11, 2147483648, %v4528_v12  ;;  %v4669_v38 = vsel %vm1776_vm9, %v4489_v9, %v1183_v54  ;;  %v1126_v19 = vadd.s32 %v1125_v29, %v1123_v63 }
 0x689   :  { %v1042_v27 = vadd.s32 %v1041_v48, %v1039_v31  ;;  %1273 = vmax.xlane.f32.xlu1 %v4655_v15  ;;  %v1242_v25 = vshra.s32 %v4662_v49, 16 }
 0x68a   :  { %v1147_v22 = vand.u32 127, %v1126_v19  ;;  %v1163_v43 = vand.u32 4294967168, %v1126_v19  ;;  %vm1203_vm15 = vcmp.eq.s32.totalorder %v4547_v60, %v1126_v19 }
 0x68b   :  { %v1141_v33 = vand.u32 127, %v1042_v27  ;;  %v1157_v35 = vand.u32 4294967168, %v1042_v27  ;;  %v4671_v47 = vcvt.s32.f32 %v1242_v25  ;;  %vm1197_vm13 = vcmp.eq.s32.totalorder %v4585_v61, %v1042_v27 }
 0x68c   :  { %v4676_v46 = vsel %vm1197_vm13, 2147483648, %v4585_v61  ;;  %v1155_v44 = vsub.s32 127, %v1147_v22  ;;  %vm1171_vm1 = vcmp.lt.s32.totalorder %v1163_v43, 0  ;;  %v1179_v10 = vxor.u32 2147483647, %v1163_v43 }
 0x68d   :  { %v1149_v12 = vsub.s32 127, %v1141_v33  ;;  %vm1165_vm14 = vcmp.lt.s32.totalorder %v1157_v35, 0  ;;  %v1173_v57 = vxor.u32 2147483647, %v1157_v35  ;;  %1245 = vmax.xlane.f32.xlu0 %v4671_v47  ;;  %v1214_v29 = vshra.s32 %v4676_v46, 16 }
 0x68e   :  { %v1080_v28 = vpop.xlane.xlu2 %1079  ;;  %v4690_v61 = vsel %vm1776_vm9, %v4556_v7, %v1155_v44  ;;  %v4693_v20 = vsel %vm1203_vm15, 2147483648, %v4547_v60  ;;  %v1187_v2 = vsel %vm1171_vm1, %v1179_v10, %v1163_v43  ;;  %v1054_v44 = vcvt.f32.s32 %v4638_v30 }
 0x68f   :  { %v1181_v9 = vsel %vm1165_vm14, %v1173_v57, %v1157_v35  ;;  %v4681_v23 = vsel %vm1776_vm9, %v4534_v3, %v1149_v12  ;;  %v1081_v17 = vcvt.f32.s32 %v1080_v28  ;;  %v1138_v3 = vcvt.f32.s32 %v4630_v37 }
 0x690   :  { %v4685_v52 = vsel %vm1776_vm9, %v4539_v18, %v1181_v9  ;;  %v4696_v48 = vcvt.s32.f32 %v1214_v29  ;;  %v1298_v18 = vshra.s32 %v4693_v20, 16  ;;  %v4701_v1 = vsel %vm1776_vm9, %v4566_v40, %v1187_v2 }
 0x691   :  { %v1084_v11 = vadd.s32 %v1083_v34, %v1081_v17  ;;  %v1139_v31 = vshll.u32 %v1138_v3, 16  ;;  %v1055_v3 = vshll.u32 %v1054_v44, 16 }
 0x692   :  { %1217 = vmax.xlane.f32.xlu1 %v4696_v48  ;;  %v4705_v7 = vcvt.s32.f32 %v1298_v18 }
 0x693   :  { %v1144_v13 = vand.u32 127, %v1084_v11  ;;  %v1160_v14 = vand.u32 4294967168, %v1084_v11  ;;  %vm1200_vm2 = vcmp.eq.s32.totalorder %v4591_v62, %v1084_v11 }
 0x694   :  { %v4708_v60 = vsel %vm1200_vm2, 2147483648, %v4591_v62 }
 0x695   :  { %v1152_v37 = vsub.s32 127, %v1144_v13  ;;  %vm1168_vm3 = vcmp.lt.s32.totalorder %v1160_v14, 0  ;;  %v1176_v24 = vxor.u32 2147483647, %v1160_v14  ;;  %v1256_v16 = vshra.s32 %v4708_v60, 16  ;;  %1301 = vmax.xlane.f32.xlu0 %v4705_v7 }
 0x696   :  { %v1136_v40 = vpop.xlane.xlu2 %1135 }
 0x697   :  { %v1184_v6 = vsel %vm1168_vm3, %v1176_v24, %v1160_v14  ;;  %v4714_v50 = vsel %vm1776_vm9, %v4501_v32, %v1152_v37  ;;  %v1137_v27 = vcvt.f32.s32 %v1136_v40  ;;  %v4720_v62 = vcvt.s32.f32 %v1256_v16 }
 0x698   :  { %v4718_v63 = vsel %vm1776_vm9, %v4505_v4, %v1184_v6 }
 0x699   :  { %v1140_v26 = vadd.s32 %v1139_v31, %v1137_v27 }
 0x69a   :  { %1259 = vmax.xlane.f32.xlu1 %v4720_v62 }
 0x69b   :  { %v1148_v54 = vand.u32 127, %v1140_v26  ;;  %v1164_v25 = vand.u32 4294967168, %v1140_v26  ;;  %vm1204_vm6 = vcmp.eq.s32.totalorder %v4596_v56, %v1140_v26 }
 0x69c   :  { %v4725_v33 = vsel %vm1204_vm6, 2147483648, %v4596_v56  ;;  %v1110_v56 = vcvt.f32.s32 %v4634_v42 }
 0x69d   :  { %v1156_v35 = vsub.s32 127, %v1148_v54  ;;  %vm1172_vm7 = vcmp.lt.s32.totalorder %v1164_v25, 0  ;;  %v1180_v32 = vxor.u32 2147483647, %v1164_v25  ;;  %v1312_v19 = vshra.s32 %v4725_v33, 16 }
 0x69e   :  { %v1111_v43 = vshll.u32 %v1110_v56, 16  ;;  %v1269_v54 = vand.u32 65535, %v4643_v21  ;;  %v1213_v56 = vand.u32 65535, %v4676_v46 }
 0x69f   :  { %v1188_v12 = vsel %vm1172_vm7, %v1180_v32, %v1164_v25  ;;  %v4730_v4 = vsel %vm1776_vm9, %v4552_v45, %v1156_v35  ;;  %v4736_v22 = vcvt.s32.f32 %v1312_v19  ;;  %v1241_v25 = vand.u32 65535, %v4662_v49 }
 0x6a0   :  { %v4734_v57 = vsel %vm1776_vm9, %v4560_v41, %v1188_v12  ;;  %v1271_v35 = vcvt.s32.f32 %v1269_v54 }
 0x6a1   :  { %v1243_v12 = vcvt.s32.f32 %v1241_v25 }
 0x6a2   :  { %1315 = vmax.xlane.f32.xlu1 %v4736_v22 }
 0x6e3   :  { %v1108_v34 = vpop.xlane.xlu0 %1107 }
 0x6e4   :  { %v1109_v28 = vcvt.f32.s32 %v1108_v34 }
 0x6e6   :  { %v1112_v9 = vadd.s32 %v1111_v43, %v1109_v28  ;;  %v1215_v43 = vcvt.s32.f32 %v1213_v56 }
 0x6e8   :  { %v1146_v17 = vand.u32 127, %v1112_v9  ;;  %v1162_v10 = vand.u32 4294967168, %v1112_v9  ;;  %vm1202_vm10 = vcmp.eq.s32.totalorder %v4602_v55, %v1112_v9 }
 0x6e9   :  { %v4743_v45 = vsel %vm1202_vm10, 2147483648, %v4602_v55 }
 0x6ea   :  { %v1154_v41 = vsub.s32 127, %v1146_v17  ;;  %vm1170_vm11 = vcmp.lt.s32.totalorder %v1162_v10, 0  ;;  %v1178_v29 = vxor.u32 2147483647, %v1162_v10  ;;  %v1284_v11 = vshra.s32 %v4743_v45, 16 }
 0x6eb   :  { %v1052_v42 = vpop.xlane.xlu0 %1051 }
 0x6ec   :  { %v1186_v2 = vsel %vm1170_vm11, %v1178_v29, %v1162_v10  ;;  %v4748_v18 = vsel %vm1776_vm9, %v4609_v36, %v1154_v41  ;;  %v1053_v30 = vcvt.f32.s32 %v1052_v42  ;;  %v1286_v13 = vcvt.s32.f32 %v1284_v11 }
 0x6ed   :  { %v4752_v14 = vsel %vm1776_vm9, %v4613_v8, %v1186_v2 }
 0x6ee   :  { %v1056_v55 = vadd.s32 %v1055_v3, %v1053_v30  ;;  %1287 = vmax.xlane.f32.xlu2 %v1286_v13  ;;  %v1283_v3 = vand.u32 65535, %v4743_v45 }
 0x6f0   :  { %v1142_v37 = vand.u32 127, %v1056_v55  ;;  %v1158_v24 = vand.u32 4294967168, %v1056_v55  ;;  %vm1198_vm12 = vcmp.eq.s32.totalorder %v4616_v58, %v1056_v55  ;;  %v1285_v2 = vcvt.s32.f32 %v1283_v3 }
 0x6f1   :  { %v4756_v16 = vsel %vm1198_vm12, 2147483648, %v4616_v58  ;;  %vm1785_vm12 = vcmask 39936  }
 0x6f2   :  { %v1150_v40 = vsub.s32 127, %v1142_v37  ;;  %vm1166_vm13 = vcmp.lt.s32.totalorder %v1158_v24, 0  ;;  %v1174_v31 = vxor.u32 2147483647, %v1158_v24  ;;  %v1228_v36 = vshra.s32 %v4756_v16, 16 }
 0x6f3   :  { %v1227_v30 = vand.u32 65535, %v4756_v16 }
 0x6f4   :  { %v1182_v6 = vsel %vm1166_vm13, %v1174_v31, %v1158_v24  ;;  %v4761_v27 = vsel %vm1776_vm9, %v4519_v5, %v1150_v40  ;;  %v1230_v8 = vcvt.s32.f32 %v1228_v36 }
 0x6f5   :  { %v4765_v26 = vsel %vm1776_vm9, %v4525_v59, %v1182_v6  ;;  %v1297_v59 = vand.u32 65535, %v4693_v20  ;;  %v1229_v37 = vcvt.s32.f32 %v1227_v30 }
 0x6f6   :  { %1231 = vmax.xlane.f32.xlu2 %v1230_v8 }
 0x6f7   :  { %v1299_v9 = vcvt.s32.f32 %v1297_v59 }
 0x6fc   :  { %v1274_v58 = vpop.xlane.xlu1 %1273 }
 0x6fd   :  { %vm1275_vm14 = vcmp.eq.f32.partialorder %v4655_v15, %v1274_v58 }
 0x6fe   :  { %v1276_v32 = vsel %vm1275_vm14, %v1271_v35, -inf }
 0x6ff   :  { %1277 = vmax.xlane.f32.xlu0 %v1276_v32 }
 0x700   :  { %v1246_v19 = vpop.xlane.xlu0 %1245 }
 0x701   :  { %vm1247_vm15 = vcmp.eq.f32.partialorder %v4671_v47, %v1246_v19  ;;  %v1255_v47 = vand.u32 65535, %v4708_v60  ;;  %v1252_v40 = vcvt.f32.s32 %v1246_v19 }
 0x702   :  { %v1248_v5 = vsel %vm1247_vm15, %v1243_v12, -inf }
 0x703   :  { %1249 = vmax.xlane.f32.xlu2 %v1248_v5  ;;  %v1257_v10 = vcvt.s32.f32 %v1255_v47  ;;  %v1253_v25 = vshll.u32 %v1252_v40, 16 }
 0x705   :  { %v1218_v34 = vpop.xlane.xlu1 %1217 }
 0x706   :  { %vm1219_vm1 = vcmp.eq.f32.partialorder %v4696_v48, %v1218_v34  ;;  %v1311_v48 = vand.u32 65535, %v4725_v33  ;;  %v1224_v5 = vcvt.f32.s32 %v1218_v34 }
 0x707   :  { %v1220_v15 = vsel %vm1219_vm1, %v1215_v43, -inf }
 0x708   :  { %v4774_v28 = vpop.xlane.xlu0 %1301  ;;  %1221 = vmax.xlane.f32.xlu0 %v1220_v15  ;;  %v1313_v11 = vcvt.s32.f32 %v1311_v48  ;;  %v1225_v34 = vshll.u32 %v1224_v5, 16 }
 0x709   :  { %vm1303_vm2 = vcmp.eq.f32.partialorder %v4705_v7, %v4774_v28  ;;  %v1308_v19 = vcvt.f32.s32 %v4774_v28 }
 0x70a   :  { %v1304_v44 = vsel %vm1303_vm2, %v1299_v9, -inf }
 0x70b   :  { %1305 = vmax.xlane.f32.xlu2 %v1304_v44 }
 0x70d   :  { %v4779_v17 = vpop.xlane.xlu1 %1259 }
 0x70e   :  { %vm1261_vm3 = vcmp.eq.f32.partialorder %v4720_v62, %v4779_v17 }
 0x70f   :  { %v1262_v41 = vsel %vm1261_vm3, %v1257_v10, -inf }
 0x710   :  { %1263 = vmax.xlane.f32.xlu0 %v1262_v41 }
 0x715   :  { %v4784_v29 = vpop.xlane.xlu1 %1315 }
 0x716   :  { %vm1317_vm6 = vcmp.eq.f32.partialorder %v4736_v22, %v4784_v29  ;;  %v1280_v22 = vcvt.f32.s32 %v1274_v58 }
 0x717   :  { %v1318_v7 = vsel %vm1317_vm6, %v1313_v11, -inf }
 0x718   :  { %1319 = vmax.xlane.f32.xlu0 %v1318_v7  ;;  %v1281_v36 = vshll.u32 %v1280_v22, 16  ;;  %v1309_v7 = vshll.u32 %v1308_v19, 16 }
 0x761   :  { %v4789_v42 = vpop.xlane.xlu2 %1287 }
 0x762   :  { %vm1289_vm7 = vcmp.eq.f32.partialorder %v1286_v13, %v4789_v42 }
 0x763   :  { %v1290_v62 = vsel %vm1289_vm7, %v1285_v2, -inf }
 0x764   :  { %1291 = vmax.xlane.f32.xlu1 %v1290_v62 }
 0x769   :  { %v4793_v55 = vpop.xlane.xlu2 %1231 }
 0x76a   :  { %vm1233_vm10 = vcmp.eq.f32.partialorder %v1230_v8, %v4793_v55 }
 0x76b   :  { %v1234_v24 = vsel %vm1233_vm10, %v1229_v37, -inf  ;;  %v1266_v37 = vcvt.f32.s32 %v4779_v17 }
 0x76c   :  { %1235 = vmax.xlane.f32.xlu1 %v1234_v24 }
 0x76d   :  { %v1267_v17 = vshll.u32 %v1266_v37, 16 }
 0x772   :  { %v1278_v31 = vpop.xlane.xlu0 %1277 }
 0x773   :  { %v1279_v6 = vcvt.f32.s32 %v1278_v31 }
 0x775   :  { %v1282_v54 = vadd.s32 %v1281_v36, %v1279_v6 }
 0x776   :  { %v1250_v35 = vpop.xlane.xlu2 %1249 }
 0x777   :  { %v1251_v13 = vcvt.f32.s32 %v1250_v35  ;;  %v1329_v32 = vand.u32 127, %v1282_v54  ;;  %v1345_v12 = vand.u32 4294967168, %v1282_v54  ;;  %vm1385_vm11 = vcmp.eq.s32.totalorder %v4643_v21, %v1282_v54 }
 0x778   :  { %v4798_v56 = vsel %vm1385_vm11, 2147483648, %v4643_v21 }
 0x779   :  { %v1254_v8 = vadd.s32 %v1253_v25, %v1251_v13  ;;  %v1337_v59 = vsub.s32 127, %v1329_v32  ;;  %vm1353_vm13 = vcmp.lt.s32.totalorder %v1345_v12, 0  ;;  %v1361_v58 = vxor.u32 2147483647, %v1345_v12 }
 0x77a   :  { %v1454_v43 = vshra.s32 %v4798_v56, 16 }
 0x77b   :  { %v1327_v9 = vand.u32 127, %v1254_v8  ;;  %v1343_v15 = vand.u32 4294967168, %v1254_v8  ;;  %v1369_v44 = vsel %vm1353_vm13, %v1361_v58, %v1345_v12  ;;  %v4804_v47 = vsel %vm1785_vm12, %v4649_v0, %v1337_v59  ;;  %v1222_v10 = vpop.xlane.xlu0 %1221 }
 0x77c   :  { %v4808_v21 = vsel %vm1785_vm12, %v4653_v39, %v1369_v44  ;;  %vm1383_vm14 = vcmp.eq.s32.totalorder %v4662_v49, %v1254_v8  ;;  %v4811_v41 = vcvt.s32.f32 %v1454_v43  ;;  %v1223_v11 = vcvt.f32.s32 %v1222_v10 }
 0x77d   :  { %v1335_v28 = vsub.s32 127, %v1327_v9  ;;  %vm1351_vm15 = vcmp.lt.s32.totalorder %v1343_v15, 0  ;;  %v1359_v48 = vxor.u32 2147483647, %v1343_v15  ;;  %v4814_v2 = vsel %vm1383_vm14, 2147483648, %v4662_v49 }
 0x77e   :  { %v1306_v3 = vpop.xlane.xlu2 %1305  ;;  %1457 = vmax.xlane.f32.xlu2 %v4811_v41  ;;  %v1226_v30 = vadd.s32 %v1225_v34, %v1223_v11  ;;  %v1426_v22 = vshra.s32 %v4814_v2, 16 }
 0x77f   :  { %v1367_v0 = vsel %vm1351_vm15, %v1359_v48, %v1343_v15  ;;  %v4819_v39 = vsel %vm1785_vm12, %v4659_v53, %v1335_v28  ;;  %v1307_v62 = vcvt.f32.s32 %v1306_v3 }
 0x780   :  { %v4824_v24 = vsel %vm1785_vm12, %v4669_v38, %v1367_v0  ;;  %v1325_v49 = vand.u32 127, %v1226_v30  ;;  %v1341_v31 = vand.u32 4294967168, %v1226_v30  ;;  %vm1381_vm1 = vcmp.eq.s32.totalorder %v4676_v46, %v1226_v30 }
 0x781   :  { %v1310_v40 = vadd.s32 %v1309_v7, %v1307_v62  ;;  %v4828_v36 = vcvt.s32.f32 %v1426_v22  ;;  %v4831_v53 = vsel %vm1381_vm1, 2147483648, %v4676_v46 }
 0x782   :  { %v1333_v25 = vsub.s32 127, %v1325_v49  ;;  %vm1349_vm2 = vcmp.lt.s32.totalorder %v1341_v31, 0  ;;  %v1357_v35 = vxor.u32 2147483647, %v1341_v31  ;;  %v1398_v13 = vshra.s32 %v4831_v53, 16 }
 0x783   :  { %v1331_v6 = vand.u32 127, %v1310_v40  ;;  %v1347_v54 = vand.u32 4294967168, %v1310_v40  ;;  %1429 = vmax.xlane.f32.xlu1 %v4828_v36  ;;  %v1264_v38 = vpop.xlane.xlu0 %1263  ;;  %vm1387_vm3 = vcmp.eq.s32.totalorder %v4693_v20, %v1310_v40 }
 0x784   :  { %v4838_v46 = vsel %vm1785_vm12, %v4681_v23, %v1333_v25  ;;  %v1365_v5 = vsel %vm1349_vm2, %v1357_v35, %v1341_v31  ;;  %v1265_v8 = vcvt.f32.s32 %v1264_v38  ;;  %v4841_v59 = vsel %vm1387_vm3, 2147483648, %v4693_v20 }
 0x785   :  { %v1339_v32 = vsub.s32 127, %v1331_v6  ;;  %vm1355_vm6 = vcmp.lt.s32.totalorder %v1347_v54, 0  ;;  %v1363_v12 = vxor.u32 2147483647, %v1347_v54  ;;  %v4843_v58 = vcvt.s32.f32 %v1398_v13 }
 0x786   :  { %v4851_v9 = vsel %vm1785_vm12, %v4685_v52, %v1365_v5  ;;  %v1482_v15 = vshra.s32 %v4841_v59, 16  ;;  %v1268_v44 = vadd.s32 %v1267_v17, %v1265_v8  ;;  %v1322_v20 = vcvt.f32.s32 %v4784_v29 }
 0x787   :  { %v1371_v19 = vsel %vm1355_vm6, %v1363_v12, %v1347_v54  ;;  %v4847_v43 = vsel %vm1785_vm12, %v4690_v61, %v1339_v32  ;;  %1401 = vmax.xlane.f32.xlu2 %v4843_v58  ;;  %v1238_v32 = vcvt.f32.s32 %v4793_v55 }
 0x788   :  { %v4856_v23 = vsel %vm1785_vm12, %v4701_v1, %v1371_v19  ;;  %v4860_v34 = vcvt.s32.f32 %v1482_v15  ;;  %v1328_v10 = vand.u32 127, %v1268_v44  ;;  %v1344_v61 = vand.u32 4294967168, %v1268_v44 }
 0x789   :  { %vm1384_vm7 = vcmp.eq.s32.totalorder %v4708_v60, %v1268_v44  ;;  %v1323_v7 = vshll.u32 %v1322_v20, 16  ;;  %v1239_v15 = vshll.u32 %v1238_v32, 16 }
 0x78a   :  { %v4864_v52 = vsel %vm1384_vm7, 2147483648, %v4708_v60  ;;  %v1336_v28 = vsub.s32 127, %v1328_v10  ;;  %vm1352_vm10 = vcmp.lt.s32.totalorder %v1344_v61, 0  ;;  %v1360_v48 = vxor.u32 2147483647, %v1344_v61 }
 0x78b   :  { %1485 = vmax.xlane.f32.xlu1 %v4860_v34  ;;  %v1320_v1 = vpop.xlane.xlu0 %1319  ;;  %v1440_v11 = vshra.s32 %v4864_v52, 16  ;;  %v1439_v32 = vand.u32 65535, %v4864_v52 }
 0x78c   :  { %v1321_v3 = vcvt.f32.s32 %v1320_v1  ;;  %v1368_v29 = vsel %vm1352_vm10, %v1360_v48, %v1344_v61  ;;  %v4870_v0 = vsel %vm1785_vm12, %v4714_v50, %v1336_v28 }
 0x78d   :  { %v4872_v62 = vcvt.s32.f32 %v1440_v11  ;;  %v4876_v60 = vsel %vm1785_vm12, %v4718_v63, %v1368_v29 }
 0x78e   :  { %v1324_v30 = vadd.s32 %v1323_v7, %v1321_v3 }
 0x78f   :  { %1443 = vmax.xlane.f32.xlu2 %v4872_v62 }
 0x790   :  { %v1332_v37 = vand.u32 127, %v1324_v30  ;;  %v1348_v22 = vand.u32 4294967168, %v1324_v30  ;;  %vm1388_vm11 = vcmp.eq.s32.totalorder %v4725_v33, %v1324_v30 }
 0x791   :  { %v4881_v40 = vsel %vm1388_vm11, 2147483648, %v4725_v33  ;;  %v1294_v33 = vcvt.f32.s32 %v4789_v42 }
 0x792   :  { %v1340_v49 = vsub.s32 127, %v1332_v37  ;;  %vm1356_vm13 = vcmp.lt.s32.totalorder %v1348_v22, 0  ;;  %v1364_v50 = vxor.u32 2147483647, %v1348_v22  ;;  %v1496_v31 = vshra.s32 %v4881_v40, 16 }
 0x793   :  { %v1295_v35 = vshll.u32 %v1294_v33, 16  ;;  %v1453_v37 = vand.u32 65535, %v4798_v56 }
 0x794   :  { %v1372_v6 = vsel %vm1356_vm13, %v1364_v50, %v1348_v22  ;;  %v4886_v63 = vsel %vm1785_vm12, %v4730_v4, %v1340_v49  ;;  %v4888_v54 = vcvt.s32.f32 %v1496_v31  ;;  %v1425_v50 = vand.u32 65535, %v4814_v2 }
 0x795   :  { %v4892_v25 = vsel %vm1785_vm12, %v4734_v57, %v1372_v6  ;;  %v1455_v22 = vcvt.s32.f32 %v1453_v37 }
 0x796   :  { %v1427_v6 = vcvt.s32.f32 %v1425_v50 }
 0x797   :  { %1499 = vmax.xlane.f32.xlu2 %v4888_v54 }
 0x7d7   :  { %v1292_v17 = vpop.xlane.xlu1 %1291 }
 0x7d8   :  { %v1293_v38 = vcvt.f32.s32 %v1292_v17 }
 0x7da   :  { %v1296_v13 = vadd.s32 %v1295_v35, %v1293_v38  ;;  %v1481_v35 = vand.u32 65535, %v4841_v59 }
 0x7dc   :  { %v1330_v12 = vand.u32 127, %v1296_v13  ;;  %v1346_v5 = vand.u32 4294967168, %v1296_v13  ;;  %vm1386_vm14 = vcmp.eq.s32.totalorder %v4743_v45, %v1296_v13  ;;  %v1483_v13 = vcvt.s32.f32 %v1481_v35 }
 0x7dd   :  { %v4899_v4 = vsel %vm1386_vm14, 2147483648, %v4743_v45 }
 0x7de   :  { %v1338_v8 = vsub.s32 127, %v1330_v12  ;;  %vm1354_vm15 = vcmp.lt.s32.totalorder %v1346_v5, 0  ;;  %v1362_v57 = vxor.u32 2147483647, %v1346_v5  ;;  %v1468_v19 = vshra.s32 %v4899_v4, 16 }
 0x7df   :  { %v1236_v42 = vpop.xlane.xlu1 %1235 }
 0x7e0   :  { %v1370_v44 = vsel %vm1354_vm15, %v1362_v57, %v1346_v5  ;;  %v4904_v20 = vsel %vm1785_vm12, %v4748_v18, %v1338_v8  ;;  %v1237_v55 = vcvt.f32.s32 %v1236_v42  ;;  %v1470_v10 = vcvt.s32.f32 %v1468_v19 }
 0x7e1   :  { %v4908_v61 = vsel %vm1785_vm12, %v4752_v14, %v1370_v44  ;;  %v1441_v5 = vcvt.s32.f32 %v1439_v32 }
 0x7e2   :  { %v1240_v45 = vadd.s32 %v1239_v15, %v1237_v55  ;;  %1471 = vmax.xlane.f32.xlu0 %v1470_v10 }
 0x7e4   :  { %v1326_v28 = vand.u32 127, %v1240_v45  ;;  %v1342_v48 = vand.u32 4294967168, %v1240_v45  ;;  %vm1382_vm1 = vcmp.eq.s32.totalorder %v4756_v16, %v1240_v45 }
 0x7e5   :  { %v4912_v1 = vsel %vm1382_vm1, 2147483648, %v4756_v16 }
 0x7e6   :  { %v1334_v11 = vsub.s32 127, %v1326_v28  ;;  %vm1350_vm2 = vcmp.lt.s32.totalorder %v1342_v48, 0  ;;  %v1358_v7 = vxor.u32 2147483647, %v1342_v48  ;;  %v1412_v18 = vshra.s32 %v4912_v1, 16 }
 0x7e7   :  { %v1411_v55 = vand.u32 65535, %v4912_v1 }
 0x7e8   :  { %v1366_v3 = vsel %vm1350_vm2, %v1358_v7, %v1342_v48  ;;  %v4917_v29 = vsel %vm1785_vm12, %v4761_v27, %v1334_v11  ;;  %v1414_v14 = vcvt.s32.f32 %v1412_v18  ;;  %v1397_v27 = vand.u32 65535, %v4831_v53 }
 0x7e9   :  { %v4921_v30 = vsel %vm1785_vm12, %v4765_v26, %v1366_v3  ;;  %v1413_v28 = vcvt.s32.f32 %v1411_v55  ;;  %vm1794_vm2 = vcmask 48128  }
 0x7ea   :  { %1415 = vmax.xlane.f32.xlu0 %v1414_v14  ;;  %v1399_v17 = vcvt.s32.f32 %v1397_v27 }
 0x7f1   :  { %v1458_v16 = vpop.xlane.xlu2 %1457 }
 0x7f2   :  { %vm1459_vm3 = vcmp.eq.f32.partialorder %v4811_v41, %v1458_v16 }
 0x7f3   :  { %v1460_v49 = vsel %vm1459_vm3, %v1455_v22, -inf }
 0x7f4   :  { %1461 = vmax.xlane.f32.xlu1 %v1460_v49 }
 0x7f6   :  { %v1430_v31 = vpop.xlane.xlu1 %1429 }
 0x7f7   :  { %vm1431_vm6 = vcmp.eq.f32.partialorder %v4828_v36, %v1430_v31  ;;  %v1436_v3 = vcvt.f32.s32 %v1430_v31 }
 0x7f8   :  { %v1432_v33 = vsel %vm1431_vm6, %v1427_v6, -inf }
 0x7f9   :  { %1433 = vmax.xlane.f32.xlu0 %v1432_v33 }
 0x7fa   :  { %v1402_v26 = vpop.xlane.xlu2 %1401 }
 0x7fb   :  { %vm1403_vm7 = vcmp.eq.f32.partialorder %v4843_v58, %v1402_v26  ;;  %v1495_v58 = vand.u32 65535, %v4881_v40  ;;  %v1408_v50 = vcvt.f32.s32 %v1402_v26 }
 0x7fc   :  { %v1404_v38 = vsel %vm1403_vm7, %v1399_v17, -inf }
 0x7fd   :  { %1405 = vmax.xlane.f32.xlu1 %v1404_v38  ;;  %v1497_v19 = vcvt.s32.f32 %v1495_v58 }
 0x7fe   :  { %v4930_v41 = vpop.xlane.xlu1 %1485 }
 0x7ff   :  { %vm1487_vm10 = vcmp.eq.f32.partialorder %v4860_v34, %v4930_v41  ;;  %v1467_v34 = vand.u32 65535, %v4899_v4  ;;  %v1492_v26 = vcvt.f32.s32 %v4930_v41 }
 0x800   :  { %v1488_v12 = vsel %vm1487_vm10, %v1483_v13, -inf  ;;  %v1409_v13 = vshll.u32 %v1408_v50, 16 }
 0x801   :  { %1489 = vmax.xlane.f32.xlu0 %v1488_v12  ;;  %v1469_v44 = vcvt.s32.f32 %v1467_v34 }
 0x802   :  { %v4935_v36 = vpop.xlane.xlu2 %1443 }
 0x803   :  { %vm1445_vm11 = vcmp.eq.f32.partialorder %v4872_v62, %v4935_v36  ;;  %v1450_v34 = vcvt.f32.s32 %v4935_v36 }
 0x804   :  { %v1446_v8 = vsel %vm1445_vm11, %v1441_v5, -inf }
 0x805   :  { %1447 = vmax.xlane.f32.xlu1 %v1446_v8  ;;  %v1451_v36 = vshll.u32 %v1450_v34, 16 }
 0x80a   :  { %v4940_v57 = vpop.xlane.xlu2 %1499 }
 0x80b   :  { %vm1501_vm13 = vcmp.eq.f32.partialorder %v4888_v54, %v4940_v57  ;;  %v1464_v54 = vcvt.f32.s32 %v1458_v16 }
 0x80c   :  { %v1502_v15 = vsel %vm1501_vm13, %v1497_v19, -inf }
 0x80d   :  { %1503 = vmax.xlane.f32.xlu1 %v1502_v15  ;;  %v1465_v7 = vshll.u32 %v1464_v54, 16  ;;  %v1493_v15 = vshll.u32 %v1492_v26, 16 }
 0x855   :  { %v4945_v42 = vpop.xlane.xlu0 %1471 }
 0x856   :  { %vm1473_vm14 = vcmp.eq.f32.partialorder %v1470_v10, %v4945_v42  ;;  %v1437_v10 = vshll.u32 %v1436_v3, 16 }
 0x857   :  { %v1474_v62 = vsel %vm1473_vm14, %v1469_v44, -inf }
 0x858   :  { %1475 = vmax.xlane.f32.xlu2 %v1474_v62 }
 0x85d   :  { %v4949_v45 = vpop.xlane.xlu0 %1415 }
 0x85e   :  { %vm1417_vm15 = vcmp.eq.f32.partialorder %v1414_v14, %v4949_v45 }
 0x85f   :  { %v1418_v48 = vsel %vm1417_vm15, %v1413_v28, -inf }
 0x860   :  { %1419 = vmax.xlane.f32.xlu2 %v1418_v48 }
 0x867   :  { %v1462_v11 = vpop.xlane.xlu1 %1461 }
 0x868   :  { %v1463_v18 = vcvt.f32.s32 %v1462_v11 }
 0x86a   :  { %v1466_v37 = vadd.s32 %v1465_v7, %v1463_v18 }
 0x86c   :  { %v1513_v22 = vand.u32 127, %v1466_v37  ;;  %v1529_v49 = vand.u32 4294967168, %v1466_v37  ;;  %vm1569_vm1 = vcmp.eq.s32.totalorder %v4798_v56, %v1466_v37  ;;  %v1434_v6 = vpop.xlane.xlu0 %1433 }
 0x86d   :  { %v4954_v27 = vsel %vm1569_vm1, 2147483648, %v4798_v56  ;;  %v1435_v14 = vcvt.f32.s32 %v1434_v6 }
 0x86e   :  { %v1521_v33 = vsub.s32 127, %v1513_v22  ;;  %vm1537_vm3 = vcmp.lt.s32.totalorder %v1529_v49, 0  ;;  %v1545_v16 = vxor.u32 2147483647, %v1529_v49  ;;  %v1638_v17 = vshra.s32 %v4954_v27, 16 }
 0x86f   :  { %v1438_v35 = vadd.s32 %v1437_v10, %v1435_v14 }
 0x870   :  { %v1553_v31 = vsel %vm1537_vm3, %v1545_v16, %v1529_v49  ;;  %v4959_v38 = vsel %vm1794_vm2, %v4804_v47, %v1521_v33  ;;  %v1406_v32 = vpop.xlane.xlu1 %1405  ;;  %v4962_v12 = vcvt.s32.f32 %v1638_v17 }
 0x871   :  { %v4966_v56 = vsel %vm1794_vm2, %v4808_v21, %v1553_v31  ;;  %v1511_v5 = vand.u32 127, %v1438_v35  ;;  %v1527_v8 = vand.u32 4294967168, %v1438_v35  ;;  %v1407_v58 = vcvt.f32.s32 %v1406_v32 }
 0x872   :  { %vm1567_vm6 = vcmp.eq.s32.totalorder %v4814_v2, %v1438_v35  ;;  %1641 = vmax.xlane.f32.xlu0 %v4962_v12  ;;  %v1506_v35 = vcvt.f32.s32 %v4940_v57 }
 0x873   :  { %v4970_v19 = vsel %vm1567_vm6, 2147483648, %v4814_v2  ;;  %vm1535_vm7 = vcmp.lt.s32.totalorder %v1527_v8, 0  ;;  %v1543_v47 = vxor.u32 2147483647, %v1527_v8  ;;  %v1410_v41 = vadd.s32 %v1409_v13, %v1407_v58 }
 0x874   :  { %v1519_v44 = vsub.s32 127, %v1511_v5  ;;  %v1490_v62 = vpop.xlane.xlu0 %1489  ;;  %v1610_v21 = vshra.s32 %v4970_v19, 16 }
 0x875   :  { %v1551_v55 = vsel %vm1535_vm7, %v1543_v47, %v1527_v8  ;;  %v1491_v28 = vcvt.f32.s32 %v1490_v62  ;;  %v1509_v48 = vand.u32 127, %v1410_v41  ;;  %v1525_v54 = vand.u32 4294967168, %v1410_v41 }
 0x876   :  { %v4975_v11 = vcvt.s32.f32 %v1610_v21  ;;  %vm1565_vm10 = vcmp.eq.s32.totalorder %v4831_v53, %v1410_v41  ;;  %v4980_v2 = vsel %vm1794_vm2, %v4824_v24, %v1551_v55  ;;  %v4988_v49 = vsel %vm1794_vm2, %v4819_v39, %v1519_v44 }
 0x877   :  { %v1494_v7 = vadd.s32 %v1493_v15, %v1491_v28  ;;  %vm1533_vm11 = vcmp.lt.s32.totalorder %v1525_v54, 0  ;;  %v1541_v18 = vxor.u32 2147483647, %v1525_v54  ;;  %v1517_v3 = vsub.s32 127, %v1509_v48 }
 0x878   :  { %1613 = vmax.xlane.f32.xlu2 %v4975_v11  ;;  %v1448_v37 = vpop.xlane.xlu1 %1447  ;;  %v4984_v22 = vsel %vm1565_vm10, 2147483648, %v4831_v53  ;;  %v1507_v15 = vshll.u32 %v1506_v35, 16 }
 0x879   :  { %v1515_v10 = vand.u32 127, %v1494_v7  ;;  %v1531_v50 = vand.u32 4294967168, %v1494_v7  ;;  %v1549_v6 = vsel %vm1533_vm11, %v1541_v18, %v1525_v54  ;;  %v1449_v24 = vcvt.f32.s32 %v1448_v37 }
 0x87a   :  { %vm1571_vm13 = vcmp.eq.s32.totalorder %v4841_v59, %v1494_v7  ;;  %v1582_v14 = vshra.s32 %v4984_v22, 16  ;;  %v4994_v33 = vsel %vm1794_vm2, %v4851_v9, %v1549_v6  ;;  %v5004_v13 = vsel %vm1794_vm2, %v4838_v46, %v1517_v3 }
 0x87b   :  { %v1523_v16 = vsub.s32 127, %v1515_v10  ;;  %vm1539_vm14 = vcmp.lt.s32.totalorder %v1531_v50, 0  ;;  %v1547_v53 = vxor.u32 2147483647, %v1531_v50  ;;  %v1452_v17 = vadd.s32 %v1451_v36, %v1449_v24 }
 0x87c   :  { %v4998_v39 = vsel %vm1571_vm13, 2147483648, %v4841_v59  ;;  %v5000_v31 = vcvt.s32.f32 %v1582_v14  ;;  %v1422_v24 = vcvt.f32.s32 %v4949_v45 }
 0x87d   :  { %v1555_v26 = vsel %vm1539_vm14, %v1547_v53, %v1531_v50  ;;  %v1512_v32 = vand.u32 127, %v1452_v17  ;;  %v1528_v5 = vand.u32 4294967168, %v1452_v17  ;;  %v1666_v9 = vshra.s32 %v4998_v39, 16 }
 0x87e   :  { %1585 = vmax.xlane.f32.xlu0 %v5000_v31  ;;  %vm1568_vm15 = vcmp.eq.s32.totalorder %v4864_v52, %v1452_v17  ;;  %v5011_v57 = vsel %vm1794_vm2, %v4856_v23, %v1555_v26  ;;  %v5015_v59 = vsel %vm1794_vm2, %v4847_v43, %v1523_v16  ;;  %v1423_v35 = vshll.u32 %v1422_v24, 16 }
 0x87f   :  { %v1520_v8 = vsub.s32 127, %v1512_v32  ;;  %vm1536_vm1 = vcmp.lt.s32.totalorder %v1528_v5, 0  ;;  %v1544_v46 = vxor.u32 2147483647, %v1528_v5  ;;  %v5017_v58 = vcvt.s32.f32 %v1666_v9 }
 0x880   :  { %v1504_v47 = vpop.xlane.xlu1 %1503  ;;  %v5020_v41 = vsel %vm1568_vm15, 2147483648, %v4864_v52 }
 0x881   :  { %v1552_v34 = vsel %vm1536_vm1, %v1544_v46, %v1528_v5  ;;  %1669 = vmax.xlane.f32.xlu2 %v5017_v58  ;;  %v1505_v44 = vcvt.f32.s32 %v1504_v47  ;;  %v1624_v23 = vshra.s32 %v5020_v41, 16  ;;  %v5030_v62 = vsel %vm1794_vm2, %v4870_v0, %v1520_v8 }
 0x882   :  { %v5026_v43 = vsel %vm1794_vm2, %v4876_v60, %v1552_v34 }
 0x883   :  { %v1508_v21 = vadd.s32 %v1507_v15, %v1505_v44  ;;  %v5032_v55 = vcvt.s32.f32 %v1624_v23 }
 0x885   :  { %v1516_v52 = vand.u32 127, %v1508_v21  ;;  %v1532_v28 = vand.u32 4294967168, %v1508_v21  ;;  %vm1572_vm3 = vcmp.eq.s32.totalorder %v4881_v40, %v1508_v21 }
 0x886   :  { %1627 = vmax.xlane.f32.xlu0 %v5032_v55  ;;  %v5037_v48 = vsel %vm1572_vm3, 2147483648, %v4881_v40  ;;  %v1478_v40 = vcvt.f32.s32 %v4945_v42 }
 0x887   :  { %v1524_v54 = vsub.s32 127, %v1516_v52  ;;  %vm1540_vm6 = vcmp.lt.s32.totalorder %v1532_v28, 0  ;;  %v1548_v60 = vxor.u32 2147483647, %v1532_v28  ;;  %v1680_v7 = vshra.s32 %v5037_v48, 16 }
 0x888   :  { %v1479_v10 = vshll.u32 %v1478_v40, 16  ;;  %v1637_v52 = vand.u32 65535, %v4954_v27  ;;  %v1665_v27 = vand.u32 65535, %v4998_v39 }
 0x889   :  { %v1556_v18 = vsel %vm1540_vm6, %v1548_v60, %v1532_v28  ;;  %v5042_v0 = vsel %vm1794_vm2, %v4886_v63, %v1524_v54  ;;  %v5044_v36 = vcvt.s32.f32 %v1680_v7  ;;  %v1609_v60 = vand.u32 65535, %v4970_v19 }
 0x88a   :  { %v5048_v3 = vsel %vm1794_vm2, %v4892_v25, %v1556_v18  ;;  %v1639_v54 = vcvt.s32.f32 %v1637_v52  ;;  %v1581_v18 = vand.u32 65535, %v4984_v22 }
 0x88e   :  { %1683 = vmax.xlane.f32.xlu0 %v5044_v36 }
 0x8cb   :  { %v1476_v37 = vpop.xlane.xlu2 %1475 }
 0x8cc   :  { %v1477_v50 = vcvt.f32.s32 %v1476_v37  ;;  %v1583_v37 = vcvt.s32.f32 %v1581_v18 }
 0x8ce   :  { %v1480_v6 = vadd.s32 %v1479_v10, %v1477_v50  ;;  %v1667_v50 = vcvt.s32.f32 %v1665_v27 }
 0x8d0   :  { %v1514_v14 = vand.u32 127, %v1480_v6  ;;  %v1530_v16 = vand.u32 4294967168, %v1480_v6  ;;  %vm1570_vm7 = vcmp.eq.s32.totalorder %v4899_v4, %v1480_v6 }
 0x8d1   :  { %v1578_v63 = vsel %vm1570_vm7, 2147483648, %v4899_v4 }
 0x8d2   :  { %v1522_v53 = vsub.s32 127, %v1514_v14  ;;  %vm1538_vm10 = vcmp.lt.s32.totalorder %v1530_v16, 0  ;;  %v1546_v25 = vxor.u32 2147483647, %v1530_v16  ;;  %v1652_v17 = vshra.s32 %v1578_v63, 16 }
 0x8d3   :  { %v1420_v26 = vpop.xlane.xlu2 %1419 }
 0x8d4   :  { %v1554_v32 = vsel %vm1538_vm10, %v1546_v25, %v1530_v16  ;;  %v1421_v42 = vcvt.f32.s32 %v1420_v26  ;;  %v1654_v5 = vcvt.s32.f32 %v1652_v17  ;;  %v5057_v9 = vsel %vm1794_vm2, %v4904_v20, %v1522_v53 }
 0x8d5   :  { %v5061_v45 = vsel %vm1794_vm2, %v4908_v61, %v1554_v32  ;;  %v3769_v17 = vmov 0  }
 0x8d6   :  { %v1424_v8 = vadd.s32 %v1423_v35, %v1421_v42  ;;  %1655 = vmax.xlane.f32.xlu1 %v1654_v5  ;;  %3595 = vset.pattern.permute.xlu2 %v3769_v17  ;;  %v1679_v35 = vand.u32 65535, %v5037_v48 }
 0x8d7   :  { %3594 = vset.pattern.permute.xlu1 %v3769_v17 }
 0x8d8   :  { %v1510_v4 = vand.u32 127, %v1424_v8  ;;  %v1526_v46 = vand.u32 4294967168, %v1424_v8  ;;  %vm1566_vm11 = vcmp.eq.s32.totalorder %v4912_v1, %v1424_v8  ;;  %v1681_v32 = vcvt.s32.f32 %v1679_v35 }
 0x8d9   :  { %v1574_v47 = vsel %vm1566_vm11, 2147483648, %v4912_v1  ;;  %v6226_v35 = vmov 4  }
 0x8da   :  { %v1518_v15 = vsub.s32 127, %v1510_v4  ;;  %vm1534_vm13 = vcmp.lt.s32.totalorder %v1526_v46, 0  ;;  %v1542_v34 = vxor.u32 2147483647, %v1526_v46  ;;  %v1596_v44 = vshra.s32 %v1574_v47, 16 }
 0x8db   :  { %v1595_v14 = vand.u32 65535, %v1574_v47 }
 0x8dc   :  { %v1550_v23 = vsel %vm1534_vm13, %v1542_v34, %v1526_v46  ;;  %v1598_v21 = vcvt.s32.f32 %v1596_v44  ;;  %v5067_v20 = vsel %vm1794_vm2, %v4917_v29, %v1518_v15  ;;  %v1611_v29 = vcvt.s32.f32 %v1609_v60 }
 0x8dd   :  { %v5071_v61 = vsel %vm1794_vm2, %v4921_v30, %v1550_v23  ;;  %v1597_v53 = vcvt.s32.f32 %v1595_v14  ;;  %vm1803_vm13 = vcmask 56320  }
 0x8de   :  { %1599 = vmax.xlane.f32.xlu1 %v1598_v21 }
 0x8e5   :  { %v1642_v28 = vpop.xlane.xlu0 %1641 }
 0x8e6   :  { %vm1643_vm14 = vcmp.eq.f32.partialorder %v4962_v12, %v1642_v28  ;;  %v1648_v26 = vcvt.f32.s32 %v1642_v28 }
 0x8e7   :  { %v1644_v1 = vsel %vm1643_vm14, %v1639_v54, -inf }
 0x8e8   :  { %1645 = vmax.xlane.f32.xlu1 %v1644_v1 }
 0x8eb   :  { %v1614_v7 = vpop.xlane.xlu2 %1613 }
 0x8ec   :  { %vm1615_vm15 = vcmp.eq.f32.partialorder %v4975_v11, %v1614_v7  ;;  %v1651_v11 = vand.u32 65535, %v1578_v63  ;;  %v1620_v47 = vcvt.f32.s32 %v1614_v7 }
 0x8ed   :  { %v1616_v40 = vsel %vm1615_vm15, %v1611_v29, -inf }
 0x8ee   :  { %v1653_v6 = vcvt.s32.f32 %v1651_v11  ;;  %v1621_v44 = vshll.u32 %v1620_v47, 16 }
 0x8f0   :  { %1617 = vmax.xlane.f32.xlu1 %v1616_v40 }
 0x8f1   :  { %v1586_v30 = vpop.xlane.xlu0 %1585 }
 0x8f2   :  { %vm1587_vm1 = vcmp.eq.f32.partialorder %v5000_v31, %v1586_v30  ;;  %v1623_v31 = vand.u32 65535, %v5020_v41  ;;  %v1592_v23 = vcvt.f32.s32 %v1586_v30 }
 0x8f3   :  { %v1588_v10 = vsel %vm1587_vm1, %v1583_v37, -inf }
 0x8f4   :  { %v5080_v12 = vpop.xlane.xlu2 %1669  ;;  %1589 = vmax.xlane.f32.xlu2 %v1588_v10  ;;  %v1593_v54 = vshll.u32 %v1592_v23, 16 }
 0x8f5   :  { %vm1671_vm3 = vcmp.eq.f32.partialorder %v5017_v58, %v5080_v12  ;;  %v1625_v58 = vcvt.s32.f32 %v1623_v31  ;;  %v1676_v29 = vcvt.f32.s32 %v5080_v12 }
 0x8f6   :  { %v1672_v19 = vsel %vm1671_vm3, %v1667_v50, -inf }
 0x8f7   :  { %v1677_v30 = vshll.u32 %v1676_v29, 16 }
 0x8f8   :  { %1673 = vmax.xlane.f32.xlu1 %v1672_v19 }
 0x8f9   :  { %v5087_v24 = vpop.xlane.xlu0 %1627 }
 0x8fa   :  { %vm1629_vm7 = vcmp.eq.f32.partialorder %v5032_v55, %v5087_v24  ;;  %v6234_v55 = vmov 1   ;;  %v1634_v47 = vcvt.f32.s32 %v5087_v24 }
 0x8fb   :  { %v1630_v63 = vsel %vm1629_vm7, %v1625_v58, -inf  ;;  %3601 = vset.pattern.permute.xlu0 %v6234_v55  ;;  %v6228_v58 = vmov 7  }
 0x901   :  { %v5097_v41 = vpop.xlane.xlu0 %1683 }
 0x902   :  { %vm1685_vm11 = vcmp.eq.f32.partialorder %v5044_v36, %v5097_v41 }
 0x903   :  { %v1686_v4 = vsel %vm1685_vm11, %v1681_v32, -inf }
 0x949   :  { %v5084_v22 = vpop.xlane.xlu1 %1655 }
 0x94a   :  { %vm1657_vm6 = vcmp.eq.f32.partialorder %v1654_v5, %v5084_v22  ;;  %v1649_v5 = vshll.u32 %v1648_v26, 16  ;;  %v6222_v26 = vmov 5   ;;  %v1662_v32 = vcvt.f32.s32 %v5084_v22 }
 0x94b   :  { %v1658_v39 = vsel %vm1657_vm6, %v1653_v6, -inf }
 0x94c   :  { %1659 = vmax.xlane.f32.xlu2 %v1658_v39 }
 0x951   :  { %v5092_v16 = vpop.xlane.xlu1 %1599 }
 0x952   :  { %vm1601_vm10 = vcmp.eq.f32.partialorder %v1598_v21, %v5092_v16 }
 0x953   :  { %v1602_v25 = vsel %vm1601_vm10, %v1597_v53, -inf  ;;  %v6232_v53 = vmov 2  }
 0x954   :  { %1631 = vmax.xlane.f32.xlu2 %v1630_v63  ;;  %1603 = vmax.xlane.f32.xlu0 %v1602_v25 }
 0x95b   :  { %v1646_v42 = vpop.xlane.xlu1 %1645 }
 0x95c   :  { %v1647_v8 = vcvt.f32.s32 %v1646_v42  ;;  %1687 = vmax.xlane.f32.xlu2 %v1686_v4 }
 0x95e   :  { %v5103_v46 = vadd.s32 %v1649_v5, %v1647_v8  ;;  %v1663_v5 = vshll.u32 %v1662_v32, 16 }
 0x960   :  { %v1697_v15 = vand.u32 127, %v5103_v46 }
 0x962   :  { %v1705_v48 = vsub.s32 127, %v1697_v15  ;;  %v1606_v15 = vcvt.f32.s32 %v5092_v16  ;;  %v1690_v16 = vcvt.f32.s32 %v5097_v41 }
 0x963   :  { %v1618_v34 = vpop.xlane.xlu1 %1617 }
 0x964   :  { %v5108_v21 = vsel %vm1803_vm13, %v4959_v38, %v1705_v48  ;;  %v1619_v36 = vcvt.f32.s32 %v1618_v34 }
 0x966   :  { %v1622_v52 = vadd.s32 %v1621_v44, %v1619_v36  ;;  %v1635_v44 = vshll.u32 %v1634_v47, 16  ;;  %v1607_v36 = vshll.u32 %v1606_v15, 16 }
 0x967   :  { %v1590_v28 = vpop.xlane.xlu2 %1589 }
 0x968   :  { %v1591_v1 = vcvt.f32.s32 %v1590_v28  ;;  %v1711_v60 = vand.u32 4294967168, %v1622_v52  ;;  %v1695_v27 = vand.u32 127, %v1622_v52 }
 0x96a   :  { %v1594_v7 = vadd.s32 %v1593_v54, %v1591_v1  ;;  %vm1719_vm14 = vcmp.lt.s32.totalorder %v1711_v60, 0  ;;  %v1727_v18 = vxor.u32 2147483647, %v1711_v60  ;;  %v1703_v12 = vsub.s32 127, %v1695_v27 }
 0x96b   :  { %v1674_v40 = vpop.xlane.xlu1 %1673 }
 0x96c   :  { %v1693_v37 = vand.u32 127, %v1594_v7  ;;  %v1735_v10 = vsel %vm1719_vm14, %v1727_v18, %v1711_v60  ;;  %v1675_v50 = vcvt.f32.s32 %v1674_v40  ;;  %v5123_v14 = vsel %vm1803_vm13, %v4988_v49, %v1703_v12 }
 0x96d   :  { %v1806_v38 = vsel %vm1803_vm13, %v4980_v2, %v1735_v10  ;;  %vm2144_vm14 = vcmask 64512  }
 0x96e   :  { %v1701_v19 = vsub.s32 127, %v1693_v37  ;;  %1901 = vperm.xlu0 %3601, %v1806_v38   ;;  %v5113_v11 = vadd.s32 %v1677_v30, %v1675_v50  ;;  %v1691_v37 = vshll.u32 %v1690_v16, 16 }
 0x970   :  { %v5117_v6 = vsel %vm1803_vm13, %v5004_v13, %v1701_v19  ;;  %v1699_v39 = vand.u32 127, %v5113_v11  ;;  %v1709_v13 = vand.u32 4294967168, %v1594_v7  ;;  %v1715_v47 = vand.u32 4294967168, %v5113_v11 }
 0x971   :  { %3033 = vperm.xlu1 %3594, %v5117_v6  }
 0x972   :  { %v1707_v31 = vsub.s32 127, %v1699_v39  ;;  %v1725_v49 = vxor.u32 2147483647, %v1709_v13  ;;  %vm1717_vm15 = vcmp.lt.s32.totalorder %v1709_v13, 0  ;;  %vm1723_vm6 = vcmp.lt.s32.totalorder %v1715_v47, 0 }
 0x974   :  { %v5127_v2 = vsel %vm1803_vm13, %v5015_v59, %v1707_v31  ;;  %3039 = vperm.xlu2 %3595, %v5123_v14   ;;  %v6230_v59 = vmov 3   ;;  %v1733_v63 = vsel %vm1717_vm15, %v1725_v49, %v1709_v13  ;;  %vm2149_vm15 = vcmask 130048  }
 0x975   :  { %v1804_v25 = vsel %vm1803_vm13, %v4994_v33, %v1733_v63  ;;  %v6224_v33 = vmov 6  }
 0x976   :  { %3606 = vset.pattern.permute.xlu0 %v6228_v58 }
 0x977   :  { %2021 = vperm.xlu0 %3606, %v1806_v38  }
 0x979   :  { %3596 = vset.pattern.permute.xlu1 %v6234_v55 }
 0x97a   :  { %3053 = vperm.xlu1 %3596, %v5117_v6  }
 0x97c   :  { %3597 = vset.pattern.permute.xlu2 %v6232_v53 }
 0x97d   :  { %3077 = vperm.xlu2 %3597, %v5117_v6  }
 0x97f   :  { %3607 = vset.pattern.permute.xlu0 %v3769_v17 }
 0x980   :  { %1880 = vperm.xlu0 %3607, %v1806_v38  }
 0x982   :  { %3598 = vset.pattern.permute.xlu1 %v6230_v59 }
 0x983   :  { %3101 = vperm.xlu1 %3598, %v5117_v6  }
 0x985   :  { %3083 = vperm.xlu2 %3597, %v5123_v14  }
 0x988   :  { %3608 = vset.pattern.permute.xlu0 %v6234_v55 }
 0x989   :  { %1893 = vperm.xlu0 %3608, %v1804_v25  }
 0x98b   :  { %3107 = vperm.xlu1 %3598, %v5123_v14  }
 0x98d   :  { %3599 = vset.pattern.permute.xlu2 %v6226_v35 }
 0x98e   :  { %3131 = vperm.xlu2 %3599, %v5123_v14  }
 0x991   :  { %3616 = vset.pattern.permute.xlu0 %v3769_v17 }
 0x993   :  { %1941 = vperm.xlu1 %3598, %v1806_v38  }
 0x996   :  { %3600 = vset.pattern.permute.xlu2 %v6222_v26 }
 0x997   :  { %3149 = vperm.xlu2 %3600, %v5117_v6  }
 0x99b   :  { %3603 = vset.pattern.permute.xlu1 %v6226_v35 }
 0x99c   :  { %1961 = vperm.xlu1 %3603, %v1806_v38  }
 0x99f   :  { %3602 = vset.pattern.permute.xlu2 %v6232_v53 }
 0x9a0   :  { %1921 = vperm.xlu2 %3602, %v1806_v38  }
 0x9a4   :  { %3610 = vset.pattern.permute.xlu1 %v6230_v59 }
 0x9a5   :  { %1933 = vperm.xlu1 %3610, %v1804_v25  }
 0x9a8   :  { %3604 = vset.pattern.permute.xlu2 %v6222_v26 }
 0x9a9   :  { %1981 = vperm.xlu2 %3604, %v1806_v38  }
 0x9ad   :  { %3612 = vset.pattern.permute.xlu1 %v6222_v26 }
 0x9ae   :  { %1973 = vperm.xlu1 %3612, %v1804_v25  }
 0x9b1   :  { %3605 = vset.pattern.permute.xlu2 %v6224_v33 }
 0x9b2   :  { %2001 = vperm.xlu2 %3605, %v1806_v38  }
 0x9b6   :  { %3614 = vset.pattern.permute.xlu1 %v6228_v58 }
 0x9b7   :  { %2013 = vperm.xlu1 %3614, %v1804_v25  }
 0x9ba   :  { %3609 = vset.pattern.permute.xlu2 %v6232_v53 }
 0x9bb   :  { %1913 = vperm.xlu2 %3609, %v1804_v25  }
 0x9bf   :  { %3615 = vset.pattern.permute.xlu1 %v3769_v17  ;;  %v1660_v42 = vpop.xlane.xlu2 %1659 }
 0x9c0   :  { %1870 = vperm.xlu1 %3615, %v1804_v25   ;;  %v1661_v8 = vcvt.f32.s32 %v1660_v42 }
 0x9c2   :  { %v5158_v4 = vadd.s32 %v1663_v5, %v1661_v8 }
 0x9c3   :  { %3611 = vset.pattern.permute.xlu2 %v6226_v35 }
 0x9c4   :  { %v1698_v48 = vand.u32 127, %v5158_v4  ;;  %1953 = vperm.xlu2 %3611, %v1804_v25  }
 0x9c6   :  { %v1706_v34 = vsub.s32 127, %v1698_v48  ;;  %v1731_v48 = vxor.u32 2147483647, %v1715_v47 }
 0x9c7   :  { %v1632_v22 = vpop.xlane.xlu2 %1631  ;;  %v1604_v23 = vpop.xlane.xlu0 %1603 }
 0x9c8   :  { %3618 = vset.pattern.permute.xlu1 %v6234_v55  ;;  %v5167_v52 = vsel %vm1803_vm13, %v5057_v9, %v1706_v34  ;;  %v1633_v28 = vcvt.f32.s32 %v1632_v22  ;;  %v1605_v24 = vcvt.f32.s32 %v1604_v23  ;;  %v1739_v34 = vsel %vm1723_vm6, %v1731_v48, %v1715_v47 }
 0x9c9   :  { %v5235_v11 = vsel %vm1803_vm13, %v5011_v57, %v1739_v34  ;;  %vm2168_vm6 = vcmask 392192  }
 0x9ca   :  { %v1636_v54 = vadd.s32 %v1635_v44, %v1633_v28  ;;  %v1608_v1 = vadd.s32 %v1607_v36, %v1605_v24 }
 0x9cc   :  { %v1696_v60 = vand.u32 127, %v1636_v54  ;;  %v1694_v29 = vand.u32 127, %v1608_v1  ;;  %3613 = vset.pattern.permute.xlu2 %v6224_v33  ;;  %v1712_v38 = vand.u32 4294967168, %v1636_v54  ;;  %v1710_v49 = vand.u32 4294967168, %v1608_v1 }
 0x9cd   :  { %1993 = vperm.xlu2 %3613, %v1804_v25  }
 0x9ce   :  { %v1704_v7 = vsub.s32 127, %v1696_v60  ;;  %v1702_v18 = vsub.s32 127, %v1694_v29  ;;  %v1728_v19 = vxor.u32 2147483647, %v1712_v38  ;;  %vm1720_vm1 = vcmp.lt.s32.totalorder %v1712_v38, 0 }
 0x9cf   :  { %v1688_v40 = vpop.xlane.xlu2 %1687  ;;  %vm1718_vm3 = vcmp.lt.s32.totalorder %v1710_v49, 0  ;;  %v1713_v29 = vand.u32 4294967168, %v5103_v46 }
 0x9d0   :  { %v5173_v27 = vsel %vm1803_vm13, %v5030_v62, %v1704_v7  ;;  %v5177_v9 = vsel %vm1803_vm13, %v5067_v20, %v1702_v18  ;;  %v1689_v10 = vcvt.f32.s32 %v1688_v40  ;;  %v1736_v12 = vsel %vm1720_vm1, %v1728_v19, %v1712_v38 }
 0x9d1   :  { %3036 = vperm.xlu0 %3616, %v5177_v9   ;;  %3062 = vperm.xlu1 %3618, %v5173_v27   ;;  %v1807_v31 = vsel %vm1803_vm13, %v5026_v43, %v1736_v12  ;;  %v1726_v43 = vxor.u32 2147483647, %v1710_v49  ;;  %v1729_v40 = vxor.u32 2147483647, %v1713_v29  ;;  %vm1721_vm7 = vcmp.lt.s32.totalorder %v1713_v29, 0 }
 0x9d2   :  { %v5181_v41 = vadd.s32 %v1691_v37, %v1689_v10  ;;  %vm2154_vm1 = vcmask 195584  }
 0x9d3   :  { %v1734_v32 = vsel %vm1718_vm3, %v1726_v43, %v1710_v49  ;;  %v1737_v46 = vsel %vm1721_vm7, %v1729_v40, %v1713_v29  ;;  %vm2163_vm3 = vcmask 326656   ;;  %vm2173_vm7 = vcmask 457728  }
 0x9d4   :  { %v1700_v30 = vand.u32 127, %v5181_v41  ;;  %v1805_v42 = vsel %vm1803_vm13, %v5071_v61, %v1734_v32 }
 0x9d5   :  { %3617 = vset.pattern.permute.xlu2 %v6234_v55 }
 0x9d6   :  { %v1708_v50 = vsub.s32 127, %v1700_v30  ;;  %3056 = vperm.xlu2 %3617, %v5177_v9  }
 0x9d7   :  { %v5186_v62 = vpop.permute.xlu2 %3039 }
 0x9d8   :  { %6236 = vst [vmem:[#allocation11_spill] sm:$0xff] %v5186_v62  ;;  %v5190_v20 = vsel %vm1803_vm13, %v5042_v0, %v1708_v50  ;;  %v5259_v50 = vsel %vm1803_vm13, %v4966_v56, %v1737_v46 }
 0x9d9   :  { %3042 = vperm.xlu0 %3616, %v5173_v27   ;;  %3619 = vset.pattern.permute.xlu1 %v6232_v53 }
 0x9da   :  { %3080 = vperm.xlu1 %3619, %v5177_v9  }
 0x9de   :  { %3620 = vset.pattern.permute.xlu2 %v6230_v59 }
 0x9df   :  { %3104 = vperm.xlu2 %3620, %v5177_v9   ;;  %v5197_v39 = vpop.permute.xlu2 %3077 }
 0x9e0   :  { %6237 = vst [vmem:[#allocation12_spill] sm:$0xff] %v5197_v39  ;;  %v1902_v22 = vpop.permute.xlu0 %1901 }
 0x9e1   :  { %3625 = vset.pattern.permute.xlu0 %v6226_v35  ;;  %v1910_v36 = vadd.f32 %v1902_v22, %v5235_v11 }
 0x9e2   :  { %1965 = vperm.xlu0 %3625, %v1807_v31   ;;  %3621 = vset.pattern.permute.xlu1 %v6226_v35 }
 0x9e3   :  { %v5202_v0 = vpop.permute.xlu1 %3033  ;;  %3128 = vperm.xlu1 %3621, %v5177_v9  }
 0x9e4   :  { %6238 = vst [vmem:[#allocation13_spill] sm:$0xff] %v5202_v0 }
 0x9e7   :  { %3110 = vperm.xlu2 %3620, %v5173_v27   ;;  %v5207_v13 = vpop.permute.xlu2 %3083 }
 0x9e8   :  { %6239 = vst [vmem:[#allocation14_spill] sm:$0xff] %v5207_v13 }
 0x9e9   :  { %v2022_v1 = vpop.permute.xlu0 %2021 }
 0x9ea   :  { %3629 = vset.pattern.permute.xlu0 %v3769_v17  ;;  %v2030_v56 = vadd.f32 %v2022_v1, %v5235_v11 }
 0x9eb   :  { %1885 = vperm.xlu0 %3629, %v1807_v31   ;;  %3134 = vperm.xlu1 %3621, %v5173_v27  }
 0x9ec   :  { %v5210_v63 = vpop.permute.xlu1 %3053 }
 0x9ed   :  { %6240 = vst [vmem:[#allocation15_spill] sm:$0xff] %v5210_v63 }
 0x9ef   :  { %3623 = vset.pattern.permute.xlu2 %v6232_v53  ;;  %v5214_v25 = vpop.permute.xlu2 %3131 }
 0x9f0   :  { %6241 = vst [vmem:[#allocation16_spill] sm:$0xff] %v5214_v25  ;;  %1925 = vperm.xlu2 %3623, %v1807_v31  }
 0x9f2   :  { %v5249_v7 = vpop.permute.xlu0 %1880 }
 0x9f3   :  { %3631 = vset.pattern.permute.xlu0 %v6232_v53  ;;  %3622 = vset.pattern.permute.xlu1 %v6234_v55 }
 0x9f4   :  { %1917 = vperm.xlu0 %3631, %v1805_v42   ;;  %1905 = vperm.xlu1 %3622, %v1807_v31  }
 0x9f5   :  { %v5220_v5 = vpop.permute.xlu1 %3101 }
 0x9f6   :  { %6242 = vst [vmem:[#allocation17_spill] sm:$0xff] %v5220_v5 }
 0x9f7   :  { %v5222_v8 = vpop.permute.xlu2 %3149 }
 0x9f8   :  { %6243 = vst [vmem:[#allocation18_spill] sm:$0xff] %v5222_v8  ;;  %3624 = vset.pattern.permute.xlu2 %v6230_v59 }
 0x9f9   :  { %1945 = vperm.xlu2 %3624, %v1807_v31  }
 0x9fb   :  { %v1894_v38 = vpop.permute.xlu0 %1893 }
 0x9fc   :  { %3632 = vset.pattern.permute.xlu0 %v6230_v59  ;;  %3626 = vset.pattern.permute.xlu1 %v6222_v26  ;;  %v1908_v49 = vadd.f32 %v1894_v38, %v5259_v50  ;;  %v1714_v38 = vand.u32 4294967168, %v5158_v4 }
 0x9fd   :  { %v5226_v15 = vpop.permute.xlu1 %3107  ;;  %1937 = vperm.xlu0 %3632, %v1805_v42   ;;  %1985 = vperm.xlu1 %3626, %v1807_v31  }
 0x9fe   :  { %6244 = vst [vmem:[#allocation19_spill] sm:$0xff] %v5226_v15  ;;  %vm1722_vm11 = vcmp.lt.s32.totalorder %v1714_v38, 0 }
 0x9ff   :  { %v1922_v61 = vpop.permute.xlu2 %1921 }
 0xa00   :  { %v1930_v18 = vadd.f32 %v1922_v61, %v5235_v11 }
 0xa01   :  { %3628 = vset.pattern.permute.xlu2 %v6228_v58 }
 0xa02   :  { %2025 = vperm.xlu2 %3628, %v1807_v31  }
 0xa05   :  { %v1942_v44 = vpop.permute.xlu1 %1941  ;;  %3634 = vset.pattern.permute.xlu0 %v6222_v26  ;;  %3627 = vset.pattern.permute.xlu1 %v6224_v33 }
 0xa06   :  { %1977 = vperm.xlu0 %3634, %v1805_v42   ;;  %2005 = vperm.xlu1 %3627, %v1807_v31   ;;  %v1950_v54 = vadd.f32 %v1942_v44, %v5235_v11 }
 0xa07   :  { %v1982_v23 = vpop.permute.xlu2 %1981 }
 0xa08   :  { %v1990_v16 = vadd.f32 %v1982_v23, %v5235_v11  ;;  %v1716_v23 = vand.u32 4294967168, %v5181_v41 }
 0xa0a   :  { %2040 = vrot.lane.b32.xlu2 %v1910_v36, %s3768_s30  ;;  %vm1724_vm10 = vcmp.lt.s32.totalorder %v1716_v23, 0 }
 0xa0b   :  { %3639 = vset.pattern.permute.xlu2 %v6222_v26 }
 0xa0e   :  { %v1962_v28 = vpop.permute.xlu1 %1961  ;;  %3636 = vset.pattern.permute.xlu0 %v6228_v58  ;;  %3630 = vset.pattern.permute.xlu1 %v6234_v55 }
 0xa0f   :  { %2017 = vperm.xlu0 %3636, %v1805_v42   ;;  %1897 = vperm.xlu1 %3630, %v1805_v42   ;;  %v2002_v24 = vpop.permute.xlu2 %2001  ;;  %v1970_v19 = vadd.f32 %v1962_v28, %v5235_v11  ;;  %v1732_v28 = vxor.u32 2147483647, %v1716_v23 }
 0xa10   :  { %v2010_v10 = vadd.f32 %v2002_v24, %v5235_v11 }
 0xa11   :  { %v1740_v1 = vsel %vm1724_vm10, %v1732_v28, %v1716_v23 }
 0xa12   :  { %2072 = vrot.lane.b32.xlu2 %v1950_v54, %s3777_s4 }
 0xa17   :  { %3637 = vset.pattern.permute.xlu0 %v3769_v17  ;;  %3633 = vset.pattern.permute.xlu1 %v6226_v35  ;;  %v1914_v57 = vpop.permute.xlu2 %1913  ;;  %v1934_v60 = vpop.permute.xlu1 %1933 }
 0xa18   :  { %1875 = vperm.xlu0 %3637, %v1805_v42   ;;  %1957 = vperm.xlu1 %3633, %v1805_v42   ;;  %v1948_v61 = vadd.f32 %v1934_v60, %v5259_v50 }
 0xa1a   :  { %2104 = vrot.lane.b32.xlu2 %v1990_v16, %s3778_s5 }
 0xa1f   :  { %v1954_v37 = vpop.permute.xlu2 %1953 }
 0xa20   :  { %3635 = vset.pattern.permute.xlu1 %v6224_v33  ;;  %2056 = vrot.lane.b32.xlu0 %v1930_v18, %s3779_s0  ;;  %v1974_v30 = vpop.permute.xlu1 %1973  ;;  %v1968_v12 = vadd.f32 %v1954_v37, %v5259_v50 }
 0xa21   :  { %1997 = vperm.xlu1 %3635, %v1805_v42   ;;  %3642 = vset.pattern.permute.xlu0 %v6224_v33  ;;  %v1928_v42 = vadd.f32 %v1914_v57, %v5259_v50  ;;  %v1988_v48 = vadd.f32 %v1974_v30, %v5259_v50  ;;  %v5295_v57 = vsel %vm1803_vm13, %v5048_v3, %v1740_v1 }
 0xa22   :  { %2120 = vrot.lane.b32.xlu2 %v2010_v10, %s3780_s12 }
 0xa27   :  { %v1994_v31 = vpop.permute.xlu2 %1993 }
 0xa28   :  { %2088 = vrot.lane.b32.xlu0 %v1970_v19, %s3781_s13  ;;  %v2008_v22 = vadd.f32 %v1994_v31, %v5259_v50 }
 0xa29   :  { %2084 = vrot.lane.b32.xlu1 %v1968_v12, %s3781_s13  ;;  %v2014_v43 = vpop.permute.xlu1 %2013 }
 0xa2a   :  { %2036 = vrot.lane.b32.xlu2 %v1908_v49, %s3768_s30  ;;  %3638 = vset.pattern.permute.xlu1 %v6222_v26  ;;  %v2028_v32 = vadd.f32 %v2014_v43, %v5259_v50  ;;  %v1730_v43 = vxor.u32 2147483647, %v1714_v38 }
 0xa30   :  { %v5271_v47 = vpop.permute.xlu2 %3056  ;;  %2136 = vrot.lane.b32.xlu0 %v2030_v56, %s3782_s14  ;;  %v1738_v56 = vsel %vm1722_vm11, %v1730_v43, %v1714_v38  ;;  %vm2203_vm11 = vcmask 523264  }
 0xa31   :  { %2132 = vrot.lane.b32.xlu1 %v2028_v32, %s3782_s14  ;;  %v1809_v32 = vsel %vm1803_vm13, %v5061_v45, %v1738_v56 }
 0xa32   :  { %2052 = vrot.lane.b32.xlu2 %v1928_v42, %s3779_s0  ;;  %v5282_v44 = vpop.permute.xlu1 %1870 }
 0xa38   :  { %2068 = vrot.lane.b32.xlu0 %v1948_v61, %s3777_s4 }
 0xa39   :  { %v5279_v34 = vpop.permute.xlu2 %3104 }
 0xa3a   :  { %2100 = vrot.lane.b32.xlu2 %v1988_v48, %s3778_s5 }
 0xa40   :  { %2116 = vrot.lane.b32.xlu0 %v2008_v22, %s3780_s12 }
 0xa41   :  { %v5287_v36 = vpop.permute.xlu2 %3110 }
 0xa43   :  { %v5289_v24 = vpop.permute.xlu0 %3036  ;;  %v5291_v54 = vpop.permute.xlu1 %3062 }
 0xa4a   :  { %v1926_v16 = vpop.permute.xlu2 %1925 }
 0xa4b   :  { %v1931_v60 = vadd.f32 %v1926_v16, %v5295_v57  ;;  %v5298_v29 = vpop.permute.xlu0 %3042 }
 0xa4c   :  { %v5300_v41 = vpop.permute.xlu1 %3080 }
 0xa4d   :  { %2058 = vrot.lane.b32.xlu2 %v1931_v60, %s3779_s0 }
 0xa53   :  { %v1946_v10 = vpop.permute.xlu2 %1945 }
 0xa54   :  { %v1966_v18 = vpop.permute.xlu0 %1965  ;;  %v1951_v4 = vadd.f32 %v1946_v10, %v5295_v57 }
 0xa55   :  { %v1971_v40 = vadd.f32 %v1966_v18, %v5295_v57  ;;  %v5304_v37 = vpop.permute.xlu1 %3128 }
 0xa57   :  { %2090 = vrot.lane.b32.xlu2 %v1971_v40, %s3781_s13 }
 0xa5c   :  { %v2026_v46 = vpop.permute.xlu2 %2025 }
 0xa5d   :  { %v5307_v30 = vpop.permute.xlu0 %1885  ;;  %v5309_v3 = vpop.permute.xlu1 %3134  ;;  %v2031_v19 = vadd.f32 %v2026_v46, %v5295_v57 }
 0xa5f   :  { %3158 = vperm.xlu2 %3639, %v5173_v27  }
 0xa64   :  { %v2041_v22 = vpop.permute.xlu2 %2040 }
 0xa66   :  { %v1918_v12 = vpop.permute.xlu0 %1917  ;;  %v1906_v31 = vpop.permute.xlu1 %1905 }
 0xa67   :  { %v1911_v49 = vadd.f32 %v1906_v31, %v5295_v57  ;;  %2138 = vrot.lane.b32.xlu2 %v2031_v19, %s3782_s14 }
 0xa68   :  { %3641 = vset.pattern.permute.xlu2 %v6224_v33 }
 0xa69   :  { %2042 = vrot.lane.b32.xlu1 %v1911_v49, %s3768_s30 }
 0xa6c   :  { %v2073_v16 = vpop.permute.xlu2 %2072 }
 0xa6f   :  { %v1938_v42 = vpop.permute.xlu0 %1937  ;;  %v1986_v61 = vpop.permute.xlu1 %1985 }
 0xa70   :  { %v1949_v48 = vadd.f32 %v1938_v42, %v1809_v32  ;;  %v1991_v23 = vadd.f32 %v1986_v61, %v5295_v57  ;;  %v1890_v61 = vadd.f32 %v5249_v7, %v5235_v11 }
 0xa71   :  { %2074 = vrot.lane.b32.xlu1 %v1951_v4, %s3777_s4 }
 0xa72   :  { %2070 = vrot.lane.b32.xlu2 %v1949_v48, %s3777_s4  ;;  %v1929_v48 = vadd.f32 %v1918_v12, %v1809_v32 }
 0xa74   :  { %v2105_v40 = vpop.permute.xlu2 %2104 }
 0xa78   :  { %v1978_v28 = vpop.permute.xlu0 %1977  ;;  %v2006_v1 = vpop.permute.xlu1 %2005 }
 0xa79   :  { %2106 = vrot.lane.b32.xlu1 %v1991_v23, %s3778_s5  ;;  %v2011_v60 = vadd.f32 %v2006_v1, %v5295_v57  ;;  %v2147_v23 = vsel %vm2144_vm14, %v1890_v61, %v2041_v22 }
 0xa7c   :  { %v2121_v43 = vpop.permute.xlu2 %2120 }
 0xa81   :  { %v2018_v45 = vpop.permute.xlu0 %2017  ;;  %2122 = vrot.lane.b32.xlu1 %v2011_v60, %s3780_s12  ;;  %v1898_v18 = vpop.permute.xlu1 %1897 }
 0xa82   :  { %v1909_v31 = vadd.f32 %v1898_v18, %v1809_v32  ;;  %v2029_v56 = vadd.f32 %v2018_v45, %v1809_v32 }
 0xa84   :  { %v2037_v18 = vpop.permute.xlu2 %2036 }
 0xa89   :  { %3155 = vperm.xlu1 %3638, %v5123_v14  }
 0xa8a   :  { %v1876_v10 = vpop.permute.xlu0 %1875  ;;  %v1958_v46 = vpop.permute.xlu1 %1957 }
 0xa8b   :  { %v5328_v38 = vadd.f32 %v1876_v10, %v1809_v32  ;;  %v1969_v19 = vadd.f32 %v1958_v46, %v1809_v32  ;;  %v1989_v46 = vadd.f32 %v1978_v28, %v1809_v32 }
 0xa8d   :  { %2086 = vrot.lane.b32.xlu0 %v1969_v19, %s3781_s13  ;;  %v2053_v19 = vpop.permute.xlu2 %2052 }
 0xa91   :  { %2038 = vrot.lane.b32.xlu1 %v1909_v31, %s3768_s30 }
 0xa92   :  { %v2057_v49 = vpop.permute.xlu0 %2056  ;;  %3640 = vset.pattern.permute.xlu1 %v6224_v33 }
 0xa93   :  { %v1998_v4 = vpop.permute.xlu1 %1997  ;;  %v2152_v1 = vsel %vm2149_vm15, %v2147_v23, %v2057_v49 }
 0xa94   :  { %v2009_v42 = vadd.f32 %v1998_v4, %v1809_v32  ;;  %v2157_v45 = vsel %vm2154_vm1, %v2152_v1, %v2073_v16  ;;  %v1888_v16 = vadd.f32 %v5282_v44, %v5259_v50 }
 0xa95   :  { %2134 = vrot.lane.b32.xlu0 %v2029_v56, %s3782_s14 }
 0xa96   :  { %2118 = vrot.lane.b32.xlu2 %v2009_v42, %s3780_s12  ;;  %v2145_v32 = vsel %vm2144_vm14, %v1888_v16, %v2037_v18  ;;  %v5352_v42 = vsub.s32 63, %v3955_v51 }
 0xa99   :  { %2054 = vrot.lane.b32.xlu1 %v1929_v48, %s3779_s0  ;;  %v2101_v48 = vpop.permute.xlu2 %2100 }
 0xa9a   :  { %v2089_v60 = vpop.permute.xlu0 %2088 }
 0xa9b   :  { %v2161_v10 = vsel %vm53_vm0, %v2157_v45, %v2089_v60  ;;  %v2085_v49 = vpop.permute.xlu1 %2084 }
 0xa9c   :  { %v2166_v11 = vsel %vm2163_vm3, %v2161_v10, %v2105_v40  ;;  %v2150_v40 = vsel %vm2149_vm15, %v2145_v32, %v2053_v19 }
 0xa9d   :  { %v2171_v12 = vsel %vm2168_vm6, %v2166_v11, %v2121_v43 }
 0xaa1   :  { %2102 = vrot.lane.b32.xlu1 %v1989_v46, %s3778_s5 }
 0xaa2   :  { %v2137_v7 = vpop.permute.xlu0 %2136 }
 0xaa3   :  { %v2176_v22 = vsel %vm2173_vm7, %v2171_v12, %v2137_v7  ;;  %v2133_v1 = vpop.permute.xlu1 %2132 }
 0xaa4   :  { %v2188_v31 = vxor.u32 2147483647, %v2176_v22  ;;  %vm2184_vm10 = vcmp.lt.s32.totalorder %v2176_v22, 0 }
 0xaa6   :  { %v2192_v56 = vsel %vm2184_vm10, %v2188_v31, %v2176_v22 }
 0xaa7   :  { %v2196_v43 = vand.u32 4294967232, %v2192_v56  ;;  %v2059_v16 = vpop.permute.xlu2 %2058 }
 0xaa9   :  { %v5356_v23 = vor.u32 %v5352_v42, %v2196_v43 }
 0xaaa   :  { %v2069_v28 = vpop.permute.xlu0 %2068 }
 0xaab   :  { %v2155_v4 = vsel %vm2154_vm1, %v2150_v40, %v2069_v28  ;;  %v5363_v51 = vsel %vm2203_vm11, %v5356_v23, 2147483648  ;;  %v1891_v40 = vadd.f32 %v5307_v30, %v5295_v57 }
 0xaac   :  { %v2159_v61 = vsel %vm53_vm0, %v2155_v4, %v2085_v49  ;;  %v2236_v11 = vshra.s32 %v5363_v51, 16 }
 0xaad   :  { %v2164_v44 = vsel %vm2163_vm3, %v2159_v61, %v2101_v48 }
 0xaae   :  { %v2238_v22 = vcvt.s32.f32 %v2236_v11 }
 0xab1   :  { %v2091_v32 = vpop.permute.xlu2 %2090 }
 0xab2   :  { %v2117_v50 = vpop.permute.xlu0 %2116 }
 0xab3   :  { %v2169_v60 = vsel %vm2168_vm6, %v2164_v44, %v2117_v50 }
 0xab4   :  { %v2174_v45 = vsel %vm2173_vm7, %v2169_v60, %v2133_v1 }
 0xab5   :  { %vm2182_vm10 = vcmp.lt.s32.totalorder %v2174_v45, 0  ;;  %v2186_v18 = vxor.u32 2147483647, %v2174_v45 }
 0xab7   :  { %v2190_v10 = vsel %vm2182_vm10, %v2186_v18, %v2174_v45 }
 0xab8   :  { %v2194_v46 = vand.u32 4294967232, %v2190_v10 }
 0xab9   :  { %v5381_v56 = vpop.permute.xlu2 %3158 }
 0xaba   :  { %v5367_v7 = vor.u32 %v5352_v42, %v2194_v46 }
 0xabc   :  { %v5371_v12 = vsel %vm2203_vm11, %v5367_v7, 2147483648 }
 0xabd   :  { %v2206_v19 = vshra.s32 %v5371_v12, 16 }
 0xabf   :  { %2239 = vmax.xlane.f32.xlu2 %v2238_v22  ;;  %v5374_v31 = vcvt.s32.f32 %v2206_v19 }
 0xac1   :  { %2209 = vmax.xlane.f32.xlu0 %v5374_v31  ;;  %v2139_v60 = vpop.permute.xlu2 %2138 }
 0xad5   :  { %3179 = vperm.xlu0 %3642, %v5123_v14  }
 0xadb   :  { %v2043_v49 = vpop.permute.xlu1 %2042 }
 0xadc   :  { %v2148_v4 = vsel %vm2144_vm14, %v1891_v40, %v2043_v49 }
 0xadd   :  { %3645 = vset.pattern.permute.xlu0 %v6228_v58  ;;  %v2153_v61 = vsel %vm2149_vm15, %v2148_v4, %v2059_v16  ;;  %v2071_v4 = vpop.permute.xlu2 %2070 }
 0xae3   :  { %v2075_v28 = vpop.permute.xlu1 %2074 }
 0xae4   :  { %v2158_v48 = vsel %vm2154_vm1, %v2153_v61, %v2075_v28 }
 0xae5   :  { %v2162_v50 = vsel %vm53_vm0, %v2158_v48, %v2091_v32 }
 0xaeb   :  { %v2107_v43 = vpop.permute.xlu1 %2106 }
 0xaec   :  { %v2167_v44 = vsel %vm2163_vm3, %v2162_v50, %v2107_v43 }
 0xaf3   :  { %v2123_v1 = vpop.permute.xlu1 %2122 }
 0xaf4   :  { %v2172_v45 = vsel %vm2168_vm6, %v2167_v44, %v2123_v1  ;;  %v2119_v1 = vpop.permute.xlu2 %2118 }
 0xaf5   :  { %v2177_v18 = vsel %vm2173_vm7, %v2172_v45, %v2139_v60 }
 0xaf6   :  { %vm2185_vm10 = vcmp.lt.s32.totalorder %v2177_v18, 0  ;;  %v2189_v57 = vxor.u32 2147483647, %v2177_v18 }
 0xaf8   :  { %v2193_v30 = vsel %vm2185_vm10, %v2189_v57, %v2177_v18 }
 0xaf9   :  { %v2197_v10 = vand.u32 4294967232, %v2193_v30 }
 0xafb   :  { %v5391_v46 = vor.u32 %v5352_v42, %v2197_v10  ;;  %v5393_v11 = vpop.permute.xlu1 %3155 }
 0xafc   :  { %6245 = vst [vmem:[#allocation20_spill] sm:$0xff] %v5393_v11 }
 0xafd   :  { %v2249_v19 = vsel %vm2203_vm11, %v5391_v46, 2147483648 }
 0xafe   :  { %v2251_v16 = vshra.s32 %v2249_v19, 16 }
 0xaff   :  { %v2087_v28 = vpop.permute.xlu0 %2086 }
 0xb00   :  { %v2253_v49 = vcvt.s32.f32 %v2251_v16 }
 0xb02   :  { %2254 = vmax.xlane.f32.xlu1 %v2253_v49 }
 0xb03   :  { %v2039_v32 = vpop.permute.xlu1 %2038 }
 0xb04   :  { %v2146_v43 = vsel %vm2144_vm14, %v5328_v38, %v2039_v32 }
 0xb07   :  { %v2135_v45 = vpop.permute.xlu0 %2134 }
 0xb0b   :  { %v2055_v40 = vpop.permute.xlu1 %2054 }
 0xb0c   :  { %v2151_v61 = vsel %vm2149_vm15, %v2146_v43, %v2055_v40 }
 0xb0d   :  { %v2156_v48 = vsel %vm2154_vm1, %v2151_v61, %v2071_v4  ;;  %v2235_v4 = vand.u32 65535, %v5363_v51  ;;  %v2250_v51 = vand.u32 65535, %v2249_v19 }
 0xb0e   :  { %v2160_v50 = vsel %vm53_vm0, %v2156_v48, %v2087_v28 }
 0xb0f   :  { %v2237_v61 = vcvt.s32.f32 %v2235_v4 }
 0xb13   :  { %v2103_v44 = vpop.permute.xlu1 %2102 }
 0xb14   :  { %v2165_v60 = vsel %vm2163_vm3, %v2160_v50, %v2103_v44  ;;  %v2205_v50 = vand.u32 65535, %v5371_v12 }
 0xb15   :  { %v2170_v18 = vsel %vm2168_vm6, %v2165_v60, %v2119_v1 }
 0xb16   :  { %v2175_v57 = vsel %vm2173_vm7, %v2170_v18, %v2135_v45  ;;  %v2207_v44 = vcvt.s32.f32 %v2205_v50  ;;  %v2252_v45 = vcvt.s32.f32 %v2250_v51 }
 0xb17   :  { %vm2183_vm10 = vcmp.lt.s32.totalorder %v2175_v57, 0  ;;  %v2187_v30 = vxor.u32 2147483647, %v2175_v57 }
 0xb19   :  { %v2191_v10 = vsel %vm2183_vm10, %v2187_v30, %v2175_v57 }
 0xb1a   :  { %v2195_v16 = vand.u32 4294967232, %v2191_v10 }
 0xb1c   :  { %v5406_v38 = vor.u32 %v5352_v42, %v2195_v16 }
 0xb1e   :  { %v2219_v32 = vsel %vm2203_vm11, %v5406_v38, 2147483648 }
 0xb1f   :  { %v2221_v28 = vshra.s32 %v2219_v32, 16  ;;  %v2220_v18 = vand.u32 65535, %v2219_v32 }
 0xb21   :  { %v2223_v40 = vcvt.s32.f32 %v2221_v28  ;;  %v2222_v30 = vcvt.s32.f32 %v2220_v18 }
 0xb23   :  { %2224 = vmax.xlane.f32.xlu2 %v2223_v40 }
 0xb32   :  { %v2240_v43 = vpop.xlane.xlu2 %2239 }
 0xb33   :  { %vm2241_vm0 = vcmp.eq.f32.partialorder %v2238_v22, %v2240_v43  ;;  %v2246_v16 = vcvt.f32.s32 %v2240_v43 }
 0xb34   :  { %v2242_v48 = vsel %vm2241_vm0, %v2237_v61, -inf  ;;  %v2210_v42 = vpop.xlane.xlu0 %2209 }
 0xb35   :  { %2243 = vmax.xlane.f32.xlu1 %v2242_v48  ;;  %vm2211_vm1 = vcmp.eq.f32.partialorder %v5374_v31, %v2210_v42  ;;  %v2247_v12 = vshll.u32 %v2246_v16, 16  ;;  %v2216_v43 = vcvt.f32.s32 %v2210_v42 }
 0xb36   :  { %v2212_v1 = vsel %vm2211_vm1, %v2207_v44, -inf }
 0xb37   :  { %v2217_v50 = vshll.u32 %v2216_v43, 16 }
 0xb3b   :  { %3176 = vperm.xlu2 %3641, %v5177_v9  }
 0xb43   :  { %3643 = vset.pattern.permute.xlu2 %v6228_v58 }
 0xb47   :  { %v5436_v18 = vpop.permute.xlu0 %3179 }
 0xb48   :  { %6246 = vst [vmem:[#allocation21_spill] sm:$0xff] %v5436_v18 }
 0xb4e   :  { %3173 = vperm.xlu1 %3640, %v5117_v6  }
 0xb64   :  { %2213 = vmax.xlane.f32.xlu2 %v2212_v1 }
 0xb75   :  { %v2255_v60 = vpop.xlane.xlu1 %2254 }
 0xb76   :  { %vm2256_vm3 = vcmp.eq.f32.partialorder %v2253_v49, %v2255_v60  ;;  %v2261_v42 = vcvt.f32.s32 %v2255_v60 }
 0xb77   :  { %v2257_v22 = vsel %vm2256_vm3, %v2252_v45, -inf }
 0xb78   :  { %2258 = vmax.xlane.f32.xlu0 %v2257_v22 }
 0xb96   :  { %v2225_v57 = vpop.xlane.xlu2 %2224 }
 0xb97   :  { %vm2226_vm6 = vcmp.eq.f32.partialorder %v2223_v40, %v2225_v57  ;;  %v2231_v60 = vcvt.f32.s32 %v2225_v57 }
 0xb98   :  { %v2227_v10 = vsel %vm2226_vm6, %v2222_v30, -inf }
 0xb99   :  { %2228 = vmax.xlane.f32.xlu1 %v2227_v10  ;;  %v2262_v10 = vshll.u32 %v2261_v42, 16 }
 0xb9e   :  { %v5425_v40 = vpop.permute.xlu2 %3176 }
 0xba8   :  { %v2244_v28 = vpop.xlane.xlu1 %2243 }
 0xba9   :  { %v2245_v4 = vcvt.f32.s32 %v2244_v28 }
 0xbab   :  { %v5416_v31 = vadd.s32 %v2247_v12, %v2245_v4 }
 0xbad   :  { %vm2294_vm7 = vcmp.eq.s32.totalorder %v5356_v23, %v5416_v31 }
 0xbae   :  { %v5421_v19 = vsel %vm2294_vm7, 2147483648, %v5356_v23 }
 0xbaf   :  { %v2330_v49 = vsel %vm2203_vm11, %v5421_v19, 2147483648 }
 0xbb0   :  { %v2332_v32 = vshra.s32 %v2330_v49, 16 }
 0xbb2   :  { %v2334_v61 = vcvt.s32.f32 %v2332_v32 }
 0xbb4   :  { %2335 = vmax.xlane.f32.xlu0 %v2334_v61 }
 0xbc0   :  { %v5447_v43 = vpop.permute.xlu1 %3173 }
 0xbc1   :  { %6247 = vst [vmem:[#allocation22_spill] sm:$0xff] %v5447_v43 }
 0xbd7   :  { %v2214_v48 = vpop.xlane.xlu2 %2213 }
 0xbd8   :  { %v2215_v44 = vcvt.f32.s32 %v2214_v48 }
 0xbda   :  { %v5427_v1 = vadd.s32 %v2217_v50, %v2215_v44  ;;  %v2232_v50 = vshll.u32 %v2231_v60, 16 }
 0xbdc   :  { %vm2292_vm10 = vcmp.eq.s32.totalorder %v5367_v7, %v5427_v1 }
 0xbdd   :  { %v5432_v23 = vsel %vm2292_vm10, 2147483648, %v5367_v7 }
 0xbde   :  { %v2300_v51 = vsel %vm2203_vm11, %v5432_v23, 2147483648 }
 0xbdf   :  { %v2302_v45 = vshra.s32 %v2300_v51, 16 }
 0xbe1   :  { %v2304_v22 = vcvt.s32.f32 %v2302_v45 }
 0xbe3   :  { %2305 = vmax.xlane.f32.xlu1 %v2304_v22 }
 0xbeb   :  { %v2259_v30 = vpop.xlane.xlu0 %2258 }
 0xbec   :  { %v2260_v16 = vcvt.f32.s32 %v2259_v30 }
 0xbee   :  { %v5438_v28 = vadd.s32 %v2262_v10, %v2260_v16  ;;  %v2331_v16 = vand.u32 65535, %v2330_v49 }
 0xbf0   :  { %vm2295_vm0 = vcmp.eq.s32.totalorder %v5391_v46, %v5438_v28  ;;  %v2333_v57 = vcvt.s32.f32 %v2331_v16 }
 0xbf1   :  { %v5443_v7 = vsel %vm2295_vm0, 2147483648, %v5391_v46 }
 0xbf2   :  { %v2345_v12 = vsel %vm2203_vm11, %v5443_v7, 2147483648 }
 0xbf3   :  { %v2347_v4 = vshra.s32 %v2345_v12, 16  ;;  %v2346_v26 = vand.u32 65535, %v2345_v12 }
 0xbf5   :  { %v2349_v32 = vcvt.s32.f32 %v2347_v4  ;;  %v2348_v35 = vcvt.s32.f32 %v2346_v26 }
 0xbf7   :  { %2350 = vmax.xlane.f32.xlu2 %v2349_v32 }
 0xc0c   :  { %v2229_v48 = vpop.xlane.xlu1 %2228 }
 0xc0d   :  { %v2230_v44 = vcvt.f32.s32 %v2229_v48  ;;  %v2301_v48 = vand.u32 65535, %v2300_v51 }
 0xc0f   :  { %v5449_v45 = vadd.s32 %v2232_v50, %v2230_v44  ;;  %v2303_v44 = vcvt.s32.f32 %v2301_v48 }
 0xc11   :  { %vm2293_vm1 = vcmp.eq.s32.totalorder %v5406_v38, %v5449_v45  ;;  %v2273_v59 = vand.u32 4294967232, %v5449_v45 }
 0xc12   :  { %v5454_v46 = vsel %vm2293_vm1, 2147483648, %v5406_v38 }
 0xc13   :  { %v2315_v42 = vsel %vm2203_vm11, %v5454_v46, 2147483648 }
 0xc14   :  { %v2317_v30 = vshra.s32 %v2315_v42, 16 }
 0xc16   :  { %v2319_v10 = vcvt.s32.f32 %v2317_v30 }
 0xc18   :  { %2320 = vmax.xlane.f32.xlu0 %v2319_v10 }
 0xc27   :  { %v2336_v4 = vpop.xlane.xlu0 %2335 }
 0xc28   :  { %vm2337_vm3 = vcmp.eq.f32.partialorder %v2334_v61, %v2336_v4  ;;  %v2316_v61 = vand.u32 65535, %v2315_v42  ;;  %v2342_v26 = vcvt.f32.s32 %v2336_v4 }
 0xc29   :  { %v2338_v60 = vsel %vm2337_vm3, %v2333_v57, -inf  ;;  %v2266_v57 = vand.u32 63, %v5416_v31 }
 0xc2a   :  { %2339 = vmax.xlane.f32.xlu2 %v2338_v60  ;;  %v2343_v30 = vshll.u32 %v2342_v26, 16 }
 0xc42   :  { %3197 = vperm.xlu2 %3643, %v5117_v6  }
 0xc56   :  { %v2306_v50 = vpop.xlane.xlu1 %2305 }
 0xc57   :  { %vm2307_vm6 = vcmp.eq.f32.partialorder %v2304_v22, %v2306_v50  ;;  %v2318_v22 = vcvt.s32.f32 %v2316_v61 }
 0xc58   :  { %v2308_v38 = vsel %vm2307_vm6, %v2303_v44, -inf }
 0xc59   :  { %2309 = vmax.xlane.f32.xlu0 %v2308_v38  ;;  %v2270_v38 = vsub.s32 63, %v2266_v57 }
 0xc6a   :  { %v5459_v33 = vpop.xlane.xlu2 %2350 }
 0xc6b   :  { %vm2352_vm7 = vcmp.eq.f32.partialorder %v2349_v32, %v5459_v33 }
 0xc6c   :  { %v2353_v49 = vsel %vm2352_vm7, %v2348_v35, -inf  ;;  %v2274_v35 = vand.u32 4294967232, %v5416_v31 }
 0xc6d   :  { %2354 = vmax.xlane.f32.xlu1 %v2353_v49  ;;  %3206 = vperm.xlu0 %3645, %v5173_v27  }
 0xc6e   :  { %v2282_v48 = vxor.u32 2147483647, %v2274_v35  ;;  %vm2278_vm1 = vcmp.lt.s32.totalorder %v2274_v35, 0 }
 0xc70   :  { %v2286_v61 = vsel %vm2278_vm1, %v2282_v48, %v2274_v35  ;;  %v2264_v48 = vand.u32 63, %v5427_v1 }
 0xc75   :  { %3646 = vset.pattern.permute.xlu0 %v6234_v55 }
 0xc86   :  { %3182 = vperm.xlu1 %3640, %v5173_v27  }
 0xc8b   :  { %v5465_v51 = vpop.xlane.xlu0 %2320 }
 0xc8c   :  { %vm2322_vm10 = vcmp.eq.f32.partialorder %v2319_v10, %v5465_v51 }
 0xc8d   :  { %v2323_v12 = vsel %vm2322_vm10, %v2318_v22, -inf }
 0xc8e   :  { %2324 = vmax.xlane.f32.xlu2 %v2323_v12  ;;  %3644 = vset.pattern.permute.xlu1 %v6228_v58 }
 0xc9d   :  { %v2340_v32 = vpop.xlane.xlu2 %2339 }
 0xc9e   :  { %v2341_v16 = vcvt.f32.s32 %v2340_v32 }
 0xca0   :  { %v2344_v60 = vadd.s32 %v2343_v30, %v2341_v16  ;;  %v2272_v16 = vand.u32 4294967232, %v5427_v1 }
 0xca2   :  { %v2362_v42 = vand.u32 63, %v2344_v60  ;;  %v2370_v44 = vand.u32 4294967232, %v2344_v60  ;;  %vm2390_vm0 = vcmp.eq.s32.totalorder %v5421_v19, %v2344_v60  ;;  %vm2276_vm7 = vcmp.lt.s32.totalorder %v2272_v16, 0 }
 0xca3   :  { %v5473_v4 = vsel %vm2390_vm0, 2147483648, %v5421_v19  ;;  %v2312_v19 = vcvt.f32.s32 %v2306_v50 }
 0xca4   :  { %v2366_v10 = vsub.s32 63, %v2362_v42  ;;  %vm2374_vm3 = vcmp.lt.s32.totalorder %v2370_v44, 0  ;;  %v2378_v49 = vxor.u32 2147483647, %v2370_v44  ;;  %v5484_v26 = vsel %vm2203_vm11, %v5473_v4, 2147483648 }
 0xca5   :  { %v2428_v32 = vshra.s32 %v5484_v26, 16  ;;  %v2313_v57 = vshll.u32 %v2312_v19, 16 }
 0xca6   :  { %v2382_v22 = vsel %vm2374_vm3, %v2378_v49, %v2370_v44  ;;  %v5476_v12 = vsel %vm1749_vm5, %v2270_v38, %v2366_v10  ;;  %3203 = vperm.xlu2 %3643, %v5123_v14   ;;  %v2280_v44 = vxor.u32 2147483647, %v2272_v16  ;;  %v2268_v49 = vsub.s32 63, %v2264_v48 }
 0xca7   :  { %v5480_v31 = vsel %vm1749_vm5, %v2286_v61, %v2382_v22  ;;  %v5487_v30 = vcvt.s32.f32 %v2428_v32 }
 0xca8   :  { %v2284_v19 = vsel %vm2276_vm7, %v2280_v44, %v2272_v16  ;;  %v2267_v16 = vand.u32 63, %v5438_v28  ;;  %vm2277_vm7 = vcmp.lt.s32.totalorder %v2273_v59, 0 }
 0xcae   :  { %3648 = vset.pattern.permute.xlu2 %v3769_v17 }
 0xcb0   :  { %2431 = vmax.xlane.f32.xlu1 %v5487_v30 }
 0xcc9   :  { %3200 = vperm.xlu1 %3644, %v5177_v9  }
 0xccc   :  { %v2310_v35 = vpop.xlane.xlu0 %2309 }
 0xccd   :  { %v2311_v60 = vcvt.f32.s32 %v2310_v35 }
 0xccf   :  { %v2314_v42 = vadd.s32 %v2313_v57, %v2311_v60 }
 0xcd1   :  { %v2360_v38 = vand.u32 63, %v2314_v42  ;;  %v2368_v10 = vand.u32 4294967232, %v2314_v42  ;;  %vm2388_vm6 = vcmp.eq.s32.totalorder %v5432_v23, %v2314_v42  ;;  %3647 = vset.pattern.permute.xlu1 %v3769_v17  ;;  %v2275_v42 = vand.u32 4294967232, %v5438_v28 }
 0xcd2   :  { %v5497_v50 = vsel %vm2388_vm6, 2147483648, %v5432_v23  ;;  %v2357_v23 = vcvt.f32.s32 %v5459_v33 }
 0xcd3   :  { %v2364_v61 = vsub.s32 63, %v2360_v38  ;;  %vm2372_vm10 = vcmp.lt.s32.totalorder %v2368_v10, 0  ;;  %v2376_v22 = vxor.u32 2147483647, %v2368_v10  ;;  %v5501_v32 = vsel %vm2203_vm11, %v5497_v50, 2147483648 }
 0xcd4   :  { %v2398_v1 = vshra.s32 %v5501_v32, 16  ;;  %v2358_v38 = vshll.u32 %v2357_v23, 16  ;;  %vm2279_vm1 = vcmp.lt.s32.totalorder %v2275_v42, 0 }
 0xcd5   :  { %v2380_v35 = vsel %vm2372_vm10, %v2376_v22, %v2368_v10  ;;  %v5505_v57 = vsel %vm1749_vm5, %v2268_v49, %v2364_v61  ;;  %v2283_v10 = vxor.u32 2147483647, %v2275_v42  ;;  %v2271_v22 = vsub.s32 63, %v2267_v16 }
 0xcd6   :  { %v5508_v17 = vsel %vm1749_vm5, %v2284_v19, %v2380_v35  ;;  %v5510_v60 = vcvt.s32.f32 %v2398_v1 }
 0xcd8   :  { %2401 = vmax.xlane.f32.xlu2 %v5510_v60 }
 0xce0   :  { %v2355_v48 = vpop.xlane.xlu1 %2354 }
 0xce1   :  { %v2356_v58 = vcvt.f32.s32 %v2355_v48  ;;  %v2287_v48 = vsel %vm2279_vm1, %v2283_v10, %v2275_v42  ;;  %v2265_v10 = vand.u32 63, %v5449_v45 }
 0xce3   :  { %v2359_v44 = vadd.s32 %v2358_v38, %v2356_v58 }
 0xce5   :  { %v2363_v49 = vand.u32 63, %v2359_v44  ;;  %v2371_v61 = vand.u32 4294967232, %v2359_v44  ;;  %vm2391_vm0 = vcmp.eq.s32.totalorder %v5443_v7, %v2359_v44  ;;  %v5528_v44 = vpop.permute.xlu2 %3197 }
 0xce6   :  { %v5518_v1 = vsel %vm2391_vm0, 2147483648, %v5443_v7  ;;  %6248 = vst [vmem:[#allocation23_spill] sm:$0xff] %v5528_v44  ;;  %v2327_v7 = vcvt.f32.s32 %v5465_v51 }
 0xce7   :  { %v2367_v19 = vsub.s32 63, %v2363_v49  ;;  %vm2375_vm3 = vcmp.lt.s32.totalorder %v2371_v61, 0  ;;  %v2379_v33 = vxor.u32 2147483647, %v2371_v61  ;;  %v2441_v35 = vsel %vm2203_vm11, %v5518_v1, 2147483648 }
 0xce8   :  { %v2443_v23 = vshra.s32 %v2441_v35, 16  ;;  %v2328_v53 = vshll.u32 %v2327_v7, 16 }
 0xce9   :  { %v2383_v28 = vsel %vm2375_vm3, %v2379_v33, %v2371_v61  ;;  %v5523_v58 = vsel %vm1749_vm5, %v2271_v22, %v2367_v19  ;;  %v2281_v22 = vxor.u32 2147483647, %v2273_v59 }
 0xcea   :  { %v5526_v38 = vsel %vm1749_vm5, %v2287_v48, %v2383_v28  ;;  %v2445_v16 = vcvt.s32.f32 %v2443_v23  ;;  %v2269_v23 = vsub.s32 63, %v2265_v10 }
 0xcec   :  { %2446 = vmax.xlane.f32.xlu0 %v2445_v16 }
 0xd00   :  { %3059 = vperm.xlu0 %3646, %v5123_v14  }
 0xd01   :  { %v2325_v49 = vpop.xlane.xlu2 %2324 }
 0xd02   :  { %v2326_v42 = vcvt.f32.s32 %v2325_v49  ;;  %v2285_v49 = vsel %vm2277_vm7, %v2281_v22, %v2273_v59  ;;  %v2397_v22 = vand.u32 65535, %v5501_v32 }
 0xd04   :  { %v2329_v61 = vadd.s32 %v2328_v53, %v2326_v42 }
 0xd06   :  { %v2361_v19 = vand.u32 63, %v2329_v61  ;;  %v2369_v33 = vand.u32 4294967232, %v2329_v61  ;;  %vm2389_vm6 = vcmp.eq.s32.totalorder %v5454_v46, %v2329_v61  ;;  %v5546_v61 = vpop.permute.xlu1 %3182 }
 0xd07   :  { %v5536_v48 = vsel %vm2389_vm6, 2147483648, %v5454_v46 }
 0xd08   :  { %v2365_v51 = vsub.s32 63, %v2361_v19  ;;  %vm2373_vm10 = vcmp.lt.s32.totalorder %v2369_v33, 0  ;;  %v2377_v14 = vxor.u32 2147483647, %v2369_v33  ;;  %v2411_v28 = vsel %vm2203_vm11, %v5536_v48, 2147483648 }
 0xd09   :  { %v2413_v7 = vshra.s32 %v2411_v28, 16  ;;  %v2427_v19 = vand.u32 65535, %v5484_v26  ;;  %v5550_v59 = vpop.permute.xlu2 %3203 }
 0xd0a   :  { %v2381_v45 = vsel %vm2373_vm10, %v2377_v14, %v2369_v33  ;;  %v5541_v53 = vsel %vm1749_vm5, %v2269_v23, %v2365_v51  ;;  %6249 = vst [vmem:[#allocation24_spill] sm:$0xff] %v5550_v59  ;;  %v2399_v23 = vcvt.s32.f32 %v2397_v22  ;;  %v5554_v14 = vpop.permute.xlu0 %3206 }
 0xd0b   :  { %v5544_v42 = vsel %vm1749_vm5, %v2285_v49, %v2381_v45  ;;  %v2415_v10 = vcvt.s32.f32 %v2413_v7  ;;  %v2429_v55 = vcvt.s32.f32 %v2427_v19  ;;  %v2442_v7 = vand.u32 65535, %v2441_v35 }
 0xd0d   :  { %2416 = vmax.xlane.f32.xlu1 %v2415_v10  ;;  %v2444_v26 = vcvt.s32.f32 %v2442_v7 }
 0xd23   :  { %v2432_v46 = vpop.xlane.xlu1 %2431 }
 0xd24   :  { %vm2433_vm0 = vcmp.eq.f32.partialorder %v5487_v30, %v2432_v46  ;;  %v2438_v22 = vcvt.f32.s32 %v2432_v46 }
 0xd25   :  { %v2434_v44 = vsel %vm2433_vm0, %v2429_v55, -inf }
 0xd26   :  { %v2439_v35 = vshll.u32 %v2438_v22, 16 }
 0xd2a   :  { %2435 = vmax.xlane.f32.xlu0 %v2434_v44  ;;  %v2412_v44 = vand.u32 65535, %v2411_v28 }
 0xd2c   :  { %v2414_v32 = vcvt.s32.f32 %v2412_v44 }
 0xd3b   :  { %v5556_v55 = vpop.permute.xlu1 %3200 }
 0xd3c   :  { %6250 = vst [vmem:[#allocation25_spill] sm:$0xff] %v5556_v55 }
 0xd4b   :  { %v2402_v33 = vpop.xlane.xlu2 %2401 }
 0xd4c   :  { %vm2403_vm5 = vcmp.eq.f32.partialorder %v5510_v60, %v2402_v33 }
 0xd4d   :  { %v2404_v51 = vsel %vm2403_vm5, %v2399_v23, -inf }
 0xd4e   :  { %2405 = vmax.xlane.f32.xlu1 %v2404_v51 }
 0xd5f   :  { %v2447_v49 = vpop.xlane.xlu0 %2446 }
 0xd60   :  { %vm2448_vm1 = vcmp.eq.f32.partialorder %v2445_v16, %v2447_v49 }
 0xd61   :  { %v2449_v30 = vsel %vm2448_vm1, %v2444_v26, -inf }
 0xd62   :  { %2450 = vmax.xlane.f32.xlu2 %v2449_v30 }
 0xd72   :  { %v5561_v60 = vpop.permute.xlu0 %3059 }
 0xd73   :  { %6251 = vst [vmem:[#allocation26_spill] sm:$0xff] %v5561_v60 }
 0xd80   :  { %v5558_v45 = vpop.xlane.xlu1 %2416 }
 0xd81   :  { %vm2418_vm3 = vcmp.eq.f32.partialorder %v2415_v10, %v5558_v45 }
 0xd82   :  { %v2419_v19 = vsel %vm2418_vm3, %v2414_v32, -inf }
 0xd83   :  { %2420 = vmax.xlane.f32.xlu0 %v2419_v19 }
 0xd9d   :  { %v2436_v23 = vpop.xlane.xlu0 %2435 }
 0xd9e   :  { %v2437_v51 = vcvt.f32.s32 %v2436_v23  ;;  %v2408_v23 = vcvt.f32.s32 %v2402_v33 }
 0xda0   :  { %v2440_v7 = vadd.s32 %v2439_v35, %v2437_v51  ;;  %v2409_v51 = vshll.u32 %v2408_v23, 16 }
 0xda2   :  { %v2458_v16 = vand.u32 63, %v2440_v7  ;;  %v2466_v26 = vand.u32 4294967232, %v2440_v7  ;;  %vm2486_vm6 = vcmp.eq.s32.totalorder %v5473_v4, %v2440_v7 }
 0xda3   :  { %v5565_v28 = vsel %vm2486_vm6, 2147483648, %v5473_v4 }
 0xda4   :  { %v2462_v30 = vsub.s32 63, %v2458_v16  ;;  %vm2470_vm7 = vcmp.lt.s32.totalorder %v2466_v26, 0  ;;  %v2474_v44 = vxor.u32 2147483647, %v2466_v26  ;;  %v5569_v10 = vsel %vm2203_vm11, %v5565_v28, 2147483648 }
 0xda5   :  { %v2524_v46 = vshra.s32 %v5569_v10, 16 }
 0xda6   :  { %v2478_v32 = vsel %vm2470_vm7, %v2474_v44, %v2466_v26  ;;  %v5574_v19 = vsel %vm1758_vm8, %v5476_v12, %v2462_v30 }
 0xda7   :  { %v5578_v22 = vsel %vm1758_vm8, %v5480_v31, %v2478_v32  ;;  %v5580_v4 = vcvt.s32.f32 %v2524_v46 }
 0xda9   :  { %2527 = vmax.xlane.f32.xlu2 %v5580_v4 }
 0xdc1   :  { %3224 = vperm.xlu2 %3648, %v5167_v52   ;;  %v2406_v35 = vpop.xlane.xlu1 %2405 }
 0xdc2   :  { %v2407_v7 = vcvt.f32.s32 %v2406_v35 }
 0xdc4   :  { %v2410_v16 = vadd.s32 %v2409_v51, %v2407_v7 }
 0xdc6   :  { %v2456_v26 = vand.u32 63, %v2410_v16  ;;  %v2464_v44 = vand.u32 4294967232, %v2410_v16  ;;  %vm2484_vm10 = vcmp.eq.s32.totalorder %v5497_v50, %v2410_v16 }
 0xdc7   :  { %v5586_v12 = vsel %vm2484_vm10, 2147483648, %v5497_v50  ;;  %v2453_v50 = vcvt.f32.s32 %v2447_v49 }
 0xdc8   :  { %v2460_v31 = vsub.s32 63, %v2456_v26  ;;  %vm2468_vm0 = vcmp.lt.s32.totalorder %v2464_v44, 0  ;;  %v2472_v30 = vxor.u32 2147483647, %v2464_v44  ;;  %v2492_v46 = vsel %vm2203_vm11, %v5586_v12, 2147483648 }
 0xdc9   :  { %v2494_v33 = vshra.s32 %v2492_v46, 16  ;;  %v2454_v16 = vshll.u32 %v2453_v50, 16 }
 0xdca   :  { %v2476_v32 = vsel %vm2468_vm0, %v2472_v30, %v2464_v44  ;;  %v5592_v23 = vsel %vm1758_vm8, %v5505_v57, %v2460_v31 }
 0xdcb   :  { %v5596_v35 = vsel %vm1758_vm8, %v5508_v17, %v2476_v32  ;;  %v2496_v51 = vcvt.s32.f32 %v2494_v33 }
 0xdcd   :  { %2497 = vmax.xlane.f32.xlu0 %v2496_v51 }
 0xdd5   :  { %v2451_v7 = vpop.xlane.xlu2 %2450 }
 0xdd6   :  { %v2452_v26 = vcvt.f32.s32 %v2451_v7 }
 0xdd8   :  { %v2455_v43 = vadd.s32 %v2454_v16, %v2452_v26 }
 0xdda   :  { %v2459_v8 = vand.u32 63, %v2455_v43  ;;  %v2467_v5 = vand.u32 4294967232, %v2455_v43  ;;  %vm2487_vm5 = vcmp.eq.s32.totalorder %v5518_v1, %v2455_v43 }
 0xddb   :  { %v5600_v44 = vsel %vm2487_vm5, 2147483648, %v5518_v1  ;;  %v2423_v1 = vcvt.f32.s32 %v5558_v45 }
 0xddc   :  { %v2463_v57 = vsub.s32 63, %v2459_v8  ;;  %vm2471_vm1 = vcmp.lt.s32.totalorder %v2467_v5, 0  ;;  %v2475_v31 = vxor.u32 2147483647, %v2467_v5  ;;  %v2537_v17 = vsel %vm2203_vm11, %v5600_v44, 2147483648 }
 0xddd   :  { %v2539_v30 = vshra.s32 %v2537_v17, 16  ;;  %v2424_v50 = vshll.u32 %v2423_v1, 16 }
 0xdde   :  { %v2479_v33 = vsel %vm2471_vm1, %v2475_v31, %v2467_v5  ;;  %v5606_v49 = vsel %vm1758_vm8, %v5523_v58, %v2463_v57 }
 0xddf   :  { %v5610_v32 = vsel %vm1758_vm8, %v5526_v38, %v2479_v33  ;;  %v2541_v43 = vcvt.s32.f32 %v2539_v30 }
 0xde1   :  { %2542 = vmax.xlane.f32.xlu1 %v2541_v43 }
 0xdf6   :  { %v2421_v8 = vpop.xlane.xlu0 %2420 }
 0xdf7   :  { %v2422_v7 = vcvt.f32.s32 %v2421_v8 }
 0xdf9   :  { %v2425_v16 = vadd.s32 %v2424_v50, %v2422_v7  ;;  %v2523_v50 = vand.u32 65535, %v5569_v10  ;;  %v6252_v10 = vmov 1  }
 0xdfa   :  { %3221 = vperm.xlu1 %3647, %v5108_v21  }
 0xdfb   :  { %v2457_v26 = vand.u32 63, %v2425_v16  ;;  %v2465_v5 = vand.u32 4294967232, %v2425_v16  ;;  %vm2485_vm3 = vcmp.eq.s32.totalorder %v5536_v48, %v2425_v16  ;;  %v2525_v7 = vcvt.s32.f32 %v2523_v50 }
 0xdfc   :  { %v5616_v58 = vsel %vm2485_vm3, 2147483648, %v5536_v48 }
 0xdfd   :  { %v2461_v57 = vsub.s32 63, %v2457_v26  ;;  %vm2469_vm6 = vcmp.lt.s32.totalorder %v2465_v5, 0  ;;  %v2473_v38 = vxor.u32 2147483647, %v2465_v5  ;;  %v2507_v31 = vsel %vm2203_vm11, %v5616_v58, 2147483648 }
 0xdfe   :  { %v2509_v45 = vshra.s32 %v2507_v31, 16  ;;  %v2493_v26 = vand.u32 65535, %v2492_v46  ;;  %v2508_v46 = vand.u32 65535, %v2507_v31 }
 0xdff   :  { %v2477_v30 = vsel %vm2469_vm6, %v2473_v38, %v2465_v5  ;;  %v5622_v33 = vsel %vm1758_vm8, %v5541_v53, %v2461_v57  ;;  %v2538_v57 = vand.u32 65535, %v2537_v17 }
 0xe00   :  { %v5626_v1 = vsel %vm1758_vm8, %v5544_v42, %v2477_v30  ;;  %v2511_v8 = vcvt.s32.f32 %v2509_v45  ;;  %v2495_v38 = vcvt.s32.f32 %v2493_v26  ;;  %v6253_v30 = vmov 2  }
 0xe01   :  { %v2540_v42 = vcvt.s32.f32 %v2538_v57  ;;  %v2510_v17 = vcvt.s32.f32 %v2508_v46 }
 0xe02   :  { %2512 = vmax.xlane.f32.xlu2 %v2511_v8 }
 0xe1c   :  { %v2528_v48 = vpop.xlane.xlu2 %2527 }
 0xe1d   :  { %vm2529_vm7 = vcmp.eq.f32.partialorder %v5580_v4, %v2528_v48 }
 0xe1e   :  { %v2530_v16 = vsel %vm2529_vm7, %v2525_v7, -inf  ;;  %v2534_v7 = vcvt.f32.s32 %v2528_v48 }
 0xe20   :  { %v2535_v26 = vshll.u32 %v2534_v7, 16 }
 0xe24   :  { %2531 = vmax.xlane.f32.xlu1 %v2530_v16  ;;  %v5633_v4 = vpop.permute.xlu2 %3224 }
 0xe40   :  { %v2498_v5 = vpop.xlane.xlu0 %2497 }
 0xe41   :  { %vm2499_vm10 = vcmp.eq.f32.partialorder %v2496_v51, %v2498_v5 }
 0xe42   :  { %v2500_v53 = vsel %vm2499_vm10, %v2495_v38, -inf }
 0xe43   :  { %2501 = vmax.xlane.f32.xlu2 %v2500_v53 }
 0xe54   :  { %v2543_v39 = vpop.xlane.xlu1 %2542 }
 0xe55   :  { %vm2544_vm8 = vcmp.eq.f32.partialorder %v2541_v43, %v2543_v39 }
 0xe56   :  { %v2545_v45 = vsel %vm2544_vm8, %v2540_v42, -inf }
 0xe57   :  { %2546 = vmax.xlane.f32.xlu0 %v2545_v45 }
 0xe5b   :  { %3230 = vperm.xlu2 %3648, %v5190_v20  }
 0xe63   :  { %3651 = vset.pattern.permute.xlu2 %v6252_v10 }
 0xe6b   :  { %3241 = vperm.xlu0 %3646, %v5108_v21  }
 0xe6c   :  { %v5640_v50 = vpop.permute.xlu1 %3221 }
 0xe73   :  { %3649 = vset.pattern.permute.xlu0 %v6253_v30 }
 0xe74   :  { %3086 = vperm.xlu0 %3649, %v5173_v27  }
 0xe75   :  { %v5637_v51 = vpop.xlane.xlu2 %2512 }
 0xe76   :  { %vm2514_vm0 = vcmp.eq.f32.partialorder %v2511_v8, %v5637_v51 }
 0xe77   :  { %v2515_v43 = vsel %vm2514_vm0, %v2510_v17, -inf }
 0xe78   :  { %2516 = vmax.xlane.f32.xlu1 %v2515_v43  ;;  %v2504_v43 = vcvt.f32.s32 %v2498_v5 }
 0xe91   :  { %3227 = vperm.xlu1 %3647, %v5127_v2  }
 0xe97   :  { %v2532_v16 = vpop.xlane.xlu1 %2531 }
 0xe98   :  { %v2533_v38 = vcvt.f32.s32 %v2532_v16  ;;  %v2505_v16 = vshll.u32 %v2504_v43, 16 }
 0xe99   :  { %3650 = vset.pattern.permute.xlu1 %v6252_v10 }
 0xe9a   :  { %v2536_v31 = vadd.s32 %v2535_v26, %v2533_v38 }
 0xe9c   :  { %v2554_v53 = vand.u32 63, %v2536_v31  ;;  %v2562_v27 = vand.u32 4294967232, %v2536_v31  ;;  %vm2582_vm5 = vcmp.eq.s32.totalorder %v5565_v28, %v2536_v31 }
 0xe9d   :  { %v5646_v57 = vsel %vm2582_vm5, 2147483648, %v5565_v28 }
 0xe9e   :  { %v2558_v8 = vsub.s32 63, %v2554_v53  ;;  %vm2566_vm1 = vcmp.lt.s32.totalorder %v2562_v27, 0  ;;  %v2570_v42 = vxor.u32 2147483647, %v2562_v27  ;;  %v5650_v45 = vsel %vm2203_vm11, %v5646_v57, 2147483648 }
 0xe9f   :  { %v2620_v48 = vshra.s32 %v5650_v45, 16 }
 0xea0   :  { %v2574_v46 = vsel %vm2566_vm1, %v2570_v42, %v2562_v27  ;;  %v5655_v10 = vsel %vm1767_vm4, %v5574_v19, %v2558_v8 }
 0xea1   :  { %v5657_v17 = vcvt.s32.f32 %v2620_v48  ;;  %v5661_v28 = vsel %vm1767_vm4, %v5578_v22, %v2574_v46 }
 0xea3   :  { %2623 = vmax.xlane.f32.xlu0 %v5657_v17 }
 0xeb6   :  { %v2502_v7 = vpop.xlane.xlu2 %2501 }
 0xeb7   :  { %v2503_v26 = vcvt.f32.s32 %v2502_v7 }
 0xeb9   :  { %v2506_v38 = vadd.s32 %v2505_v16, %v2503_v26 }
 0xebb   :  { %v2552_v31 = vand.u32 63, %v2506_v38  ;;  %v2560_v53 = vand.u32 4294967232, %v2506_v38  ;;  %vm2580_vm3 = vcmp.eq.s32.totalorder %v5586_v12, %v2506_v38 }
 0xebc   :  { %v5666_v19 = vsel %vm2580_vm3, 2147483648, %v5586_v12  ;;  %v2549_v12 = vcvt.f32.s32 %v2543_v39 }
 0xebd   :  { %v2556_v27 = vsub.s32 63, %v2552_v31  ;;  %vm2564_vm6 = vcmp.lt.s32.totalorder %v2560_v53, 0  ;;  %v2568_v8 = vxor.u32 2147483647, %v2560_v53  ;;  %v2588_v22 = vsel %vm2203_vm11, %v5666_v19, 2147483648 }
 0xebe   :  { %v2590_v42 = vshra.s32 %v2588_v22, 16  ;;  %v2550_v16 = vshll.u32 %v2549_v12, 16 }
 0xebf   :  { %v2572_v48 = vsel %vm2564_vm6, %v2568_v8, %v2560_v53  ;;  %v5672_v5 = vsel %vm1767_vm4, %v5592_v23, %v2556_v27 }
 0xec0   :  { %v2592_v46 = vcvt.s32.f32 %v2590_v42  ;;  %v5676_v43 = vsel %vm1767_vm4, %v5596_v35, %v2572_v48 }
 0xec2   :  { %2593 = vmax.xlane.f32.xlu1 %v2592_v46 }
 0xeca   :  { %v2547_v7 = vpop.xlane.xlu0 %2546 }
 0xecb   :  { %v2548_v26 = vcvt.f32.s32 %v2547_v7 }
 0xecd   :  { %v2551_v38 = vadd.s32 %v2550_v16, %v2548_v26 }
 0xecf   :  { %v2555_v31 = vand.u32 63, %v2551_v38  ;;  %v2563_v63 = vand.u32 4294967232, %v2551_v38  ;;  %vm2583_vm7 = vcmp.eq.s32.totalorder %v5600_v44, %v2551_v38 }
 0xed0   :  { %v5680_v53 = vsel %vm2583_vm7, 2147483648, %v5600_v44  ;;  %v2519_v44 = vcvt.f32.s32 %v5637_v51 }
 0xed1   :  { %v2559_v23 = vsub.s32 63, %v2555_v31  ;;  %vm2567_vm10 = vcmp.lt.s32.totalorder %v2563_v63, 0  ;;  %v2571_v27 = vxor.u32 2147483647, %v2563_v63  ;;  %v2633_v35 = vsel %vm2203_vm11, %v5680_v53, 2147483648 }
 0xed2   :  { %v2635_v8 = vshra.s32 %v2633_v35, 16  ;;  %v2520_v16 = vshll.u32 %v2519_v44, 16  ;;  %v2634_v0 = vand.u32 65535, %v2633_v35 }
 0xed3   :  { %v2575_v42 = vsel %vm2567_vm10, %v2571_v27, %v2563_v63  ;;  %v5686_v39 = vsel %vm1767_vm4, %v5606_v49, %v2559_v23 }
 0xed4   :  { %v2637_v48 = vcvt.s32.f32 %v2635_v8  ;;  %v5690_v12 = vsel %vm1767_vm4, %v5610_v32, %v2575_v42  ;;  %v2636_v18 = vcvt.s32.f32 %v2634_v0 }
 0xed6   :  { %2638 = vmax.xlane.f32.xlu2 %v2637_v48 }
 0xedb   :  { %3244 = vperm.xlu1 %3650, %v5167_v52  }
 0xeeb   :  { %v2517_v7 = vpop.xlane.xlu1 %2516 }
 0xeec   :  { %v2518_v26 = vcvt.f32.s32 %v2517_v7 }
 0xeee   :  { %v2521_v38 = vadd.s32 %v2520_v16, %v2518_v26  ;;  %3247 = vperm.xlu2 %3651, %v5127_v2   ;;  %v5710_v16 = vpop.permute.xlu0 %3241 }
 0xef0   :  { %v2553_v63 = vand.u32 63, %v2521_v38  ;;  %v2561_v31 = vand.u32 4294967232, %v2521_v38  ;;  %vm2581_vm0 = vcmp.eq.s32.totalorder %v5616_v58, %v2521_v38 }
 0xef1   :  { %v5706_v51 = vsel %vm2581_vm0, 2147483648, %v5616_v58 }
 0xef2   :  { %v2557_v49 = vsub.s32 63, %v2553_v63  ;;  %vm2565_vm8 = vcmp.lt.s32.totalorder %v2561_v31, 0  ;;  %v2569_v23 = vxor.u32 2147483647, %v2561_v31  ;;  %v2603_v42 = vsel %vm2203_vm11, %v5706_v51, 2147483648 }
 0xef3   :  { %v2605_v44 = vshra.s32 %v2603_v42, 16 }
 0xef4   :  { %v2573_v27 = vsel %vm2565_vm8, %v2569_v23, %v2561_v31  ;;  %v5697_v32 = vsel %vm1767_vm4, %v5622_v33, %v2557_v49  ;;  %v2619_v49 = vand.u32 65535, %v5650_v45 }
 0xef5   :  { %v5701_v8 = vsel %vm1767_vm4, %v5626_v1, %v2573_v27  ;;  %v2607_v7 = vcvt.s32.f32 %v2605_v44  ;;  %v2589_v1 = vand.u32 65535, %v2588_v22  ;;  %v5718_v44 = vpop.permute.xlu2 %3230 }
 0xef6   :  { %3652 = vset.pattern.permute.xlu2 %v6253_v30  ;;  %v5714_v26 = vpop.permute.xlu0 %3086  ;;  %v2621_v23 = vcvt.s32.f32 %v2619_v49 }
 0xef7   :  { %v2591_v31 = vcvt.s32.f32 %v2589_v1 }
 0xf03   :  { %v5712_v33 = vpop.permute.xlu1 %3227 }
 0xf04   :  { %6254 = vst [vmem:[#allocation27_spill] sm:$0xff] %v5712_v33 }
 0xf16   :  { %v2624_v58 = vpop.xlane.xlu0 %2623 }
 0xf17   :  { %2608 = vmax.xlane.f32.xlu2 %v2607_v7  ;;  %vm2625_vm5 = vcmp.eq.f32.partialorder %v5657_v17, %v2624_v58  ;;  %v2630_v11 = vcvt.f32.s32 %v2624_v58 }
 0xf18   :  { %v2626_v27 = vsel %vm2625_vm5, %v2621_v23, -inf }
 0xf35   :  { %v2594_v63 = vpop.xlane.xlu1 %2593 }
 0xf36   :  { %vm2595_vm4 = vcmp.eq.f32.partialorder %v2592_v46, %v2594_v63  ;;  %v2604_v46 = vand.u32 65535, %v2603_v42  ;;  %v2600_v17 = vcvt.f32.s32 %v2594_v63 }
 0xf37   :  { %v2596_v38 = vsel %vm2595_vm4, %v2591_v31, -inf }
 0xf38   :  { %2597 = vmax.xlane.f32.xlu0 %v2596_v38  ;;  %v2606_v38 = vcvt.s32.f32 %v2604_v46  ;;  %v2601_v23 = vshll.u32 %v2600_v17, 16 }
 0xf40   :  { %2627 = vmax.xlane.f32.xlu0 %v2626_v27 }
 0xf49   :  { %v2639_v59 = vpop.xlane.xlu2 %2638 }
 0xf4a   :  { %vm2640_vm1 = vcmp.eq.f32.partialorder %v2637_v48, %v2639_v59 }
 0xf4b   :  { %v2641_v22 = vsel %vm2640_vm1, %v2636_v18, -inf }
 0xf4c   :  { %2642 = vmax.xlane.f32.xlu2 %v2641_v22 }
 0xf51   :  { %v5720_v1 = vpop.permute.xlu2 %3247 }
 0xf52   :  { %6255 = vst [vmem:[#allocation28_spill] sm:$0xff] %v5720_v1 }
 0xf8a   :  { %v5722_v31 = vpop.xlane.xlu2 %2608 }
 0xf8b   :  { %vm2610_vm3 = vcmp.eq.f32.partialorder %v2607_v7, %v5722_v31 }
 0xf8c   :  { %v2611_v45 = vsel %vm2610_vm3, %v2606_v38, -inf  ;;  %v2631_v38 = vshll.u32 %v2630_v11, 16 }
 0xf8d   :  { %2612 = vmax.xlane.f32.xlu1 %v2611_v45 }
 0xfab   :  { %v2598_v49 = vpop.xlane.xlu0 %2597 }
 0xfac   :  { %v2599_v27 = vcvt.f32.s32 %v2598_v49 }
 0xfae   :  { %v2602_v35 = vadd.s32 %v2601_v23, %v2599_v27 }
 0xfb0   :  { %v2648_v0 = vand.u32 63, %v2602_v35  ;;  %v2656_v48 = vand.u32 4294967232, %v2602_v35  ;;  %vm2676_vm6 = vcmp.eq.s32.totalorder %v5666_v19, %v2602_v35 }
 0xfb1   :  { %v5727_v18 = vsel %vm2676_vm6, 2147483648, %v5666_v19 }
 0xfb2   :  { %v2652_v42 = vsub.s32 63, %v2648_v0  ;;  %vm2660_vm7 = vcmp.lt.s32.totalorder %v2656_v48, 0  ;;  %v2664_v22 = vxor.u32 2147483647, %v2656_v48  ;;  %v5731_v7 = vsel %vm2203_vm11, %v5727_v18, 2147483648 }
 0xfb3   :  { %v2628_v63 = vpop.xlane.xlu0 %2627  ;;  %v2686_v46 = vshra.s32 %v5731_v7, 16 }
 0xfb4   :  { %v2668_v45 = vsel %vm2660_vm7, %v2664_v22, %v2656_v48  ;;  %v5736_v58 = vsel %vm1776_vm9, %v5672_v5, %v2652_v42  ;;  %v2629_v17 = vcvt.f32.s32 %v2628_v63  ;;  %v2645_v42 = vcvt.f32.s32 %v2639_v59 }
 0xfb5   :  { %v5738_v49 = vcvt.s32.f32 %v2686_v46  ;;  %v5742_v19 = vsel %vm1776_vm9, %v5676_v43, %v2668_v45 }
 0xfb6   :  { %v2632_v23 = vadd.s32 %v2631_v38, %v2629_v17  ;;  %v2646_v45 = vshll.u32 %v2645_v42, 16 }
 0xfb7   :  { %2689 = vmax.xlane.f32.xlu1 %v5738_v49 }
 0xfb8   :  { %v2650_v27 = vand.u32 63, %v2632_v23  ;;  %v2658_v35 = vand.u32 4294967232, %v2632_v23  ;;  %vm2678_vm10 = vcmp.eq.s32.totalorder %v5646_v57, %v2632_v23 }
 0xfb9   :  { %v5747_v11 = vsel %vm2678_vm10, 2147483648, %v5646_v57 }
 0xfba   :  { %v2654_v0 = vsub.s32 63, %v2650_v27  ;;  %vm2662_vm8 = vcmp.lt.s32.totalorder %v2658_v35, 0  ;;  %v2666_v5 = vxor.u32 2147483647, %v2658_v35  ;;  %v5751_v48 = vsel %vm2203_vm11, %v5747_v11, 2147483648 }
 0xfbb   :  { %v2716_v43 = vshra.s32 %v5751_v48, 16 }
 0xfbc   :  { %v2670_v22 = vsel %vm2662_vm8, %v2666_v5, %v2658_v35  ;;  %v5756_v63 = vsel %vm1776_vm9, %v5655_v10, %v2654_v0 }
 0xfbd   :  { %v2718_v46 = vcvt.s32.f32 %v2716_v43  ;;  %v5760_v57 = vsel %vm1776_vm9, %v5661_v28, %v2670_v22 }
 0xfbf   :  { %v2643_v38 = vpop.xlane.xlu2 %2642  ;;  %2719 = vmax.xlane.f32.xlu0 %v2718_v46 }
 0xfc0   :  { %v2644_v17 = vcvt.f32.s32 %v2643_v38  ;;  %v2615_v38 = vcvt.f32.s32 %v5722_v31 }
 0xfc2   :  { %v2647_v23 = vadd.s32 %v2646_v45, %v2644_v17 }
 0xfc4   :  { %v2651_v27 = vand.u32 63, %v2647_v23  ;;  %v2659_v25 = vand.u32 4294967232, %v2647_v23  ;;  %vm2679_vm0 = vcmp.eq.s32.totalorder %v5680_v53, %v2647_v23 }
 0xfc5   :  { %v5764_v59 = vsel %vm2679_vm0, 2147483648, %v5680_v53  ;;  %v6256_v53 = vmov 3  }
 0xfc6   :  { %v2655_v35 = vsub.s32 63, %v2651_v27  ;;  %vm2663_vm4 = vcmp.lt.s32.totalorder %v2659_v25, 0  ;;  %v2667_v10 = vxor.u32 2147483647, %v2659_v25  ;;  %v2729_v0 = vsel %vm2203_vm11, %v5764_v59, 2147483648 }
 0xfc7   :  { %v2731_v28 = vshra.s32 %v2729_v0, 16 }
 0xfc8   :  { %v2671_v5 = vsel %vm2663_vm4, %v2667_v10, %v2659_v25  ;;  %v5770_v43 = vsel %vm1776_vm9, %v5686_v39, %v2655_v35  ;;  %v6257_v25 = vmov 4   ;;  %v5782_v39 = vpop.permute.xlu1 %3244 }
 0xfc9   :  { %v2733_v42 = vcvt.s32.f32 %v2731_v28  ;;  %v5774_v22 = vsel %vm1776_vm9, %v5690_v12, %v2671_v5  ;;  %v2616_v12 = vshll.u32 %v2615_v38, 16 }
 0xfcb   :  { %2734 = vmax.xlane.f32.xlu1 %v2733_v42 }
 0xfd3   :  { %3268 = vperm.xlu0 %3649, %v5167_v52  }
 0xfdb   :  { %3654 = vset.pattern.permute.xlu0 %v6256_v53 }
 0xfe4   :  { %3250 = vperm.xlu1 %3650, %v5190_v20  }
 0xfec   :  { %3653 = vset.pattern.permute.xlu1 %v6253_v30 }
 0xfed   :  { %3271 = vperm.xlu1 %3653, %v5127_v2  }
 0xff5   :  { %3657 = vset.pattern.permute.xlu1 %v6257_v25 }
0x1000   :  { %v2613_v45 = vpop.xlane.xlu1 %2612 }
0x1001   :  { %v2614_v17 = vcvt.f32.s32 %v2613_v45 }
0x1003   :  { %v2617_v23 = vadd.s32 %v2616_v12, %v2614_v17 }
0x1005   :  { %v2649_v27 = vand.u32 63, %v2617_v23  ;;  %v2657_v35 = vand.u32 4294967232, %v2617_v23  ;;  %vm2677_vm5 = vcmp.eq.s32.totalorder %v5706_v51, %v2617_v23 }
0x1006   :  { %v5787_v10 = vsel %vm2677_vm5, 2147483648, %v5706_v51  ;;  %v2685_v51 = vand.u32 65535, %v5731_v7 }
0x1007   :  { %v2653_v30 = vsub.s32 63, %v2649_v27  ;;  %vm2661_vm1 = vcmp.lt.s32.totalorder %v2657_v35, 0  ;;  %v2665_v28 = vxor.u32 2147483647, %v2657_v35  ;;  %v2699_v5 = vsel %vm2203_vm11, %v5787_v10, 2147483648 }
0x1008   :  { %v2701_v15 = vshra.s32 %v2699_v5, 16  ;;  %v2687_v17 = vcvt.s32.f32 %v2685_v51 }
0x1009   :  { %v2669_v13 = vsel %vm2661_vm1, %v2665_v28, %v2657_v35  ;;  %v5793_v31 = vsel %vm1776_vm9, %v5697_v32, %v2653_v30  ;;  %v2730_v35 = vand.u32 65535, %v2729_v0 }
0x100a   :  { %v2703_v38 = vcvt.s32.f32 %v2701_v15  ;;  %v5797_v45 = vsel %vm1776_vm9, %v5701_v8, %v2669_v13  ;;  %v2715_v15 = vand.u32 65535, %v5751_v48 }
0x100b   :  { %v2732_v7 = vcvt.s32.f32 %v2730_v35 }
0x100c   :  { %2704 = vmax.xlane.f32.xlu2 %v2703_v38  ;;  %v2717_v27 = vcvt.s32.f32 %v2715_v15 }
0x1024   :  { %3265 = vperm.xlu2 %3652, %v5108_v21  }
0x102a   :  { %v2690_v12 = vpop.xlane.xlu1 %2689 }
0x102b   :  { %vm2691_vm3 = vcmp.eq.f32.partialorder %v5738_v49, %v2690_v12  ;;  %v2700_v49 = vand.u32 65535, %v2699_v5  ;;  %v2696_v0 = vcvt.f32.s32 %v2690_v12 }
0x102c   :  { %v2692_v23 = vsel %vm2691_vm3, %v2687_v17, -inf }
0x102d   :  { %2693 = vmax.xlane.f32.xlu0 %v2692_v23  ;;  %v2702_v48 = vcvt.s32.f32 %v2700_v49 }
0x1032   :  { %v2720_v32 = vpop.xlane.xlu0 %2719 }
0x1033   :  { %vm2721_vm6 = vcmp.eq.f32.partialorder %v2718_v46, %v2720_v32 }
0x1034   :  { %v2722_v13 = vsel %vm2721_vm6, %v2717_v27, -inf }
0x103e   :  { %v2735_v8 = vpop.xlane.xlu1 %2734 }
0x103f   :  { %vm2736_vm9 = vcmp.eq.f32.partialorder %v2733_v42, %v2735_v8  ;;  %v2697_v42 = vshll.u32 %v2696_v0, 16 }
0x1040   :  { %v2737_v30 = vsel %vm2736_vm9, %v2732_v7, -inf }
0x1041   :  { %3289 = vperm.xlu0 %3654, %v5108_v21  }
0x1045   :  { %v5810_v51 = vpop.permute.xlu0 %3268 }
0x104d   :  { %2723 = vmax.xlane.f32.xlu2 %v2722_v13 }
0x1056   :  { %v5850_v1 = vpop.permute.xlu1 %3250 }
0x1065   :  { %3274 = vperm.xlu2 %3652, %v5190_v20  }
0x106b   :  { %2738 = vmax.xlane.f32.xlu0 %v2737_v30 }
0x106d   :  { %3656 = vset.pattern.permute.xlu2 %v6256_v53 }
0x107f   :  { %v5806_v28 = vpop.xlane.xlu2 %2704  ;;  %3292 = vperm.xlu0 %3654, %v5167_v52  }
0x1080   :  { %vm2706_vm7 = vcmp.eq.f32.partialorder %v2703_v38, %v5806_v28 }
0x1081   :  { %v2707_v46 = vsel %vm2706_vm7, %v2702_v48, -inf }
0x1082   :  { %2708 = vmax.xlane.f32.xlu1 %v2707_v46  ;;  %v2726_v46 = vcvt.f32.s32 %v2720_v32 }
0x1087   :  { %v5832_v48 = vpop.permute.xlu2 %3265 }
0x10a0   :  { %v2694_v17 = vpop.xlane.xlu0 %2693 }
0x10a1   :  { %v2695_v23 = vcvt.f32.s32 %v2694_v17  ;;  %v2727_v17 = vshll.u32 %v2726_v46, 16 }
0x10a3   :  { %v2698_v15 = vadd.s32 %v2697_v42, %v2695_v23 }
0x10a5   :  { %v2744_v27 = vand.u32 63, %v2698_v15  ;;  %v2752_v13 = vand.u32 4294967232, %v2698_v15  ;;  %vm2772_vm10 = vcmp.eq.s32.totalorder %v5727_v18, %v2698_v15 }
0x10a6   :  { %v5814_v53 = vsel %vm2772_vm10, 2147483648, %v5727_v18 }
0x10a7   :  { %v2748_v5 = vsub.s32 63, %v2744_v27  ;;  %vm2756_vm8 = vcmp.lt.s32.totalorder %v2752_v13, 0  ;;  %v2760_v35 = vxor.u32 2147483647, %v2752_v13  ;;  %v5818_v38 = vsel %vm2203_vm11, %v5814_v53, 2147483648 }
0x10a8   :  { %v2782_v12 = vshra.s32 %v5818_v38, 16 }
0x10a9   :  { %v5823_v7 = vsel %vm1785_vm12, %v5736_v58, %v2748_v5  ;;  %v2764_v30 = vsel %vm2756_vm8, %v2760_v35, %v2752_v13 }
0x10aa   :  { %v5825_v49 = vcvt.s32.f32 %v2782_v12  ;;  %v5829_v18 = vsel %vm1785_vm12, %v5742_v19, %v2764_v30 }
0x10ac   :  { %2785 = vmax.xlane.f32.xlu2 %v5825_v49 }
0x10c0   :  { %v2724_v0 = vpop.xlane.xlu2 %2723 }
0x10c1   :  { %v2725_v42 = vcvt.f32.s32 %v2724_v0  ;;  %v2741_v0 = vcvt.f32.s32 %v2735_v8 }
0x10c3   :  { %v2728_v23 = vadd.s32 %v2727_v17, %v2725_v42  ;;  %v2742_v42 = vshll.u32 %v2741_v0, 16 }
0x10c5   :  { %v2746_v15 = vand.u32 63, %v2728_v23  ;;  %v2754_v27 = vand.u32 4294967232, %v2728_v23  ;;  %vm2774_vm0 = vcmp.eq.s32.totalorder %v5747_v11, %v2728_v23 }
0x10c6   :  { %v5836_v58 = vsel %vm2774_vm0, 2147483648, %v5747_v11  ;;  %v5848_v11 = vpop.permute.xlu0 %3289 }
0x10c7   :  { %v2750_v13 = vsub.s32 63, %v2746_v15  ;;  %vm2758_vm4 = vcmp.lt.s32.totalorder %v2754_v27, 0  ;;  %v2762_v19 = vxor.u32 2147483647, %v2754_v27  ;;  %v2810_v5 = vsel %vm2203_vm11, %v5836_v58, 2147483648 }
0x10c8   :  { %v2812_v35 = vshra.s32 %v2810_v5, 16 }
0x10c9   :  { %v5842_v32 = vsel %vm1785_vm12, %v5756_v63, %v2750_v13  ;;  %v2766_v12 = vsel %vm2758_vm4, %v2762_v19, %v2754_v27 }
0x10ca   :  { %v2814_v30 = vcvt.s32.f32 %v2812_v35  ;;  %v5846_v46 = vsel %vm1785_vm12, %v5760_v57, %v2766_v12 }
0x10cc   :  { %2815 = vmax.xlane.f32.xlu1 %v2814_v30 }
0x10de   :  { %v2739_v17 = vpop.xlane.xlu0 %2738 }
0x10df   :  { %v2740_v23 = vcvt.f32.s32 %v2739_v17 }
0x10e1   :  { %v2743_v15 = vadd.s32 %v2742_v42, %v2740_v23 }
0x10e3   :  { %v2747_v33 = vand.u32 63, %v2743_v15  ;;  %v2755_v60 = vand.u32 4294967232, %v2743_v15  ;;  %vm2775_vm5 = vcmp.eq.s32.totalorder %v5764_v59, %v2743_v15 }
0x10e4   :  { %v5854_v63 = vsel %vm2775_vm5, 2147483648, %v5764_v59  ;;  %v5866_v59 = vpop.permute.xlu1 %3271 }
0x10e5   :  { %v2751_v27 = vsub.s32 63, %v2747_v33  ;;  %vm2759_vm1 = vcmp.lt.s32.totalorder %v2755_v60, 0  ;;  %v2763_v57 = vxor.u32 2147483647, %v2755_v60  ;;  %v2825_v13 = vsel %vm2203_vm11, %v5854_v63, 2147483648 }
0x10e6   :  { %v2827_v8 = vshra.s32 %v2825_v13, 16  ;;  %v2711_v33 = vcvt.f32.s32 %v5806_v28 }
0x10e7   :  { %v5860_v19 = vsel %vm1785_vm12, %v5770_v43, %v2751_v27  ;;  %v2767_v35 = vsel %vm2759_vm1, %v2763_v57, %v2755_v60 }
0x10e8   :  { %v2829_v12 = vcvt.s32.f32 %v2827_v8  ;;  %v5864_v0 = vsel %vm1785_vm12, %v5774_v22, %v2767_v35  ;;  %v2712_v42 = vshll.u32 %v2711_v33, 16 }
0x10ea   :  { %2830 = vmax.xlane.f32.xlu2 %v2829_v12 }
0x10f5   :  { %v2709_v17 = vpop.xlane.xlu1 %2708 }
0x10f6   :  { %v2710_v23 = vcvt.f32.s32 %v2709_v17 }
0x10f8   :  { %v2713_v15 = vadd.s32 %v2712_v42, %v2710_v23 }
0x10fa   :  { %v2745_v62 = vand.u32 63, %v2713_v15  ;;  %v2753_v55 = vand.u32 4294967232, %v2713_v15  ;;  %vm2773_vm3 = vcmp.eq.s32.totalorder %v5787_v10, %v2713_v15  ;;  %v2811_v15 = vand.u32 65535, %v2810_v5 }
0x10fb   :  { %v5871_v60 = vsel %vm2773_vm3, 2147483648, %v5787_v10  ;;  %v5883_v10 = vpop.permute.xlu2 %3274 }
0x10fc   :  { %v2749_v43 = vsub.s32 63, %v2745_v62  ;;  %vm2757_vm6 = vcmp.lt.s32.totalorder %v2753_v55, 0  ;;  %v2761_v22 = vxor.u32 2147483647, %v2753_v55  ;;  %v2795_v27 = vsel %vm2203_vm11, %v5871_v60, 2147483648 }
0x10fd   :  { %v2797_v57 = vshra.s32 %v2795_v27, 16  ;;  %v2781_v62 = vand.u32 65535, %v5818_v38 }
0x10fe   :  { %v5877_v28 = vsel %vm1785_vm12, %v5793_v31, %v2749_v43  ;;  %v2765_v8 = vsel %vm2757_vm6, %v2761_v22, %v2753_v55  ;;  %v2813_v43 = vcvt.s32.f32 %v2811_v15 }
0x10ff   :  { %v2799_v35 = vcvt.s32.f32 %v2797_v57  ;;  %v5881_v33 = vsel %vm1785_vm12, %v5797_v45, %v2765_v8  ;;  %v2783_v42 = vcvt.s32.f32 %v2781_v62  ;;  %v2826_v45 = vand.u32 65535, %v2825_v13  ;;  %v5889_v8 = vpop.permute.xlu0 %3292 }
0x1101   :  { %2800 = vmax.xlane.f32.xlu0 %v2799_v35  ;;  %v2828_v57 = vcvt.s32.f32 %v2826_v45 }
0x111f   :  { %v2786_v17 = vpop.xlane.xlu2 %2785 }
0x1120   :  { %vm2787_vm9 = vcmp.eq.f32.partialorder %v5825_v49, %v2786_v17  ;;  %v2796_v49 = vand.u32 65535, %v2795_v27 }
0x1121   :  { %v2788_v23 = vsel %vm2787_vm9, %v2783_v42, -inf  ;;  %v2792_v42 = vcvt.f32.s32 %v2786_v17 }
0x1122   :  { %2789 = vmax.xlane.f32.xlu1 %v2788_v23  ;;  %v2798_v5 = vcvt.s32.f32 %v2796_v49 }
0x1123   :  { %v2793_v13 = vshll.u32 %v2792_v42, 16 }
0x113f   :  { %v2816_v31 = vpop.xlane.xlu1 %2815 }
0x1140   :  { %vm2817_vm7 = vcmp.eq.f32.partialorder %v2814_v30, %v2816_v31 }
0x1141   :  { %v2818_v55 = vsel %vm2817_vm7, %v2813_v43, -inf }
0x1142   :  { %2819 = vmax.xlane.f32.xlu0 %v2818_v55 }
0x1156   :  { %3295 = vperm.xlu0 %3654, %v5127_v2  }
0x115d   :  { %v2831_v22 = vpop.xlane.xlu2 %2830 }
0x115e   :  { %vm2832_vm12 = vcmp.eq.f32.partialorder %v2829_v12, %v2831_v22  ;;  %3655 = vset.pattern.permute.xlu0 %v6257_v25 }
0x115f   :  { %v2833_v38 = vsel %vm2832_vm12, %v2828_v57, -inf }
0x1160   :  { %2834 = vmax.xlane.f32.xlu1 %v2833_v38 }
0x1174   :  { %v5891_v62 = vpop.xlane.xlu0 %2800 }
0x1175   :  { %vm2802_vm10 = vcmp.eq.f32.partialorder %v2799_v35, %v5891_v62 }
0x1176   :  { %v2803_v30 = vsel %vm2802_vm10, %v2798_v5, -inf }
0x1177   :  { %2804 = vmax.xlane.f32.xlu2 %v2803_v30 }
0x1195   :  { %v2790_v23 = vpop.xlane.xlu1 %2789 }
0x1196   :  { %v2791_v15 = vcvt.f32.s32 %v2790_v23 }
0x1198   :  { %v2794_v43 = vadd.s32 %v2793_v13, %v2791_v15 }
0x119a   :  { %v2840_v12 = vand.u32 63, %v2794_v43  ;;  %v2848_v55 = vand.u32 4294967232, %v2794_v43  ;;  %vm2868_vm8 = vcmp.eq.s32.totalorder %v5814_v53, %v2794_v43 }
0x119b   :  { %v2872_v45 = vsel %vm2868_vm8, 2147483648, %v5814_v53  ;;  %v2822_v53 = vcvt.f32.s32 %v2816_v31 }
0x119c   :  { %v2844_v57 = vsub.s32 63, %v2840_v12  ;;  %v2856_v27 = vxor.u32 2147483647, %v2848_v55  ;;  %v5897_v38 = vsel %vm2203_vm11, %v2872_v45, 2147483648  ;;  %vm2852_vm0 = vcmp.lt.s32.totalorder %v2848_v55, 0 }
0x119d   :  { %v2878_v35 = vshra.s32 %v5897_v38, 16  ;;  %v2823_v23 = vshll.u32 %v2822_v53, 16 }
0x119e   :  { %v5902_v17 = vsel %vm1794_vm2, %v5823_v7, %v2844_v57  ;;  %v2860_v49 = vsel %vm2852_vm0, %v2856_v27, %v2848_v55 }
0x119f   :  { %v5904_v5 = vcvt.s32.f32 %v2878_v35  ;;  %v5908_v30 = vsel %vm1794_vm2, %v5829_v18, %v2860_v49 }
0x11a1   :  { %2881 = vmax.xlane.f32.xlu0 %v5904_v5 }
0x11b5   :  { %v2820_v42 = vpop.xlane.xlu0 %2819 }
0x11b6   :  { %v2821_v13 = vcvt.f32.s32 %v2820_v42 }
0x11b8   :  { %v2824_v15 = vadd.s32 %v2823_v23, %v2821_v13 }
0x11ba   :  { %v2842_v43 = vand.u32 63, %v2824_v15  ;;  %v2850_v12 = vand.u32 4294967232, %v2824_v15  ;;  %vm2870_vm4 = vcmp.eq.s32.totalorder %v5836_v58, %v2824_v15 }
0x11bb   :  { %v2874_v7 = vsel %vm2870_vm4, 2147483648, %v5836_v58  ;;  %v2837_v58 = vcvt.f32.s32 %v2831_v22 }
0x11bc   :  { %v2846_v55 = vsub.s32 63, %v2842_v43  ;;  %v2858_v45 = vxor.u32 2147483647, %v2850_v12  ;;  %v5914_v57 = vsel %vm2203_vm11, %v2874_v7, 2147483648  ;;  %vm2854_vm5 = vcmp.lt.s32.totalorder %v2850_v12, 0 }
0x11bd   :  { %v2908_v18 = vshra.s32 %v5914_v57, 16  ;;  %v2838_v42 = vshll.u32 %v2837_v58, 16 }
0x11be   :  { %v5919_v31 = vsel %vm1794_vm2, %v5842_v32, %v2846_v55  ;;  %v2862_v27 = vsel %vm2854_vm5, %v2858_v45, %v2850_v12 }
0x11bf   :  { %v5921_v35 = vcvt.s32.f32 %v2908_v18  ;;  %v5925_v49 = vsel %vm1794_vm2, %v5846_v46, %v2862_v27 }
0x11c1   :  { %2911 = vmax.xlane.f32.xlu2 %v5921_v35 }
0x11d3   :  { %v2835_v53 = vpop.xlane.xlu1 %2834 }
0x11d4   :  { %v2836_v23 = vcvt.f32.s32 %v2835_v53  ;;  %v6258_v53 = vmov 6  }
0x11d6   :  { %v2839_v13 = vadd.s32 %v2838_v42, %v2836_v23 }
0x11d8   :  { %v2843_v15 = vand.u32 63, %v2839_v13  ;;  %v2851_v43 = vand.u32 4294967232, %v2839_v13  ;;  %vm2871_vm1 = vcmp.eq.s32.totalorder %v5854_v63, %v2839_v13 }
0x11d9   :  { %3298 = vperm.xlu2 %3656, %v5190_v20   ;;  %v2875_v32 = vsel %vm2871_vm1, 2147483648, %v5854_v63  ;;  %v2807_v63 = vcvt.f32.s32 %v5891_v62 }
0x11da   :  { %v2847_v12 = vsub.s32 63, %v2843_v15  ;;  %v2859_v7 = vxor.u32 2147483647, %v2851_v43  ;;  %v2921_v46 = vsel %vm2203_vm11, %v2875_v32, 2147483648  ;;  %vm2855_vm3 = vcmp.lt.s32.totalorder %v2851_v43, 0 }
0x11db   :  { %v2923_v55 = vshra.s32 %v2921_v46, 16  ;;  %v2808_v42 = vshll.u32 %v2807_v63, 16 }
0x11dc   :  { %v5934_v22 = vsel %vm1794_vm2, %v5860_v19, %v2847_v12  ;;  %v2863_v45 = vsel %vm2855_vm3, %v2859_v7, %v2851_v43  ;;  %v6259_v12 = vmov 7  }
0x11dd   :  { %v2925_v18 = vcvt.s32.f32 %v2923_v55  ;;  %v5938_v27 = vsel %vm1794_vm2, %v5864_v0, %v2863_v45 }
0x11df   :  { %2926 = vmax.xlane.f32.xlu0 %v2925_v18 }
0x11e1   :  { %3658 = vset.pattern.permute.xlu2 %v6257_v25 }
0x11e2   :  { %3322 = vperm.xlu2 %3658, %v5190_v20  }
0x11ea   :  { %v2805_v58 = vpop.xlane.xlu2 %2804  ;;  %3660 = vset.pattern.permute.xlu2 %v6258_v53 }
0x11eb   :  { %v2806_v23 = vcvt.f32.s32 %v2805_v58  ;;  %3367 = vperm.xlu2 %3660, %v5127_v2   ;;  %v2877_v58 = vand.u32 65535, %v5897_v38 }
0x11ed   :  { %v2809_v19 = vadd.s32 %v2808_v42, %v2806_v23  ;;  %v2879_v42 = vcvt.s32.f32 %v2877_v58 }
0x11ef   :  { %v2841_v13 = vand.u32 63, %v2809_v19  ;;  %v2849_v15 = vand.u32 4294967232, %v2809_v19  ;;  %vm2869_vm6 = vcmp.eq.s32.totalorder %v5871_v60, %v2809_v19  ;;  %v2907_v19 = vand.u32 65535, %v5914_v57 }
0x11f0   :  { %v2873_v0 = vsel %vm2869_vm6, 2147483648, %v5871_v60  ;;  %v5958_v60 = vpop.permute.xlu0 %3295 }
0x11f1   :  { %v2845_v43 = vsub.s32 63, %v2841_v13  ;;  %v2857_v25 = vxor.u32 2147483647, %v2849_v15  ;;  %v2891_v32 = vsel %vm2203_vm11, %v2873_v0, 2147483648  ;;  %vm2853_vm9 = vcmp.lt.s32.totalorder %v2849_v15, 0 }
0x11f2   :  { %v2893_v62 = vshra.s32 %v2891_v32, 16  ;;  %v2909_v38 = vcvt.s32.f32 %v2907_v19 }
0x11f3   :  { %3125 = vperm.xlu0 %3655, %v5117_v6   ;;  %3662 = vset.pattern.permute.xlu2 %v6259_v12  ;;  %v5952_v7 = vsel %vm1794_vm2, %v5877_v28, %v2845_v43  ;;  %v2861_v55 = vsel %vm2853_vm9, %v2857_v25, %v2849_v15  ;;  %v6260_v28 = vmov 5   ;;  %v2892_v25 = vand.u32 65535, %v2891_v32 }
0x11f4   :  { %v2895_v45 = vcvt.s32.f32 %v2893_v62  ;;  %v5956_v63 = vsel %vm1794_vm2, %v5881_v33, %v2861_v55 }
0x11f5   :  { %v2894_v55 = vcvt.s32.f32 %v2892_v25 }
0x11f6   :  { %2896 = vmax.xlane.f32.xlu1 %v2895_v45 }
0x120f   :  { %3319 = vperm.xlu1 %3657, %v5127_v2  }
0x1214   :  { %v2882_v6 = vpop.xlane.xlu0 %2881 }
0x1215   :  { %vm2883_vm11 = vcmp.eq.f32.partialorder %v5904_v5, %v2882_v6  ;;  %v2922_v5 = vand.u32 65535, %v2921_v46 }
0x1216   :  { %v2884_v23 = vsel %vm2883_vm11, %v2879_v42, -inf }
0x1217   :  { %3659 = vset.pattern.permute.xlu1 %v6260_v28  ;;  %2885 = vmax.xlane.f32.xlu2 %v2884_v23  ;;  %v2924_v0 = vcvt.s32.f32 %v2922_v5 }
0x1218   :  { %3346 = vperm.xlu1 %3659, %v5190_v20  }
0x1220   :  { %3661 = vset.pattern.permute.xlu1 %v6258_v53 }
0x1221   :  { %3370 = vperm.xlu1 %3661, %v5190_v20  }
0x1229   :  { %3663 = vset.pattern.permute.xlu1 %v6259_v12 }
0x1234   :  { %v2912_v33 = vpop.xlane.xlu2 %2911 }
0x1235   :  { %vm2913_vm2 = vcmp.eq.f32.partialorder %v5921_v35, %v2912_v33 }
0x1236   :  { %v2914_v13 = vsel %vm2913_vm2, %v2909_v38, -inf }
0x123c   :  { %v5976_v35 = vpop.permute.xlu2 %3298 }
0x1244   :  { %v5979_v46 = vpop.permute.xlu2 %3322 }
0x124b   :  { %2915 = vmax.xlane.f32.xlu1 %v2914_v13 }
0x1252   :  { %v2927_v15 = vpop.xlane.xlu0 %2926 }
0x1253   :  { %vm2928_vm7 = vcmp.eq.f32.partialorder %v2925_v18, %v2927_v15  ;;  %v2888_v18 = vcvt.f32.s32 %v2882_v6 }
0x1254   :  { %v2929_v43 = vsel %vm2928_vm7, %v2924_v0, -inf }
0x1255   :  { %2930 = vmax.xlane.f32.xlu2 %v2929_v43 }
0x1264   :  { %3394 = vperm.xlu1 %3663, %v5190_v20   ;;  %v5982_v20 = vpop.permute.xlu2 %3367 }
0x1269   :  { %v5971_v62 = vpop.xlane.xlu1 %2896 }
0x126a   :  { %vm2898_vm12 = vcmp.eq.f32.partialorder %v2895_v45, %v5971_v62  ;;  %v2889_v45 = vshll.u32 %v2888_v18, 16 }
0x126b   :  { %v2899_v57 = vsel %vm2898_vm12, %v2894_v55, -inf  ;;  %v2918_v55 = vcvt.f32.s32 %v2912_v33 }
0x126c   :  { %2900 = vmax.xlane.f32.xlu0 %v2899_v57  ;;  %3666 = vset.pattern.permute.xlu1 %v6258_v53 }
0x126d   :  { %3391 = vperm.xlu2 %3662, %v5127_v2   ;;  %v2919_v57 = vshll.u32 %v2918_v55, 16 }
0x1275   :  { %3665 = vset.pattern.permute.xlu2 %v6260_v28 }
0x1280   :  { %3313 = vperm.xlu0 %3655, %v5108_v21  }
0x1281   :  { %v5996_v43 = vpop.permute.xlu1 %3319 }
0x1288   :  { %3316 = vperm.xlu0 %3655, %v5167_v52  }
0x128a   :  { %v2886_v32 = vpop.xlane.xlu2 %2885  ;;  %v5998_v25 = vpop.permute.xlu1 %3346 }
0x128b   :  { %v2887_v58 = vcvt.f32.s32 %v2886_v32 }
0x128d   :  { %v2890_v42 = vadd.s32 %v2889_v45, %v2887_v58 }
0x128f   :  { %v2936_v23 = vand.u32 63, %v2890_v42  ;;  %v2944_v19 = vand.u32 4294967232, %v2890_v42 }
0x1290   :  { %3664 = vset.pattern.permute.xlu0 %v6260_v28 }
0x1291   :  { %v2940_v38 = vsub.s32 63, %v2936_v23  ;;  %v2952_v13 = vxor.u32 2147483647, %v2944_v19  ;;  %3152 = vperm.xlu0 %3664, %v5177_v9   ;;  %vm2948_vm10 = vcmp.lt.s32.totalorder %v2944_v19, 0 }
0x1293   :  { %v5989_v5 = vsel %vm1803_vm13, %v5902_v17, %v2940_v38  ;;  %v2956_v6 = vsel %vm2948_vm10, %v2952_v13, %v2944_v19  ;;  %v6000_v28 = vpop.permute.xlu1 %3370 }
0x1294   :  { %v5993_v0 = vsel %vm1803_vm13, %v5908_v30, %v2956_v6  ;;  %v2933_v30 = vcvt.f32.s32 %v2927_v15 }
0x1295   :  { %v3412_v17 = vsel %vm2144_vm14, %v5993_v0, -inf }
0x1296   :  { %v2934_v13 = vshll.u32 %v2933_v30, 16 }
0x1299   :  { %3343 = vperm.xlu0 %3664, %v5127_v2  }
0x12be   :  { %v2916_v9 = vpop.xlane.xlu1 %2915 }
0x12bf   :  { %v2917_v18 = vcvt.f32.s32 %v2916_v9 }
0x12c1   :  { %v2920_v32 = vadd.s32 %v2919_v57, %v2917_v18 }
0x12c3   :  { %v2938_v45 = vand.u32 63, %v2920_v32  ;;  %v2946_v58 = vand.u32 4294967232, %v2920_v32  ;;  %3413 = vmax.xlane.f32.xlu0 %v3412_v17 }
0x12c5   :  { %v2942_v42 = vsub.s32 63, %v2938_v45  ;;  %v2954_v2 = vxor.u32 2147483647, %v2946_v58  ;;  %vm2950_vm8 = vcmp.lt.s32.totalorder %v2946_v58, 0 }
0x12c7   :  { %v6006_v23 = vsel %vm1803_vm13, %v5919_v31, %v2942_v42  ;;  %v2958_v19 = vsel %vm2950_vm8, %v2954_v2, %v2946_v58 }
0x12c8   :  { %v2931_v33 = vpop.xlane.xlu2 %2930  ;;  %v6010_v38 = vsel %vm1803_vm13, %v5925_v49, %v2958_v19  ;;  %v6026_v19 = vpop.permute.xlu0 %3125 }
0x12c9   :  { %v2932_v6 = vcvt.f32.s32 %v2931_v33  ;;  %v3418_v55 = vsel %vm2144_vm14, %v6010_v38, -inf }
0x12ca   :  { %3419 = vmax.xlane.f32.xlu1 %v3418_v55 }
0x12cb   :  { %v2935_v15 = vadd.s32 %v2934_v13, %v2932_v6 }
0x12cd   :  { %v2939_v9 = vand.u32 63, %v2935_v15  ;;  %v2947_v57 = vand.u32 4294967232, %v2935_v15 }
0x12cf   :  { %v2943_v18 = vsub.s32 63, %v2939_v9  ;;  %v2955_v32 = vxor.u32 2147483647, %v2947_v57  ;;  %vm2951_vm0 = vcmp.lt.s32.totalorder %v2947_v57, 0 }
0x12d1   :  { %v3019_v31 = vsel %vm1803_vm13, %v5934_v22, %v2943_v18  ;;  %v2959_v17 = vsel %vm2951_vm0, %v2955_v32, %v2947_v57 }
0x12d2   :  { %v3023_v45 = vshra.s32 %v3019_v31, 3  ;;  %v6018_v49 = vsel %vm1803_vm13, %v5938_v27, %v2959_v17  ;;  %v6022_v30 = vand.u32 7, %v3019_v31 }
0x12d3   :  { %v3421_v58 = vsel %vm2144_vm14, %v6018_v49, -inf }
0x12d4   :  { %3422 = vmax.xlane.f32.xlu2 %v3421_v58  ;;  %vm3031_vm4 = vcmp.eq.s32.totalorder %v3023_v45, 0  ;;  %vm3051_vm5 = vcmp.eq.s32.totalorder %v3023_v45, 1  ;;  %vm3075_vm1 = vcmp.eq.s32.totalorder %v3023_v45, 2  ;;  %vm3099_vm3 = vcmp.eq.s32.totalorder %v3023_v45, 3 }
0x12d5   :  { %v3047_v42 = vsel %vm3031_vm4, %v5298_v29, 0  ;;  %v3067_v2 = vsel %vm3051_vm5, %v5291_v54, 0  ;;  %v3091_v27 = vsel %vm3075_vm1, %v5714_v26, 0  ;;  %vm3123_vm6 = vcmp.eq.s32.totalorder %v3023_v45, 4 }
0x12d6   :  { %v3071_v22 = vadd.s32 %v3067_v2, %v3047_v42  ;;  %vm3219_vm9 = vcmp.eq.s32.totalorder %v6022_v30, 0  ;;  %vm3239_vm11 = vcmp.eq.s32.totalorder %v6022_v30, 1  ;;  %v3115_v13 = vsel %vm3099_vm3, %v5287_v36, 0 }
0x12d7   :  { %3340 = vperm.xlu0 %3664, %v5167_v52   ;;  %v3235_v29 = vsel %vm3219_vm9, %v5718_v44, 0  ;;  %v3255_v54 = vsel %vm3239_vm11, %v5850_v1, 0  ;;  %vm3263_vm2 = vcmp.eq.s32.totalorder %v6022_v30, 2  ;;  %vm3147_vm7 = vcmp.eq.s32.totalorder %v3023_v45, 5 }
0x12d8   :  { %v3095_v33 = vadd.s32 %v3091_v27, %v3071_v22  ;;  %v3259_v55 = vadd.s32 %v3255_v54, %v3235_v29  ;;  %vm3287_vm12 = vcmp.eq.s32.totalorder %v6022_v30, 3  ;;  %v2903_v26 = vcvt.f32.s32 %v5971_v62  ;;  %v3395_v27 = vpop.permute.xlu1 %3394 }
0x12d9   :  { %v3139_v15 = vsel %vm3123_vm6, %v5309_v3, 0  ;;  %v3279_v9 = vsel %vm3263_vm2, %v5883_v10, 0  ;;  %vm3359_vm10 = vcmp.eq.s32.totalorder %v6022_v30, 6  ;;  %vm3171_vm8 = vcmp.eq.s32.totalorder %v3023_v45, 6 }
0x12da   :  { %v3119_v6 = vadd.s32 %v3115_v13, %v3095_v33  ;;  %v3283_v44 = vadd.s32 %v3279_v9, %v3259_v55  ;;  %vm3311_vm0 = vcmp.eq.s32.totalorder %v6022_v30, 4  ;;  %v3163_v1 = vsel %vm3147_vm7, %v5381_v56, 0 }
0x12db   :  { %v3303_v57 = vsel %vm3287_vm12, %v5976_v35, 0  ;;  %v3375_v18 = vsel %vm3359_vm10, %v6000_v28, 0  ;;  %vm3195_vm4 = vcmp.eq.s32.totalorder %v3023_v45, 7  ;;  %vm3335_vm5 = vcmp.eq.s32.totalorder %v6022_v30, 5 }
0x12dc   :  { %v3143_v36 = vadd.s32 %v3139_v15, %v3119_v6  ;;  %v3307_v62 = vadd.s32 %v3303_v57, %v3283_v44  ;;  %v6047_v3 = vand.u32 7, %v5989_v5  ;;  %v3187_v10 = vsel %vm3171_vm8, %v5546_v61, 0 }
0x12dd   :  { %v3327_v31 = vsel %vm3311_vm0, %v5979_v46, 0  ;;  %v2904_v56 = vshll.u32 %v2903_v26, 16  ;;  %v3211_v28 = vsel %vm3195_vm4, %v5554_v14, 0  ;;  %v3351_v45 = vsel %vm3335_vm5, %v5998_v25, 0 }
0x12de   :  { %v3167_v32 = vadd.s32 %v3163_v1, %v3143_v36  ;;  %v3331_v35 = vadd.s32 %v3327_v31, %v3307_v62  ;;  %vm3383_vm1 = vcmp.eq.s32.totalorder %v6022_v30, 7  ;;  %vm3216_vm3 = vcmp.eq.s32.totalorder %v6047_v3, 0 }
0x12df   :  { %3667 = vset.pattern.permute.xlu0 %v6258_v53  ;;  %v2901_v17 = vpop.xlane.xlu0 %2900  ;;  %vm3236_vm6 = vcmp.eq.s32.totalorder %v6047_v3, 1  ;;  %v3399_v29 = vsel %vm3383_vm1, %v3395_v27, 0  ;;  %v3232_v25 = vsel %vm3216_vm3, %v5640_v50, 0  ;;  %vm3260_vm11 = vcmp.eq.s32.totalorder %v6047_v3, 2 }
0x12e0   :  { %v3191_v58 = vadd.s32 %v3187_v10, %v3167_v32  ;;  %v2902_v42 = vcvt.f32.s32 %v2901_v17  ;;  %3364 = vperm.xlu0 %3667, %v5167_v52   ;;  %v3355_v22 = vadd.s32 %v3351_v45, %v3331_v35  ;;  %v3252_v55 = vsel %vm3236_vm6, %v5710_v16, 0 }
0x12e1   :  { %v3256_v50 = vadd.s32 %v3252_v55, %v3232_v25  ;;  %vm3308_vm8 = vcmp.eq.s32.totalorder %v6047_v3, 4 }
0x12e2   :  { %v3215_v2 = vadd.s32 %v3211_v28, %v3191_v58  ;;  %v2905_v33 = vadd.s32 %v2904_v56, %v2902_v42  ;;  %v3379_v61 = vadd.s32 %v3375_v18, %v3355_v22 }
0x12e4   :  { %v3407_v53 = vmul.u32 128, %v3215_v2  ;;  %v2937_v46 = vand.u32 63, %v2905_v33  ;;  %v2945_v13 = vand.u32 4294967232, %v2905_v33  ;;  %v3403_v54 = vadd.s32 %v3399_v29, %v3379_v61 }
0x12e6   :  { %v2941_v6 = vsub.s32 63, %v2937_v46  ;;  %v2953_v14 = vxor.u32 2147483647, %v2945_v13  ;;  %vm2949_vm9 = vcmp.lt.s32.totalorder %v2945_v13, 0  ;;  %v6060_v26 = vadd.s32 %v3407_v53, %v3403_v54  ;;  %v6261_v53 = vld [vmem:[#allocation25_spill] sm:$0xff] }
0x12e8   :  { %v3017_v30 = vsel %vm1803_vm13, %v5952_v7, %v2941_v6  ;;  %v2957_v15 = vsel %vm2949_vm9, %v2953_v14, %v2945_v13  ;;  %3669 = vset.pattern.permute.xlu0 %v6259_v12  ;;  %v3276_v7 = vsel %vm3260_vm11, %v5832_v48, 0  ;;  %v6101_v6 = vpop.permute.xlu2 %3391 }
0x12e9   :  { %v6065_v9 = vand.u32 7, %v3017_v30  ;;  %v6069_v36 = vsel %vm1803_vm13, %v5956_v63, %v2957_v15  ;;  %v3021_v16 = vshra.s32 %v3017_v30, 3  ;;  %v3280_v1 = vadd.s32 %v3276_v7, %v3256_v50 }
0x12ea   :  { %v3415_v44 = vsel %vm2144_vm14, %v6069_v36, -inf  ;;  %vm3284_vm13 = vcmp.eq.s32.totalorder %v6047_v3, 3 }
0x12eb   :  { %3416 = vmax.xlane.f32.xlu1 %v3415_v44  ;;  %vm3217_vm2 = vcmp.eq.s32.totalorder %v6065_v9, 0  ;;  %vm3237_vm7 = vcmp.eq.s32.totalorder %v6065_v9, 1  ;;  %v3300_v18 = vsel %vm3284_vm13, %v5848_v11, 0  ;;  %vm3029_vm12 = vcmp.eq.s32.totalorder %v3021_v16, 0 }
0x12ec   :  { %3337 = vperm.xlu2 %3665, %v5108_v21   ;;  %v3233_v63 = vsel %vm3217_vm2, %v5633_v4, 0  ;;  %v3253_v57 = vsel %vm3237_vm7, %v5782_v39, 0  ;;  %vm3049_vm10 = vcmp.eq.s32.totalorder %v3021_v16, 1  ;;  %v3304_v32 = vadd.s32 %v3300_v18, %v3280_v1 }
0x12ed   :  { %v3257_v10 = vadd.s32 %v3253_v57, %v3233_v63  ;;  %vm3261_vm0 = vcmp.eq.s32.totalorder %v6065_v9, 2  ;;  %v3045_v17 = vsel %vm3029_vm12, %v5289_v24, 0  ;;  %v3065_v56 = vsel %vm3049_vm10, %v5271_v47, 0 }
0x12ee   :  { %v3277_v4 = vsel %vm3261_vm0, %v5810_v51, 0  ;;  %vm3285_vm4 = vcmp.eq.s32.totalorder %v6065_v9, 3  ;;  %v3069_v11 = vadd.s32 %v3065_v56, %v3045_v17  ;;  %vm3073_vm5 = vcmp.eq.s32.totalorder %v3021_v16, 2 }
0x12ef   :  { %v3281_v39 = vadd.s32 %v3277_v4, %v3257_v10  ;;  %v3301_v58 = vsel %vm3285_vm4, %v5889_v8, 0  ;;  %vm3309_vm1 = vcmp.eq.s32.totalorder %v6065_v9, 4  ;;  %v3089_v28 = vsel %vm3073_vm5, %v5300_v41, 0 }
0x12f0   :  { %v3093_v45 = vadd.s32 %v3089_v28, %v3069_v11  ;;  %vm3097_vm3 = vcmp.eq.s32.totalorder %v3021_v16, 3  ;;  %vm3121_vm6 = vcmp.eq.s32.totalorder %v3021_v16, 4  ;;  %vm3145_vm9 = vcmp.eq.s32.totalorder %v3021_v16, 5  ;;  %v6265_v28 = vld [vmem:[#allocation28_spill] sm:$0xff] }
0x12f1   :  { %v3305_v35 = vadd.s32 %v3301_v58, %v3281_v39  ;;  %v3137_v2 = vsel %vm3121_vm6, %v5304_v37, 0  ;;  %vm3169_vm11 = vcmp.eq.s32.totalorder %v3021_v16, 6  ;;  %vm3193_vm2 = vcmp.eq.s32.totalorder %v3021_v16, 7  ;;  %v6263_v39 = vld [vmem:[#allocation26_spill] sm:$0xff] }
0x12f2   :  { %v3314_v62 = vpop.permute.xlu0 %3313  ;;  %v3185_v61 = vsel %vm3169_vm11, %v5425_v40, 0  ;;  %v3209_v46 = vsel %vm3193_vm2, %v6261_v53, 0  ;;  %vm3333_vm7 = vcmp.eq.s32.totalorder %v6065_v9, 5  ;;  %vm3332_vm13 = vcmp.eq.s32.totalorder %v6047_v3, 5 }
0x12f3   :  { %v3324_v31 = vsel %vm3308_vm8, %v3314_v62, 0  ;;  %v3022_v63 = vshra.s32 %v6006_v23, 3  ;;  %vm3357_vm12 = vcmp.eq.s32.totalorder %v6065_v9, 6  ;;  %v3026_v17 = vand.u32 7, %v6006_v23 }
0x12f4   :  { %v3328_v48 = vadd.s32 %v3324_v31, %v3304_v32  ;;  %3668 = vset.pattern.permute.xlu2 %v6259_v12  ;;  %v3113_v12 = vsel %vm3097_vm3, %v5279_v34, 0 }
0x12f5   :  { %v3117_v51 = vadd.s32 %v3113_v12, %v3093_v45  ;;  %vm3030_vm10 = vcmp.eq.s32.totalorder %v3022_v63, 0  ;;  %vm3050_vm8 = vcmp.eq.s32.totalorder %v3022_v63, 1  ;;  %vm3218_vm0 = vcmp.eq.s32.totalorder %v3026_v17, 0  ;;  %v6266_v45 = vld [vmem:[#allocation14_spill] sm:$0xff] }
0x12f6   :  { %v3066_v11 = vsel %vm3050_vm8, %v6263_v39, 0  ;;  %vm3238_vm4 = vcmp.eq.s32.totalorder %v3026_v17, 1  ;;  %vm3074_vm5 = vcmp.eq.s32.totalorder %v3022_v63, 2  ;;  %vm3098_vm3 = vcmp.eq.s32.totalorder %v3022_v63, 3 }
0x12f7   :  { %v3141_v22 = vadd.s32 %v3137_v2, %v3117_v51  ;;  %v6267_v2 = vld [vmem:[#allocation19_spill] sm:$0xff]  ;;  %vm3286_vm6 = vcmp.eq.s32.totalorder %v3026_v17, 3  ;;  %vm3310_vm11 = vcmp.eq.s32.totalorder %v3026_v17, 4  ;;  %vm3146_vm2 = vcmp.eq.s32.totalorder %v3022_v63, 5 }
0x12f8   :  { %vm3382_vm8 = vcmp.eq.s32.totalorder %v3026_v17, 7 }
0x12fa   :  { %v3317_v42 = vpop.permute.xlu0 %3316 }
0x12fb   :  { %v3325_v24 = vsel %vm3309_vm1, %v3317_v42, 0  ;;  %vm3262_vm1 = vcmp.eq.s32.totalorder %v3026_v17, 2 }
0x12fc   :  { %v3329_v47 = vadd.s32 %v3325_v24, %v3305_v35  ;;  %v6264_v35 = vld [vmem:[#allocation27_spill] sm:$0xff]  ;;  %v3254_v24 = vsel %vm3238_vm4, %v6265_v28, 0  ;;  %v3278_v51 = vsel %vm3262_vm1, %v5866_v59, 0  ;;  %v6269_v59 = vld [vmem:[#allocation20_spill] sm:$0xff] }
0x12fd   :  { %v3234_v42 = vsel %vm3218_vm0, %v6264_v35, 0 }
0x12fe   :  { %v3258_v23 = vadd.s32 %v3254_v24, %v3234_v42  ;;  %v6274_v24 = vld [vmem:[#allocation12_spill] sm:$0xff] }
0x1303   :  { %v3153_v8 = vpop.permute.xlu0 %3152 }
0x1304   :  { %v3161_v27 = vsel %vm3145_vm9, %v3153_v8, 0  ;;  %v3282_v8 = vadd.s32 %v3278_v51, %v3258_v23  ;;  %vm3122_vm9 = vcmp.eq.s32.totalorder %v3022_v63, 4 }
0x1305   :  { %v3165_v33 = vadd.s32 %v3161_v27, %v3141_v22  ;;  %v3114_v22 = vsel %vm3098_vm3, %v6267_v2, 0 }
0x1307   :  { %v3189_v41 = vadd.s32 %v3185_v61, %v3165_v33  ;;  %v3302_v33 = vsel %vm3286_vm6, %v5958_v60, 0  ;;  %v6268_v61 = vld [vmem:[#allocation16_spill] sm:$0xff]  ;;  %v6270_v60 = vld [vmem:[#allocation21_spill] sm:$0xff] }
0x1308   :  { %v3306_v53 = vadd.s32 %v3302_v33, %v3282_v8 }
0x1309   :  { %v6096_v13 = vadd.s32 %v3209_v46, %v3189_v41  ;;  %v3138_v41 = vsel %vm3122_vm9, %v6268_v61, 0 }
0x130b   :  { %v6098_v29 = vpop.permute.xlu0 %3343 }
0x1336   :  { %v3414_v34 = vpop.xlane.xlu0 %3413 }
0x1337   :  { %v3424_v14 = vsub.f32 %v5993_v0, %v3414_v34  ;;  %v3326_v34 = vsel %vm3310_vm11, %v5996_v43, 0 }
0x1339   :  { %v3428_v55 = vmul.f32 1.442695, %v3424_v14  ;;  %v3330_v14 = vadd.s32 %v3326_v34, %v3306_v53 }
0x133d   :  { %v3420_v54 = vpop.xlane.xlu1 %3419 }
0x133e   :  { %v3426_v37 = vsub.f32 %v6010_v38, %v3420_v54 }
0x1340   :  { %v3432_v25 = vmul.f32 1.442695, %v3426_v37  ;;  %v3162_v37 = vsel %vm3146_vm2, %v6269_v59, 0 }
0x1342   :  { %3672 = vpow2.f32 %v3432_v25 }
0x1343   :  { %3674 = vpow2.f32 %v3428_v55 }
0x1347   :  { %v3423_v30 = vpop.xlane.xlu2 %3422 }
0x1348   :  { %v6104_v40 = vpop.eup %3672  ;;  %v3427_v15 = vsub.f32 %v6018_v49, %v3423_v30 }
0x1349   :  { %v3341_v44 = vpop.permute.xlu0 %3340  ;;  %v3442_v50 = vsel %vm2144_vm14, %v6104_v40, 0.0  ;;  %v6110_v0 = vpop.eup %3674 }
0x134a   :  { %v3434_v38 = vmul.f32 1.442695, %v3427_v15  ;;  %v3349_v16 = vsel %vm3333_vm7, %v3341_v44, 0  ;;  %3443 = vadd.xlane.f32.xlu2 %v3442_v50  ;;  %v3436_v18 = vsel %vm2144_vm14, %v6110_v0, 0.0  ;;  %vm3334_vm7 = vcmp.eq.s32.totalorder %v3026_v17, 5  ;;  %v6271_v50 = vld [vmem:[#allocation24_spill] sm:$0xff] }
0x134b   :  { %v3353_v7 = vadd.s32 %v3349_v16, %v3329_v47  ;;  %v3090_v47 = vsel %vm3074_vm5, %v6266_v45, 0  ;;  %v3350_v54 = vsel %vm3334_vm7, %v6098_v29, 0  ;;  %v3398_v16 = vsel %vm3382_vm8, %v6101_v6, 0 }
0x134c   :  { %3676 = vpow2.f32 %v3434_v38  ;;  %v3354_v55 = vadd.s32 %v3350_v54, %v3330_v14 }
0x134f   :  { %v3338_v1 = vpop.permute.xlu2 %3337 }
0x1350   :  { %v3348_v57 = vsel %vm3332_vm13, %v3338_v1, 0  ;;  %vm3170_vm13 = vcmp.eq.s32.totalorder %v3022_v63, 6 }
0x1351   :  { %v6114_v49 = vadd.s32 %v3348_v57, %v3328_v48  ;;  %v6262_v48 = vld [vmem:[#allocation11_spill] sm:$0xff]  ;;  %v3186_v30 = vsel %vm3170_vm13, %v6270_v60, 0  ;;  %v6276_v60 = vld [vmem:[#allocation18_spill] sm:$0xff] }
0x1352   :  { %v6118_v32 = vpop.eup %3676  ;;  %v3365_v62 = vpop.permute.xlu0 %3364  ;;  %3437 = vadd.xlane.f32.xlu2 %v3436_v18  ;;  %v3046_v4 = vsel %vm3030_vm10, %v6262_v48, 0  ;;  %vm3194_vm10 = vcmp.eq.s32.totalorder %v3022_v63, 7 }
0x1353   :  { %v3373_v10 = vsel %vm3357_vm12, %v3365_v62, 0  ;;  %v3445_v31 = vsel %vm2144_vm14, %v6118_v32, 0.0  ;;  %v3070_v58 = vadd.s32 %v3066_v11, %v3046_v4  ;;  %vm3358_vm12 = vcmp.eq.s32.totalorder %v3026_v17, 6 }
0x1354   :  { %v6124_v56 = vadd.s32 %v3373_v10, %v3353_v7  ;;  %3446 = vadd.xlane.f32.xlu1 %v3445_v31  ;;  %v3374_v44 = vsel %vm3358_vm12, %v5982_v20, 0  ;;  %v3210_v29 = vsel %vm3194_vm10, %v6271_v50, 0  ;;  %v6272_v10 = vld [vmem:[#allocation13_spill] sm:$0xff]  ;;  %vm3381_vm10 = vcmp.eq.s32.totalorder %v6065_v9, 7 }
0x1355   :  { %v3094_v12 = vadd.s32 %v3090_v47, %v3070_v58  ;;  %v3378_v43 = vadd.s32 %v3374_v44, %v3354_v55 }
0x1357   :  { %v3118_v27 = vadd.s32 %v3114_v22, %v3094_v12  ;;  %v3402_v7 = vadd.s32 %v3398_v16, %v3378_v43  ;;  %v6275_v22 = vld [vmem:[#allocation17_spill] sm:$0xff]  ;;  %v6277_v16 = vld [vmem:[#allocation22_spill] sm:$0xff] }
0x1359   :  { %v3142_v46 = vadd.s32 %v3138_v41, %v3118_v27 }
0x135b   :  { %v3166_v25 = vadd.s32 %v3162_v37, %v3142_v46 }
0x135d   :  { %v3190_v15 = vadd.s32 %v3186_v30, %v3166_v25 }
0x135f   :  { %v3214_v38 = vadd.s32 %v3210_v29, %v3190_v15 }
0x1361   :  { %v3406_v1 = vmul.u32 128, %v3214_v38 }
0x1363   :  { %v3410_v57 = vadd.s32 %v3406_v1, %v3402_v7 }
0x136a   :  { %3385 = vperm.xlu2 %3668, %v5108_v21  }
0x136d   :  { %3361 = vperm.xlu1 %3666, %v5108_v21   ;;  %v3417_v21 = vpop.xlane.xlu1 %3416 }
0x136e   :  { %v3425_v18 = vsub.f32 %v6069_v36, %v3417_v21  ;;  %v6273_v36 = vld [vmem:[#allocation15_spill] sm:$0xff] }
0x1370   :  { %v3430_v63 = vmul.f32 1.442695, %v3425_v18 }
0x1372   :  { %3388 = vperm.xlu2 %3668, %v5167_v52   ;;  %3678 = vpow2.f32 %v3430_v63  ;;  %v6152_v52 = vshra.s32 %v5989_v5, 3 }
0x1374   :  { %vm3028_vm0 = vcmp.eq.s32.totalorder %v6152_v52, 0  ;;  %vm3048_vm4 = vcmp.eq.s32.totalorder %v6152_v52, 1  ;;  %vm3072_vm5 = vcmp.eq.s32.totalorder %v6152_v52, 2  ;;  %vm3096_vm3 = vcmp.eq.s32.totalorder %v6152_v52, 3 }
0x1375   :  { %v3044_v31 = vsel %vm3028_vm0, %v6272_v10, 0  ;;  %v3064_v17 = vsel %vm3048_vm4, %v6273_v36, 0  ;;  %v3088_v45 = vsel %vm3072_vm5, %v6274_v24, 0  ;;  %v3112_v8 = vsel %vm3096_vm3, %v6275_v22, 0 }
0x1376   :  { %v3068_v11 = vadd.s32 %v3064_v17, %v3044_v31  ;;  %vm3120_vm2 = vcmp.eq.s32.totalorder %v6152_v52, 4  ;;  %vm3144_vm7 = vcmp.eq.s32.totalorder %v6152_v52, 5  ;;  %vm3168_vm0 = vcmp.eq.s32.totalorder %v6152_v52, 6 }
0x1377   :  { %v3136_v34 = vsel %vm3120_vm2, %v6026_v19, 0  ;;  %v3160_v30 = vsel %vm3144_vm7, %v6276_v60, 0  ;;  %v3405_v19 = vmul.u32 128, %v6096_v13  ;;  %v3184_v7 = vsel %vm3168_vm0, %v6277_v16, 0  ;;  %v6278_v13 = vld [vmem:[#allocation23_spill] sm:$0xff] }
0x1378   :  { %v6147_v20 = vpop.eup %3678  ;;  %v3092_v47 = vadd.s32 %v3088_v45, %v3068_v11  ;;  %vm3192_vm5 = vcmp.eq.s32.totalorder %v6152_v52, 7  ;;  %vm3380_vm3 = vcmp.eq.s32.totalorder %v6047_v3, 7 }
0x1379   :  { %v3439_v62 = vsel %vm2144_vm14, %v6147_v20, 0.0 }
0x137a   :  { %3520 = vrot.lane.b32.xlu2 %v3410_v57, %s3768_s30  ;;  %v3116_v61 = vadd.s32 %v3112_v8, %v3092_v47  ;;  %v3208_v57 = vsel %vm3192_vm5, %v6278_v13, 0 }
0x137c   :  { %v3140_v59 = vadd.s32 %v3136_v34, %v3116_v61 }
0x137e   :  { %v3164_v44 = vadd.s32 %v3160_v30, %v3140_v59 }
0x1380   :  { %v3188_v1 = vadd.s32 %v3184_v7, %v3164_v44 }
0x1397   :  { %3440 = vadd.xlane.f32.xlu1 %v3439_v62 }
0x13bd   :  { %v3444_v6 = vpop.xlane.xlu2 %3443 }
0x13be   :  { %3680 = vrcp.f32 %v3444_v6  ;;  %v3489_v35 = vand.u32 2147483648, %v3444_v6  ;;  %v3487_v28 = vand.u32 2147483647, %v3444_v6  ;;  %vm3483_vm6 = vweird.f32 %v3444_v6 }
0x13c0   :  { %v3490_v12 = vor.u32 1.1754944e-38, %v3489_v35  ;;  %vm3488_vm11 = vcmp.eq.f32.partialorder %v3487_v28, 8.507059e+37 }
0x13c4   :  { %v3681_v48 = vpop.eup %3680 }
0x13c5   :  { %v3479_v4 = vmul.f32 %v3681_v48, %v3444_v6  ;;  %v6158_v39 = vpop.xlane.xlu2 %3437  ;;  %vm3484_vm1 = vweird.f32 %v3681_v48 }
0x13c6   :  { %vm3485_vm9 = vmor %vm3483_vm6, %vm3484_vm1  ;;  %vm3356_vm1 = vcmp.eq.s32.totalorder %v6047_v3, 6 }
0x13c7   :  { %v3480_v58 = vsub.f32 1.0, %v3479_v4  ;;  %v3447_v5 = vpop.xlane.xlu1 %3446 }
0x13c8   :  { %3682 = vrcp.f32 %v3447_v5  ;;  %v3504_v54 = vand.u32 2147483648, %v3447_v5  ;;  %v3502_v14 = vand.u32 2147483647, %v3447_v5  ;;  %vm3498_vm12 = vweird.f32 %v3447_v5 }
0x13c9   :  { %v3481_v42 = vmul.f32 %v3681_v48, %v3480_v58  ;;  %3684 = vrcp.f32 %v6158_v39  ;;  %v3459_v58 = vand.u32 2147483648, %v6158_v39 }
0x13ca   :  { %vm3503_vm4 = vcmp.eq.f32.partialorder %v3502_v14, 8.507059e+37 }
0x13cb   :  { %v3482_v23 = vadd.f32 %v3681_v48, %v3481_v42  ;;  %v3460_v28 = vor.u32 1.1754944e-38, %v3459_v58 }
0x13cd   :  { %v3386_v51 = vpop.permute.xlu2 %3385  ;;  %v3486_v2 = vsel %vm3485_vm9, %v3681_v48, %v3482_v23  ;;  %vm3453_vm9 = vweird.f32 %v6158_v39 }
0x13ce   :  { %v3683_v27 = vpop.eup %3682  ;;  %v3491_v33 = vsel %vm3488_vm11, %v3490_v12, %v3486_v2  ;;  %v3396_v63 = vsel %vm3380_vm3, %v3386_v51, 0 }
0x13cf   :  { %v3494_v41 = vmul.f32 %v3683_v27, %v3447_v5  ;;  %v3492_v53 = vmul.f32 %v6104_v40, %v3491_v33  ;;  %vm3499_vm13 = vweird.f32 %v3683_v27  ;;  %v3505_v40 = vor.u32 1.1754944e-38, %v3504_v54  ;;  %v3685_v52 = vpop.eup %3684 }
0x13d0   :  { %vm3500_vm8 = vmor %vm3498_vm12, %vm3499_vm13  ;;  %v3449_v17 = vmul.f32 %v3685_v52, %v6158_v39  ;;  %vm3454_vm6 = vweird.f32 %v3685_v52  ;;  %v3457_v5 = vand.u32 2147483647, %v6158_v39 }
0x13d1   :  { %v3495_v46 = vsub.f32 1.0, %v3494_v41  ;;  %3510 = vrot.lane.b32.xlu1 %v3492_v53, %s3768_s30  ;;  %vm3455_vm11 = vmor %vm3453_vm9, %vm3454_vm6 }
0x13d2   :  { %v3450_v48 = vsub.f32 1.0, %v3449_v17  ;;  %vm3458_vm2 = vcmp.eq.f32.partialorder %v3457_v5, 8.507059e+37 }
0x13d3   :  { %v3496_v37 = vmul.f32 %v3683_v27, %v3495_v46 }
0x13d4   :  { %v3451_v4 = vmul.f32 %v3685_v52, %v3450_v48 }
0x13d5   :  { %v3389_v25 = vpop.permute.xlu2 %3388  ;;  %v3497_v55 = vadd.f32 %v3683_v27, %v3496_v37 }
0x13d6   :  { %v3397_v15 = vsel %vm3381_vm10, %v3389_v25, 0  ;;  %v3452_v11 = vadd.f32 %v3685_v52, %v3451_v4 }
0x13d7   :  { %v3401_v43 = vadd.s32 %v3397_v15, %v6124_v56  ;;  %v3501_v50 = vsel %vm3500_vm8, %v3683_v27, %v3497_v55  ;;  %v3212_v56 = vadd.s32 %v3208_v57, %v3188_v1 }
0x13d8   :  { %v3506_v29 = vsel %vm3503_vm4, %v3505_v40, %v3501_v50  ;;  %v3456_v42 = vsel %vm3455_vm11, %v3685_v52, %v3452_v11 }
0x13d9   :  { %v6174_v38 = vadd.s32 %v3405_v19, %v3401_v43  ;;  %3522 = vrot.lane.b32.xlu1 %v6060_v26, %s3768_s30  ;;  %v3507_v9 = vmul.f32 %v6118_v32, %v3506_v29  ;;  %v3404_v32 = vmul.u32 128, %v3212_v56  ;;  %v3461_v45 = vsel %vm3458_vm2, %v3460_v28, %v3456_v42 }
0x13da   :  { %v3462_v23 = vmul.f32 %v6110_v0, %v3461_v45 }
0x13db   :  { %3512 = vrot.lane.b32.xlu0 %v3507_v9, %s3768_s30 }
0x13dd   :  { %v3521_v10 = vpop.permute.xlu2 %3520 }
0x13df   :  { %v3362_v21 = vpop.permute.xlu1 %3361 }
0x13e0   :  { %v3372_v18 = vsel %vm3356_vm1, %v3362_v21, 0 }
0x13e1   :  { %v3376_v26 = vadd.s32 %v3372_v18, %v6114_v49 }
0x13e3   :  { %v3400_v62 = vadd.s32 %v3396_v63, %v3376_v26 }
0x13e5   :  { %v3408_v6 = vadd.s32 %v3404_v32, %v3400_v62 }
0x13e7   :  { %v3524_v31 = vsel %vm2144_vm14, %v3408_v6, %v3521_v10 }
0x13e8   :  { %3526 = vst.msk [vmem:[#allocation6] sm:$0xff] %vm2149_vm15, %v3524_v31 }
0x140a   :  { %v3441_v36 = vpop.xlane.xlu1 %3440 }
0x140b   :  { %3686 = vrcp.f32 %v3441_v36  ;;  %v3474_v12 = vand.u32 2147483648, %v3441_v36  ;;  %vm3468_vm13 = vweird.f32 %v3441_v36  ;;  %v3472_v2 = vand.u32 2147483647, %v3441_v36 }
0x140d   :  { %v3475_v8 = vor.u32 1.1754944e-38, %v3474_v12  ;;  %vm3473_vm10 = vcmp.eq.f32.partialorder %v3472_v2, 8.507059e+37 }
0x1411   :  { %v3687_v3 = vpop.eup %3686 }
0x1412   :  { %v3464_v49 = vmul.f32 %v3687_v3, %v3441_v36  ;;  %vm3469_vm7 = vweird.f32 %v3687_v3 }
0x1413   :  { %vm3470_vm12 = vmor %vm3468_vm13, %vm3469_vm7 }
0x1414   :  { %v3465_v35 = vsub.f32 1.0, %v3464_v49 }
0x1416   :  { %v3466_v24 = vmul.f32 %v3687_v3, %v3465_v35 }
0x1418   :  { %v3467_v47 = vadd.f32 %v3687_v3, %v3466_v24 }
0x141a   :  { %v3471_v39 = vsel %vm3470_vm12, %v3687_v3, %v3467_v47 }
0x141b   :  { %v3476_v27 = vsel %vm3473_vm10, %v3475_v8, %v3471_v39 }
0x141c   :  { %v3477_v61 = vmul.f32 %v6147_v20, %v3476_v27 }
0x1443   :  { %v3511_v51 = vpop.permute.xlu1 %3510 }
0x1444   :  { %v3516_v22 = vsel %vm2144_vm14, %v3462_v23, %v3511_v51 }
0x1445   :  { %3518 = vst.msk [vmem:[#allocation5] sm:$0xff] %vm2149_vm15, %v3516_v22 }
0x144b   :  { %v3523_v0 = vpop.permute.xlu1 %3522 }
0x144c   :  { %v3525_v33 = vsel %vm2144_vm14, %v6174_v38, %v3523_v0 }
0x144d   :  { %3527 = vst.msk [vmem:[#allocation6 + $0x8] sm:$0xff] %vm2149_vm15, %v3525_v33  ;;  %v3513_v41 = vpop.permute.xlu0 %3512 }
0x144e   :  { %v3517_v53 = vsel %vm2144_vm14, %v3477_v61, %v3513_v41  ;;  %3553 = dma.vmem_to_hbm [thread:$0]  %s3546_s16, 256, %s3548_s19, [#allocation7], %s3767_s29, %s3767_s29, %s3768_s30  }
0x144f   :  { %3519 = vst.msk [vmem:[#allocation5 + $0x8] sm:$0xff] %vm2149_vm15, %v3517_v53 }
0x1450   :  { %3540 = dma.vmem_to_hbm [thread:$0]  %s3533_s20, 256, %s3535_s23, [#allocation4], %s3767_s29, %s3767_s29, %s3768_s30  }
0x1451   :  { %3762 = dma.done.wait [#allocation4], 256  }
0x1452   :  { %3763 = vsyncadd [#allocation4], 4294967040 }
0x1453   :  { %3764 = dma.done.wait [#allocation7], 256  }
0x1454   :  { %3765 = vsyncadd [#allocation7], 4294967040 }
0x1455   :  { %3562 = vsyncpa [#allocation3], 1 }
0x1456   :  { %3563 = vsyncpa [#allocation4], 1 }
0x1457   :  { %3564 = vsyncpa [#allocation7], 1 }

</bundles_post_ra>
